<compile_context>
chip_gen: v7x
topology: tpu7x:2x2x1
jax: 0.10.0
libtpu: 0.0.40
codegen_flags: <defaults>
</compile_context>

<pallas_src>
import math

import jax
import jax.numpy as jnp
from jax.experimental import pallas as pl
from jax.experimental.pallas import tpu as pltpu


def _ff_coupling_kernel(xT_ref, f_ref, phi_ref, w_ref, oT_ref):
    # xT_ref : (dim, TN)          full input block, batch on lanes
    # f_ref  : (2*K*d1, dim)      stacked frequency matrix (zero cols for x2 positions)
    # phi_ref: (2*K*d1, 1)        stacked phases [b_s ; b_t]
    # w_ref  : (2*dim, 2*K*d1)    zero-padded block-diag coefficients [a_s^T | 0 ; 0 | a_t^T]
    # oT_ref : (dim, TN)          full output block
    x = xT_ref[...]                                                        # (dim, TN)
    dim = x.shape[0]
    # arg[m, n] = freq_k * x1[j, n] + phi[m]   (m = half*K*d1 + k*d1 + j)
    arg = jnp.dot(f_ref[...], x, preferred_element_type=jnp.float32) + phi_ref[...]
    trig = jnp.cos(arg)                                                    # (2*K*d1, TN) -- EUP
    st = jnp.dot(w_ref[...], trig, preferred_element_type=jnp.float32)     # (2*dim, TN)
    # Rows of st belonging to pass-through (x1) positions are exactly zero, so
    # exp(0) * x + 0 reproduces the identity half with no masking or slicing.
    oT_ref[...] = (jnp.exp(st[:dim, :]) * x + st[dim:, :]).astype(oT_ref.dtype)


def _pick_lane_block(n: int, target: int) -> int:
    """Batch (lane) block: multiple of 128, ragged last block, >=2 grid steps when N >= 256."""
    if n < 256:
        return n                                    # single full block (block dim == array dim)
    tn = max(128, (min(target, n) // 128) * 128)
    if pl.cdiv(n, tn) < 2:                          # keep both v7x TensorCores busy
        tn = max(128, ((((n + 1) // 2) + 127) // 128) * 128)
    return tn


def ff_coupling_forward(x, a_s, b_s, a_t, b_t, R, *, reverse=False, split_dims=None,
                        row_block=4096):
    """FFCoupling.forward: y = cat(x1, exp(s(x1)) * x2 + t(x1)) (ordering per reverse/split_dims)."""
    x = jnp.asarray(x, jnp.float32)
    N, dim = x.shape
    K, d1, d2 = a_t.shape
    assert d1 + d2 == dim, "parameter shapes must match the input dimension"

    # ---- split / cat handling (static; mirrors FFCoupling._split / _cat) ----
    if split_dims is None:
        c0 = (dim + 1) // 2                         # torch.chunk: first chunk gets the ceil
        if reverse:
            assert d2 == c0 and d1 == dim - c0
        else:
            assert d1 == c0 and d2 == dim - c0
    else:
        split_dims = list(split_dims)
        out_inds = [i for i in range(dim) if i not in split_dims]
        assert len(split_dims) == d1
        # Gather once so the x1 / x2 halves occupy contiguous column blocks; the output
        # column order then matches torch's cat([x1, y2]) (or cat([y2, x1]) if reverse).
        perm = (out_inds + split_dims) if reverse else (split_dims + out_inds)
        x = x[:, perm]
    x1_off = d2 if reverse else 0                   # position of the identity half
    x2_off = 0 if reverse else d1                   # position of the transformed half

    # ---- hoisted parameter prep (done once, outside the grid) ----
    kd1 = K * d1
    freqs = jnp.arange(K, dtype=jnp.float32) * (2.0 * math.pi / float(R))              # [K]
    f_base = (freqs[:, None, None] * jnp.eye(d1, dtype=jnp.float32)).reshape(kd1, d1)  # (K*d1, d1)
    f_half = jnp.zeros((kd1, dim), jnp.float32).at[:, x1_off:x1_off + d1].set(f_base)
    f_full = jnp.concatenate([f_half, f_half], axis=0)                                  # (2*K*d1, dim)

    phi_col = jnp.concatenate(
        [jnp.asarray(b_s, jnp.float32).reshape(kd1),
         jnp.asarray(b_t, jnp.float32).reshape(kd1)]).reshape(2 * kd1, 1)               # (2*K*d1, 1)

    a_s_T = jnp.asarray(a_s, jnp.float32).reshape(kd1, d2).T                            # (d2, K*d1)
    a_t_T = jnp.asarray(a_t, jnp.float32).reshape(kd1, d2).T
    w_s = jnp.zeros((dim, kd1), jnp.float32).at[x2_off:x2_off + d2, :].set(a_s_T)
    w_t = jnp.zeros((dim, kd1), jnp.float32).at[x2_off:x2_off + d2, :].set(a_t_T)
    zeros_dk = jnp.zeros((dim, kd1), jnp.float32)
    w_full = jnp.concatenate(
        [jnp.concatenate([w_s, zeros_dk], axis=1),      # rows 0:dim      -> log_s (0 on x1 rows)
         jnp.concatenate([zeros_dk, w_t], axis=1)],     # rows dim:2*dim  -> t     (0 on x1 rows)
        axis=0)                                          # (2*dim, 2*K*d1)

    # ---- lane-dense layout: batch on lanes, feature dims on sublanes ----
    xT = x.T                                             # (dim, N)
    tn = _pick_lane_block(N, row_block)
    grid = (pl.cdiv(N, tn),)

    row_map = lambda i: (0, i)
    rep_map = lambda i: (0, 0)                           # tiny parameter blocks stay resident

    yT = pl.pallas_call(
        _ff_coupling_kernel,
        out_shape=jax.ShapeDtypeStruct((dim, N), x.dtype),
        grid_spec=pltpu.PrefetchScalarGridSpec(
            num_scalar_prefetch=0,
            grid=grid,
            in_specs=[
                pl.BlockSpec((dim, tn), row_map),            # full x block (split fused in-kernel)
                pl.BlockSpec((2 * kd1, dim), rep_map),       # stacked frequency matrix
                pl.BlockSpec((2 * kd1, 1), rep_map),         # stacked phases [b_s; b_t]
                pl.BlockSpec((2 * dim, 2 * kd1), rep_map),   # zero-padded coefficients
            ],
            out_specs=pl.BlockSpec((dim, tn), row_map),
        ),
        compiler_params=pltpu.CompilerParams(
            dimension_semantics=("parallel",),
        ),
    )(xT, f_full, phi_col, w_full)

    return yT.T                                           # (N, dim)


if __name__ == "__main__":
    key = jax.random.PRNGKey(0)
    k1, k2, k3, k4, k5, k6, k7 = jax.random.split(key, 7)

    # Small shapes consistent with the module: batch N=256, dim=8, K=32, R=10.
    N, dim, K, R = 256, 8, 32, 10.0
    d1 = (dim + 1) // 2
    d2 = dim - d1

    # Parameter init mirroring the PyTorch module's __init__.
    a_t = 0.001 * jax.random.normal(k1, (K, d1, d2), dtype=jnp.float32)
    b_t = jax.random.uniform(k2, (K, d1), dtype=jnp.float32) * 2.0 * math.pi * 0.01
    a_s = 0.001 * jax.random.normal(k3, (K, d1, d2), dtype=jnp.float32)
    b_s = jax.random.uniform(k4, (K, d1), dtype=jnp.float32) * 2.0 * math.pi * 0.01
    x = jax.random.normal(k5, (N, dim), dtype=jnp.float32)

    # Pure-JAX reference of FFCoupling.forward.
    def ff_ref(xin, gamma, phi):
        freqs = jnp.arange(K, dtype=jnp.float32) * 2.0 * math.pi / R
        c = jnp.cos(freqs[None, :, None] * xin[:, None, :] + phi[None])   # [N, K, d1]
        return jnp.einsum("nki,kij->nj", c, gamma)

    def forward_ref(xin, rev=False):
        if rev:
            x2r, x1r = xin[:, :d2], xin[:, d2:]
            y2r = jnp.exp(ff_ref(x1r, a_s, b_s)) * x2r + ff_ref(x1r, a_t, b_t)
            return jnp.concatenate([y2r, x1r], axis=1)
        x1r, x2r = xin[:, :d1], xin[:, d1:]
        y2r = jnp.exp(ff_ref(x1r, a_s, b_s)) * x2r + ff_ref(x1r, a_t, b_t)
        return jnp.concatenate([x1r, y2r], axis=1)

    # 1) default path, N = 256 -> two lane blocks of 128 (exercises the grid).
    y = jax.block_until_ready(ff_coupling_forward(x, a_s, b_s, a_t, b_t, R))
    y_ref = forward_ref(x)
    assert y.shape == (N, dim)
    assert jnp.allclose(y, y_ref, atol=1e-5, rtol=1e-5), float(jnp.max(jnp.abs(y - y_ref)))

    # 2) ragged batch (384 rows -> blocks of 256 with a partial last block).
    x_r = jax.random.normal(k6, (384, dim), dtype=jnp.float32)
    y_r = jax.block_until_ready(ff_coupling_forward(x_r, a_s, b_s, a_t, b_t, R))
    assert jnp.allclose(y_r, forward_ref(x_r), atol=1e-5, rtol=1e-5)

    # 3) reverse ordering, small batch (single full lane block).
    x_v = jax.random.normal(k7, (200, dim), dtype=jnp.float32)
    y_v = jax.block_until_ready(ff_coupling_forward(x_v, a_s, b_s, a_t, b_t, R, reverse=True))
    assert jnp.allclose(y_v, forward_ref(x_v, rev=True), atol=1e-5, rtol=1e-5)

    print("KERNEL_OK")
</pallas_src>

<mosaic_0001>
module attributes {stable_mosaic.version = 11 : i64} {
  func.func @_ff_coupling_kernel(%arg0: i32, %arg1: memref<8x128xf32, #tpu.memory_space<vmem>>, %arg2: memref<256x8xf32, #tpu.memory_space<vmem>>, %arg3: memref<256x1xf32, #tpu.memory_space<vmem>>, %arg4: memref<16x256xf32, #tpu.memory_space<vmem>>, %arg5: memref<8x128xf32, #tpu.memory_space<vmem>>) attributes {dimension_semantics = [#tpu.dimension_semantics<parallel>], iteration_bounds = array<i64: 2>, scalar_prefetch = 0 : i64, scratch_operands = 0 : i64, tpu.core_type = #tpu.core_type<tc>, window_params = [{transform_indices = @transform_0, window_bounds = array<i64: 8, 128>}, {pipeline_mode = #tpu.pipeline_mode<synchronous>, transform_indices = @transform_1, window_bounds = array<i64: 256, 8>}, {pipeline_mode = #tpu.pipeline_mode<synchronous>, transform_indices = @transform_2, window_bounds = array<i64: 256, 1>}, {pipeline_mode = #tpu.pipeline_mode<synchronous>, transform_indices = @transform_3, window_bounds = array<i64: 16, 256>}, {transform_indices = @transform_4, window_bounds = array<i64: 8, 128>}]} {
    %c0 = arith.constant 0 : index
    %c0_0 = arith.constant 0 : index
    %0 = vector.load %arg1[%c0, %c0_0] : memref<8x128xf32, #tpu.memory_space<vmem>>, vector<8x128xf32>
    %c0_1 = arith.constant 0 : index
    %c0_2 = arith.constant 0 : index
    %1 = vector.load %arg2[%c0_1, %c0_2] : memref<256x8xf32, #tpu.memory_space<vmem>>, vector<256x8xf32>
    %cst = arith.constant dense<0.000000e+00> : vector<256x128xf32>
    %2 = tpu.matmul %1, %0, %cst {dimension_numbers = #tpu.dot_dimension_numbers<[1], [0], [0], [1], [0, 0, 1, 1], [], []>} : vector<256x8xf32>, vector<8x128xf32>, vector<256x128xf32> -> vector<256x128xf32>
    %c0_3 = arith.constant 0 : index
    %c0_4 = arith.constant 0 : index
    %3 = vector.load %arg3[%c0_3, %c0_4] : memref<256x1xf32, #tpu.memory_space<vmem>>, vector<256x1xf32>
    %4 = vector.broadcast %3 : vector<256x1xf32> to vector<256x128xf32>
    %5 = arith.addf %2, %4 : vector<256x128xf32>
    %6 = math.cos %5 : vector<256x128xf32>
    %c0_5 = arith.constant 0 : index
    %c0_6 = arith.constant 0 : index
    %7 = vector.load %arg4[%c0_5, %c0_6] : memref<16x256xf32, #tpu.memory_space<vmem>>, vector<16x256xf32>
    %cst_7 = arith.constant dense<0.000000e+00> : vector<16x128xf32>
    %8 = tpu.matmul %7, %6, %cst_7 {dimension_numbers = #tpu.dot_dimension_numbers<[1], [0], [0], [1], [0, 0, 1, 1], [], []>} : vector<16x256xf32>, vector<256x128xf32>, vector<16x128xf32> -> vector<16x128xf32>
    %9 = vector.extract_strided_slice %8 {offsets = [0, 0], sizes = [8, 128], strides = [1, 1]} : vector<16x128xf32> to vector<8x128xf32>
    %10 = math.exp %9 : vector<8x128xf32>
    %11 = arith.mulf %10, %0 : vector<8x128xf32>
    %12 = vector.extract_strided_slice %8 {offsets = [8, 0], sizes = [8, 128], strides = [1, 1]} : vector<16x128xf32> to vector<8x128xf32>
    %13 = arith.addf %11, %12 : vector<8x128xf32>
    %c0_8 = arith.constant 0 : index
    %c0_9 = arith.constant 0 : index
    %14 = vector.load %arg5[%c0_8, %c0_9] : memref<8x128xf32, #tpu.memory_space<vmem>>, vector<8x128xf32>
    tpu.vector_store %arg5[%c0_8, %c0_9], %13 {strides = array<i32>} : memref<8x128xf32, #tpu.memory_space<vmem>>, vector<8x128xf32>,
    return
  }
  func.func @transform_0(%arg0: i32) -> (i32, i32) {
    %c0_i32 = arith.constant 0 : i32
    %c0_i32_0 = arith.constant 0 : i32
    return %c0_i32, %arg0 : i32, i32
  }
  func.func @transform_1(%arg0: i32) -> (i32, i32) {
    %c0_i32 = arith.constant 0 : i32
    %c0_i32_0 = arith.constant 0 : i32
    %c0_i32_1 = arith.constant 0 : i32
    return %c0_i32, %c0_i32_0 : i32, i32
  }
  func.func @transform_2(%arg0: i32) -> (i32, i32) {
    %c0_i32 = arith.constant 0 : i32
    %c0_i32_0 = arith.constant 0 : i32
    %c0_i32_1 = arith.constant 0 : i32
    return %c0_i32, %c0_i32_0 : i32, i32
  }
  func.func @transform_3(%arg0: i32) -> (i32, i32) {
    %c0_i32 = arith.constant 0 : i32
    %c0_i32_0 = arith.constant 0 : i32
    %c0_i32_1 = arith.constant 0 : i32
    return %c0_i32, %c0_i32_0 : i32, i32
  }
  func.func @transform_4(%arg0: i32) -> (i32, i32) {
    %c0_i32 = arith.constant 0 : i32
    %c0_i32_0 = arith.constant 0 : i32
    return %c0_i32, %arg0 : i32, i32
  }
}

</mosaic_0001>

<bundles_post_ra>
// kernel: tpu_custom_call.1
= control target key start
LH: loop header
LB: loop body
LE: loop exit
PB: predicated region body
PF: predicated region fallthrough
CT: control target
= control target key end

     0   :  { %9 = vsyncpa [#allocation3], 0  ;;  %s8382_s0 = inlined_call_operand.vmem [shape: f32[8,256], index: 0, kind: input, shape index: {}]   ;;  %s8383_s1 = inlined_call_operand.vmem [shape: f32[256,8], index: 1, kind: input, shape index: {}]   ;;  %s8384_s2 = inlined_call_operand.vmem [shape: f32[256,1], index: 2, kind: input, shape index: {}]   ;;  %s8385_s3 = inlined_call_operand.vmem [shape: f32[16,256], index: 3, kind: input, shape index: {}]   ;;  %s8386_s4 = inlined_call_operand.hbm [shape: f32[8,256], index: 4, kind: output, shape index: {}]  }
   0x1   :  { %11 = vsyncpa [#allocation3 + $0x1], 0  ;;  %s4920_s15 = smov 0   ;;  %s4922_s16 = smov 0  }
   0x2   :  { %s4924_s17 = smov 0   ;;  %s4926_s18 = smov 0  }
   0x3 LB: > { %s4941_s19 = sadd.s32 4294967295, %s4885_s18   ;;  %s4193_s20 = sadd.s32 4294967294, %s4885_s18   ;;  %s4885_s18 = sphi %s4926_s18, %s9124_s18   ;;  %s4881_s17 = sphi %s4924_s17, %s9123_s17   ;;  %s4877_s16 = sphi %s4922_s16, %s9122_s16   ;;  %s4873_s15 = sphi %s4920_s15, %s9121_s15  }
   0x4   : > { %s4945_s21 = sadd.s32 1, %s4885_s18   ;;  %s113_s22 = sadd.s32 1, %s4881_s17 }
   0x5   : > { %s110_s23 = ssub.s32 %s4885_s18, %s4945_s21  ;;  %p123_p0 = scmp.ne.s32.totalorder %s4881_s17, %s4877_s16 }
   0x6   : > { %p111_p1 = scmp.eq.s32.totalorder %s110_s23, 0  ;;  %p124_p2 = scmp.eq.s32.totalorder %s4941_s19, 1 }
   0x7   : > { %p129_p3 = scmp.ne.s32.totalorder %s4877_s16, %s4873_s15  ;;  %p130_p4 = scmp.eq.s32.totalorder %s4193_s20, 1 }
   0x8   : > { %s4956_s24 = scalar_select %p111_p1, %s4881_s17, %s113_s22  }
   0x9   : > { %p4958_p5 = por %p124_p2, %p123_p0  ;;  %p4962_p6 = por %p130_p4, %p129_p3 }
   0xa   : > { %p4196_p7 = scmp.ge.s32.totalorder %s4885_s18, 1  ;;  %p164_p8 = scmp.lt.s32.totalorder %s4885_s18, 3 }
   0xc   : > { %p165_p9 = pnand %p4196_p7, %p164_p8 }
   0xe   : > { %168 = sbr.rel (%p165_p9) target bundleno = 1328 (0x530), region = 36 }
  0x15   : > { %p189_p10 = scmp.lt.s32.totalorder %s4941_s19, 1  ;;  %v194_v0 = vld [vmem:[%s8383_s1] sm:$0xff]  ;;  %vm418_vm0 = vcmask 64512   ;;  %v4887_v1 = vmov 0   ;;  %v195_v5 = vld [vmem:[%s8383_s1 + $0x8] sm:$0xff]  ;;  %v196_v7 = vld [vmem:[%s8383_s1 + $0x10] sm:$0xff] }
  0x16   : > { %4436 = vmatprep.mubr.msk.f32.mxu0 %vm418_vm0, %v194_v0  ;;  %4691 = vset.pattern.permute.xlu1 %v4887_v1  ;;  %v242_v2 = vld [vmem:[%s8384_s2 + $0x80] sm:$0xff]  ;;  %v243_v6 = vld [vmem:[%s8384_s2 + $0x88] sm:$0xff]  ;;  %v197_v9 = vld [vmem:[%s8383_s1 + $0x18] sm:$0xff]  ;;  %s186_s14 = sand.u32 1, %s4877_s16   ;;  %s4360_s22 = sshll.u32 %s4941_s19, 7 }
  0x17   : > { %s190_s29 = scalar_select %p189_p10, %s4941_s19, 1  ;;  %4690 = vset.pattern.permute.xlu0 %v4887_v1  ;;  %v226_v3 = vld [vmem:[%s8384_s2] sm:$0xff]  ;;  %v227_v8 = vld [vmem:[%s8384_s2 + $0x8] sm:$0xff]  ;;  %v244_v10 = vld [vmem:[%s8384_s2 + $0x90] sm:$0xff] }
  0x18   : > { %340 = vperm.xlu0 %4690, %v242_v2   ;;  %260 = vperm.xlu1 %4691, %v226_v3   ;;  %v198_v11 = vld [vmem:[%s8383_s1 + $0x20] sm:$0xff]  ;;  %v245_v12 = vld [vmem:[%s8384_s2 + $0x98] sm:$0xff]  ;;  %v199_v13 = vld [vmem:[%s8383_s1 + $0x28] sm:$0xff]  ;;  %s4197_s20 = sshll.u32 %s186_s14, 3  ;;  %s4121_s5 = scalar_lea.sflag [#allocation3], %s186_s14 }
  0x19   : > { %s4198_s30 = sshll.u32 %s190_s29, 3  ;;  %v228_v14 = vld [vmem:[%s8384_s2 + $0x10] sm:$0xff]  ;;  %v229_v16 = vld [vmem:[%s8384_s2 + $0x18] sm:$0xff]  ;;  %v246_v18 = vld [vmem:[%s8384_s2 + $0xa0] sm:$0xff]  ;;  %s188_s23 = scalar_lea.vmem [#allocation2], %s4197_s20 }
  0x1a   : > { %s4980_s9 = scalar_lea.vmem %s8382_s0, %s4198_s30  ;;  %v200_v15 = vld [vmem:[%s8383_s1 + $0x30] sm:$0xff]  ;;  %v201_v17 = vld [vmem:[%s8383_s1 + $0x38] sm:$0xff]  ;;  %v202_v19 = vld [vmem:[%s8383_s1 + $0x40] sm:$0xff]  ;;  %s4134_s27 = sshll.u32 %s188_s23, 4  ;;  %s8342_s27 = int_to_ptr.vmem [resolvable:$true] %s4134_s27 }
  0x1b   : > { %v193_v4 = vld [vmem:[%s4980_s9] sm:$0xff]  ;;  %v247_v20 = vld [vmem:[%s8384_s2 + $0xa8] sm:$0xff]  ;;  %v204_v23 = vld [vmem:[%s8383_s1 + $0x50] sm:$0xff]  ;;  %s8340_s30 = scalar_lea.hbm %s8386_s4, %s4360_s22  ;;  %s4823_s6 = scalar_lea.vmem %s8342_s27, 128 }
  0x1c   : > { %4434 = vmatprep.subr.mxu0 %v193_v4  ;;  %345 = vperm.xlu0 %4690, %v243_v6   ;;  %v203_v21 = vld [vmem:[%s8383_s1 + $0x48] sm:$0xff]  ;;  %v230_v22 = vld [vmem:[%s8384_s2 + $0x20] sm:$0xff]  ;;  %v205_v25 = vld [vmem:[%s8383_s1 + $0x58] sm:$0xff]  ;;  %p4824_p11 = scmp.ne.s32.totalorder %s8342_s27, %s4823_s6  ;;  %s4894_s19 = smov [#allocation2]  }
  0x1d   : > { %4435 = vmatpush3.msra.mxu0 %v193_v4  ;;  %265 = vperm.xlu1 %4691, %v227_v8   ;;  %v231_v24 = vld [vmem:[%s8384_s2 + $0x28] sm:$0xff]  ;;  %v248_v26 = vld [vmem:[%s8384_s2 + $0xb0] sm:$0xff]  ;;  %v206_v27 = vld [vmem:[%s8383_s1 + $0x60] sm:$0xff] }
  0x1e   : > { %4437 = vmatmul.mubr.msk.f32.vlgmr.msra.gmra.mrb[0].mxu0 %vm418_vm0, %v195_v5  ;;  %v249_v28 = vld [vmem:[%s8384_s2 + $0xb8] sm:$0xff]  ;;  %v207_v29 = vld [vmem:[%s8383_s1 + $0x68] sm:$0xff]  ;;  %v232_v30 = vld [vmem:[%s8384_s2 + $0x30] sm:$0xff]  ;;  %p4825_p12 = pnand %p4824_p11, %p4958_p5 }
  0x1f   : > { %4439 = vmatprep.mubr.msk.f32.mxu0 %vm418_vm0, %v196_v7  ;;  %v208_v31 = vld [vmem:[%s8383_s1 + $0x70] sm:$0xff]  ;;  %v233_v32 = vld [vmem:[%s8384_s2 + $0x38] sm:$0xff]  ;;  %v250_v34 = vld [vmem:[%s8384_s2 + $0xc0] sm:$0xff] }
  0x20   : > { %350 = vperm.xlu0 %4690, %v244_v10   ;;  %v209_v33 = vld [vmem:[%s8383_s1 + $0x78] sm:$0xff]  ;;  %v210_v35 = vld [vmem:[%s8383_s1 + $0x80] sm:$0xff]  ;;  %v251_v36 = vld [vmem:[%s8384_s2 + $0xc8] sm:$0xff]  ;;  %p4826_p13 = pneg %p4825_p12 }
  0x21   : > { %355 = vperm.xlu1 %4691, %v245_v12   ;;  %v211_v37 = vld [vmem:[%s8383_s1 + $0x88] sm:$0xff]  ;;  %v234_v38 = vld [vmem:[%s8384_s2 + $0x40] sm:$0xff]  ;;  %v212_v39 = vld [vmem:[%s8383_s1 + $0x90] sm:$0xff] }
  0x22   : > { %4440 = vmatmul.mubr.msk.f32.gmra.mrb[2].mxu0 %vm418_vm0, %v197_v9  ;;  %v235_v40 = vld [vmem:[%s8384_s2 + $0x48] sm:$0xff]  ;;  %v213_v41 = vld [vmem:[%s8383_s1 + $0x98] sm:$0xff]  ;;  %v252_v42 = vld [vmem:[%s8384_s2 + $0xd0] sm:$0xff] }
  0x23   : > { %4442 = vmatprep.mubr.msk.f32.mxu0 %vm418_vm0, %v198_v11  ;;  %v214_v43 = vld [vmem:[%s8383_s1 + $0xa0] sm:$0xff]  ;;  %v253_v44 = vld [vmem:[%s8384_s2 + $0xd8] sm:$0xff]  ;;  %v215_v45 = vld [vmem:[%s8383_s1 + $0xa8] sm:$0xff] }
  0x24   : > { %270 = vperm.xlu0 %4690, %v228_v14   ;;  %v236_v46 = vld [vmem:[%s8384_s2 + $0x50] sm:$0xff]  ;;  %v237_v48 = vld [vmem:[%s8384_s2 + $0x58] sm:$0xff]  ;;  %v254_v50 = vld [vmem:[%s8384_s2 + $0xe0] sm:$0xff] }
  0x25   : > { %275 = vperm.xlu1 %4691, %v229_v16   ;;  %v216_v47 = vld [vmem:[%s8383_s1 + $0xb0] sm:$0xff]  ;;  %v217_v49 = vld [vmem:[%s8383_s1 + $0xb8] sm:$0xff]  ;;  %v218_v51 = vld [vmem:[%s8383_s1 + $0xc0] sm:$0xff] }
  0x26   : > { %4443 = vmatmul.mubr.msk.f32.gmra.mrb[4].mxu0 %vm418_vm0, %v199_v13  ;;  %v255_v52 = vld [vmem:[%s8384_s2 + $0xe8] sm:$0xff]  ;;  %v238_v54 = vld [vmem:[%s8384_s2 + $0x60] sm:$0xff]  ;;  %v220_v55 = vld [vmem:[%s8383_s1 + $0xd0] sm:$0xff] }
  0x27   : > { %4445 = vmatprep.mubr.msk.f32.mxu0 %vm418_vm0, %v200_v15  ;;  %v219_v53 = vld [vmem:[%s8383_s1 + $0xc8] sm:$0xff]  ;;  %v221_v57 = vld [vmem:[%s8383_s1 + $0xd8] sm:$0xff]  ;;  %v256_v58 = vld [vmem:[%s8384_s2 + $0xf0] sm:$0xff] }
  0x28   : > { %360 = vperm.xlu0 %4690, %v246_v18   ;;  %v239_v56 = vld [vmem:[%s8384_s2 + $0x68] sm:$0xff]  ;;  %v222_v59 = vld [vmem:[%s8383_s1 + $0xe0] sm:$0xff]  ;;  %v257_v60 = vld [vmem:[%s8384_s2 + $0xf8] sm:$0xff] }
  0x29   : > { %365 = vperm.xlu1 %4691, %v247_v20   ;;  %v223_v61 = vld [vmem:[%s8383_s1 + $0xe8] sm:$0xff]  ;;  %v240_v62 = vld [vmem:[%s8384_s2 + $0x70] sm:$0xff]  ;;  %v241_v0 = vld [vmem:[%s8384_s2 + $0x78] sm:$0xff] }
  0x2a   : > { %4446 = vmatmul.mubr.msk.f32.gmra.mrb[6].mxu0 %vm418_vm0, %v201_v17  ;;  %v224_v63 = vld [vmem:[%s8383_s1 + $0xf0] sm:$0xff]  ;;  %v225_v1 = vld [vmem:[%s8383_s1 + $0xf8] sm:$0xff] }
  0x2b   : > { %4448 = vmatprep.mubr.msk.f32.mxu0 %vm418_vm0, %v202_v19 }
  0x2c   : > { %280 = vperm.xlu0 %4690, %v230_v22  }
  0x2d   : > { %285 = vperm.xlu1 %4691, %v231_v24  }
  0x2e   : > { %4449 = vmatmul.mubr.msk.f32.gmra.mrb[8].mxu0 %vm418_vm0, %v203_v21 }
  0x2f   : > { %4451 = vmatprep.mubr.msk.f32.mxu0 %vm418_vm0, %v204_v23 }
  0x30   : > { %370 = vperm.xlu0 %4690, %v248_v26  }
  0x31   : > { %375 = vperm.xlu1 %4691, %v249_v28  }
  0x32   : > { %4452 = vmatmul.mubr.msk.f32.gmra.mrb[10].mxu0 %vm418_vm0, %v205_v25 }
  0x33   : > { %4454 = vmatprep.mubr.msk.f32.mxu0 %vm418_vm0, %v206_v27 }
  0x34   : > { %290 = vperm.xlu0 %4690, %v232_v30  }
  0x35   : > { %295 = vperm.xlu1 %4691, %v233_v32  }
  0x36   : > { %4455 = vmatmul.mubr.msk.f32.gmra.mrb[12].mxu0 %vm418_vm0, %v207_v29 }
  0x37   : > { %4457 = vmatprep.mubr.msk.f32.mxu0 %vm418_vm0, %v208_v31 }
  0x38   : > { %380 = vperm.xlu0 %4690, %v250_v34  }
  0x39   : > { %385 = vperm.xlu1 %4691, %v251_v36  }
  0x3a   : > { %4458 = vmatmul.mubr.msk.f32.gmra.mrb[14].mxu0 %vm418_vm0, %v209_v33 }
  0x3b   : > { %4460 = vmatprep.mubr.msk.f32.mxu0 %vm418_vm0, %v210_v35 }
  0x3c   : > { %300 = vperm.xlu0 %4690, %v234_v38  }
  0x3d   : > { %305 = vperm.xlu1 %4691, %v235_v40  }
  0x3e   : > { %4461 = vmatmul.mubr.msk.f32.gmra.mrb[16].mxu0 %vm418_vm0, %v211_v37 }
  0x3f   : > { %4463 = vmatprep.mubr.msk.f32.mxu0 %vm418_vm0, %v212_v39 }
  0x40   : > { %390 = vperm.xlu0 %4690, %v252_v42  }
  0x41   : > { %395 = vperm.xlu1 %4691, %v253_v44  }
  0x42   : > { %4464 = vmatmul.mubr.msk.f32.gmra.mrb[18].mxu0 %vm418_vm0, %v213_v41 }
  0x43   : > { %4466 = vmatprep.mubr.msk.f32.mxu0 %vm418_vm0, %v214_v43 }
  0x44   : > { %310 = vperm.xlu0 %4690, %v236_v46   ;;  %v8392_v46 = vmov 683565275  }
  0x45   : > { %315 = vperm.xlu1 %4691, %v237_v48   ;;  %v8394_v48 = vmov 2475754826  }
  0x46   : > { %4467 = vmatmul.mubr.msk.f32.gmra.mrb[20].mxu0 %vm418_vm0, %v215_v45 }
  0x47   : > { %4469 = vmatprep.mubr.msk.f32.mxu0 %vm418_vm0, %v216_v47 }
  0x48   : > { %400 = vperm.xlu0 %4690, %v254_v50   ;;  %v8396_v50 = vmov 2131351028  }
  0x49   : > { %405 = vperm.xlu1 %4691, %v255_v52   ;;  %v8402_v52 = vmov 2102212464  }
  0x4a   : > { %4470 = vmatmul.mubr.msk.f32.gmra.mrb[22].mxu0 %vm418_vm0, %v217_v49 }
  0x4b   : > { %4472 = vmatprep.mubr.msk.f32.mxu0 %vm418_vm0, %v218_v51 }
  0x4c   : > { %320 = vperm.xlu0 %4690, %v238_v54  }
  0x4d   : > { %325 = vperm.xlu1 %4691, %v239_v56  }
  0x4e   : > { %4473 = vmatmul.mubr.msk.f32.gmra.mrb[24].mxu0 %vm418_vm0, %v219_v53 }
  0x4f   : > { %4475 = vmatprep.mubr.msk.f32.mxu0 %vm418_vm0, %v220_v55 }
  0x50   : > { %410 = vperm.xlu0 %4690, %v256_v58   ;;  %v8408_v58 = vmov 920167782  }
  0x51   : > { %415 = vperm.xlu1 %4691, %v257_v60  }
  0x52   : > { %4476 = vmatmul.mubr.msk.f32.gmra.mrb[26].mxu0 %vm418_vm0, %v221_v57 }
  0x53   : > { %4478 = vmatprep.mubr.msk.f32.mxu0 %vm418_vm0, %v222_v59 }
  0x54   : > { %330 = vperm.xlu0 %4690, %v240_v62  }
  0x55   : > { %335 = vperm.xlu1 %4691, %v241_v0  }
  0x56   : > { %4479 = vmatmul.mubr.msk.f32.gmra.mrb[28].mxu0 %vm418_vm0, %v223_v61  ;;  %v8406_v61 = vmov 1326507024  }
  0x57   : > { %4481 = vmatprep.mubr.msk.f32.mxu0 %vm418_vm0, %v224_v63 }
  0x5a   : > { %4482 = vmatmul.mubr.msk.f32.gmra.mrb[30].mxu0 %vm418_vm0, %v225_v1 }
  0x97   : > { %v261_v2 = vpop.permute.xlu1 %260  ;;  %v5200_v4 = vpop.permute.xlu0 %340 }
  0x98   : > { %8644 = vst [vmem:[#allocation5_spill] sm:$0xff] %v5200_v4 }
  0x9b   : > { %v5204_v7 = vpop.permute.xlu0 %345 }
  0x9c   : > { %v266_v3 = vpop.permute.xlu1 %265 }
  0x9f   : > { %v5217_v21 = vpop.permute.xlu0 %350 }
  0xa0   : > { %v5202_v5 = vpop.permute.xlu1 %355  ;;  %8649 = vst [vmem:[#allocation10_spill] sm:$0xff] %v5217_v21 }
  0xa1   : > { %8645 = vst [vmem:[#allocation6_spill] sm:$0xff] %v5202_v5 }
  0xa3   : > { %v271_v34 = vpop.permute.xlu0 %270 }
  0xa4   : > { %v276_v13 = vpop.permute.xlu1 %275 }
  0xf1   : > { %v4438_v6 = vpop.f32.mrb[0].mxu0 }
  0xf2   : > { %v5206_v8 = vadd.f32 %v4438_v6, %v266_v3  ;;  %v581_v9 = vpop.f32.mrb[1].mxu0 }
  0xf3   : > { %v5208_v10 = vadd.f32 %v581_v9, %v261_v2 }
  0xf4   : > { %8646 = vst [vmem:[#allocation7_spill] sm:$0xff] %v5206_v8  ;;  %v8387_v11 = vand.u32 2147483647, %v5206_v8  ;;  %v846_v12 = vand.u32 2139095040, %v5206_v8 }
  0xf5   : > { %8647 = vst [vmem:[#allocation8_spill] sm:$0xff] %v5208_v10  ;;  %v743_v14 = vand.u32 2139095040, %v5208_v10  ;;  %v4441_v15 = vpop.f32.mrb[2].mxu0  ;;  %v8388_v28 = vand.u32 2147483647, %v5208_v10 }
  0xf6   : > { %v847_v16 = vshrl.u32 %v846_v12, 23  ;;  %v5213_v17 = vadd.f32 %v4441_v15, %v276_v13  ;;  %v591_v18 = vpop.f32.mrb[3].mxu0  ;;  %v850_v19 = vand.u32 8388607, %v8387_v11 }
  0xf7   : > { %v744_v20 = vshrl.u32 %v743_v14, 23  ;;  %v5235_v40 = vand.u32 8388607, %v8388_v28  ;;  %v5237_v41 = vadd.f32 %v591_v18, %v271_v34 }
  0xf8   : > { %8648 = vst [vmem:[#allocation9_spill] sm:$0xff] %v5213_v17  ;;  %v4235_v22 = vadd.s32 4294967169, %v847_v16  ;;  %v1052_v24 = vand.u32 2139095040, %v5213_v17  ;;  %v851_v27 = vor.u32 8388608, %v850_v19 }
  0xf9   : > { %v4231_v23 = vadd.s32 4294967169, %v744_v20  ;;  %v5220_v25 = vpop.f32.mrb[4].mxu0  ;;  %8650 = vst [vmem:[#allocation11_spill] sm:$0xff] %v5237_v41 }
  0xfa   : > { %v853_v26 = vadd.s32 1, %v4235_v22  ;;  %v5223_v30 = vpop.f32.mrb[5].mxu0  ;;  %v1053_v31 = vshrl.u32 %v1052_v24, 23  ;;  %v5231_v39 = vshll.u32 %v851_v27, 8 }
  0xfb   : > { %v750_v29 = vadd.s32 1, %v4231_v23 }
  0xfc   : > { %vm854_vm1 = vcmp.gt.s32.totalorder %v853_v26, 0  ;;  %v4243_v45 = vadd.s32 4294967169, %v1053_v31 }
  0xfd   : > { %v855_v32 = vsel %vm854_vm1, %v853_v26, 0  ;;  %vm751_vm2 = vcmp.gt.s32.totalorder %v750_v29, 0  ;;  %v5225_v33 = vpop.f32.mrb[6].mxu0 }
  0xfe   : > { %v857_v35 = vand.u32 31, %v855_v32  ;;  %v752_v36 = vsel %vm751_vm2, %v750_v29, 0  ;;  %v5227_v37 = vpop.f32.mrb[7].mxu0  ;;  %v5229_v38 = vshrl.u32 %v855_v32, 5 }
  0xff   : > { %v5239_v43 = vshrl.u32 %v752_v36, 5  ;;  %v754_v44 = vand.u32 31, %v752_v36 }
 0x100   : > { %v858_v42 = vsub.s32 32, %v857_v35  ;;  %v860_v47 = vshll.u32 %v8392_v46, %v857_v35  ;;  %v863_v49 = vshll.u32 %v8394_v48, %v857_v35  ;;  %v866_v51 = vshll.u32 %v8396_v50, %v857_v35 }
 0x101   : > { %v869_v53 = vshll.u32 %v8402_v52, %v857_v35  ;;  %v5245_v54 = vpop.f32.mrb[8].mxu0  ;;  %v872_v59 = vshll.u32 %v8408_v58, %v857_v35  ;;  %vm875_vm3 = vcmp.lt.s32.totalorder %v5229_v38, 1  ;;  %vm876_vm4 = vcmp.lt.s32.totalorder %v5229_v38, 2 }
 0x102   : > { %v861_v55 = vshrl.u32 %v8394_v48, %v858_v42  ;;  %v864_v56 = vshrl.u32 %v8396_v50, %v858_v42  ;;  %v867_v57 = vshrl.u32 %v8402_v52, %v858_v42  ;;  %v870_v60 = vshrl.u32 %v8408_v58, %v858_v42 }
 0x103   : > { %v873_v62 = vshrl.u32 %v8406_v61, %v858_v42  ;;  %v755_v2 = vsub.s32 32, %v754_v44  ;;  %v859_v3 = vshrl.u32 %v8392_v46, %v858_v42  ;;  %vm878_vm5 = vcmp.lt.s32.totalorder %v5229_v38, 4 }
 0x104   : > { %v862_v63 = vor.u32 %v861_v55, %v860_v47  ;;  %v865_v0 = vor.u32 %v864_v56, %v863_v49  ;;  %v868_v1 = vor.u32 %v867_v57, %v866_v51  ;;  %v871_v6 = vor.u32 %v870_v60, %v869_v53 }
 0x105   : > { %v874_v9 = vor.u32 %v873_v62, %v872_v59  ;;  %vm877_vm6 = vcmp.lt.s32.totalorder %v5229_v38, 3  ;;  %v757_v18 = vshll.u32 %v8392_v46, %v754_v44  ;;  %v760_v19 = vshll.u32 %v8394_v48, %v754_v44 }
 0x106   : > { %v880_v12 = vsel %vm878_vm5, %v868_v1, 2102212464  ;;  %v883_v13 = vsel %vm875_vm3, %v862_v63, %v865_v0  ;;  %v887_v14 = vsel %vm875_vm3, %v865_v0, %v868_v1  ;;  %v884_v15 = vsel %vm878_vm5, %v871_v6, 920167782 }
 0x107   : > { %v888_v16 = vsel %vm878_vm5, %v874_v9, 1326507024  ;;  %v879_v20 = vsel %vm875_vm3, %v859_v3, %v862_v63  ;;  %v885_v22 = vsel %vm877_vm6, %v868_v1, %v884_v15  ;;  %v758_v24 = vshrl.u32 %v8394_v48, %v755_v2 }
 0x108   : > { %v889_v23 = vsel %vm877_vm6, %v871_v6, %v888_v16  ;;  %v881_v26 = vsel %vm877_vm6, %v865_v0, %v880_v12  ;;  %v886_v27 = vsel %vm876_vm4, %v883_v13, %v885_v22  ;;  %v761_v31 = vshrl.u32 %v8396_v50, %v755_v2  ;;  %v5302_v12 = vpop.f32.mrb[9].mxu0 }
 0x109   : > { %v890_v29 = vsel %vm876_vm4, %v887_v14, %v889_v23  ;;  %v5277_v35 = vmul.u32.u64.low %v5231_v39, %v886_v27  ;;  %v5278_v36 = vmul.u32.u64.high %v5231_v39, %v886_v27, %v5277_v35  ;;  %v759_v42 = vor.u32 %v758_v24, %v757_v18 }
 0x10a   : > { %v5273_v32 = vmul.u32.u64.low %v5231_v39, %v890_v29  ;;  %v5274_v34 = vmul.u32.u64.high %v5231_v39, %v890_v29, %v5273_v32  ;;  %v762_v47 = vor.u32 %v761_v31, %v760_v19  ;;  %v763_v49 = vshll.u32 %v8396_v50, %v754_v44 }
 0x10b   : > { %v764_v51 = vshrl.u32 %v8402_v52, %v755_v2  ;;  %v766_v53 = vshll.u32 %v8402_v52, %v754_v44  ;;  %v767_v55 = vshrl.u32 %v8408_v58, %v755_v2  ;;  %v770_v56 = vshrl.u32 %v8406_v61, %v755_v2 }
 0x10c   : > { %v8391_v57 = vand.u32 2147483647, %v5213_v17  ;;  %v882_v59 = vsel %vm876_vm4, %v879_v20, %v881_v26  ;;  %v769_v62 = vshll.u32 %v8408_v58, %v754_v44  ;;  %v1059_v63 = vadd.s32 1, %v4243_v45 }
 0x10d   : > { %v765_v60 = vor.u32 %v764_v51, %v763_v49  ;;  %vm900_vm7 = vc.u32 %v5274_v34, %v5277_v35  ;;  %v901_v0 = vadd.s32 1, %v5278_v36  ;;  %v768_v1 = vor.u32 %v767_v55, %v766_v53 }
 0x10e   : > { %vm772_vm8 = vcmp.lt.s32.totalorder %v5239_v43, 1  ;;  %v748_v3 = vor.u32 8388608, %v5235_v40  ;;  %v771_v6 = vor.u32 %v770_v56, %v769_v62  ;;  %vm775_vm9 = vcmp.lt.s32.totalorder %v5239_v43, 4 }
 0x10f   : > { %v780_v38 = vsel %vm772_vm8, %v759_v42, %v762_v47  ;;  %v902_v9 = vsel %vm900_vm7, %v901_v0, %v5278_v36  ;;  %vm774_vm10 = vcmp.lt.s32.totalorder %v5239_v43, 3  ;;  %v781_v44 = vsel %vm775_vm9, %v768_v1, 920167782 }
 0x110   : > { %v784_v45 = vsel %vm772_vm8, %v762_v47, %v765_v60  ;;  %v898_v13 = vmul.u32 %v5231_v39, %v882_v59  ;;  %vm773_vm11 = vcmp.lt.s32.totalorder %v5239_v43, 2  ;;  %v782_v40 = vsel %vm774_vm10, %v765_v60, %v781_v44 }
 0x111   : > { %v785_v14 = vsel %vm775_vm9, %v771_v6, 1326507024  ;;  %v783_v15 = vsel %vm773_vm11, %v780_v38, %v782_v40  ;;  %vm1060_vm12 = vcmp.gt.s32.totalorder %v1059_v63, 0  ;;  %v777_v19 = vsel %vm775_vm9, %v765_v60, 2102212464 }
 0x112   : > { %v786_v16 = vsel %vm774_vm10, %v768_v1, %v785_v14  ;;  %v903_v18 = vadd.s32 %v902_v9, %v898_v13  ;;  %v788_v22 = vshll.u32 %v748_v3, 8  ;;  %v756_v39 = vshrl.u32 %v8392_v46, %v755_v2 }
 0x113   : > { %v787_v20 = vsel %vm773_vm11, %v784_v45, %v786_v16  ;;  %v1056_v23 = vand.u32 8388607, %v8391_v57  ;;  %v1061_v24 = vsel %vm1060_vm12, %v1059_v63, 0  ;;  %v949_v26 = vand.u32 2139095040, %v5237_v41 }
 0x114   : > { %v5318_v27 = vmul.u32.u64.low %v788_v22, %v783_v15  ;;  %v5319_v29 = vmul.u32.u64.high %v788_v22, %v783_v15, %v5318_v27  ;;  %v1063_v31 = vand.u32 31, %v1061_v24  ;;  %v776_v32 = vsel %vm772_vm8, %v756_v39, %v759_v42 }
 0x115   : > { %v778_v36 = vsel %vm774_vm10, %v762_v47, %v777_v19  ;;  %v5326_v49 = vmul.u32.u64.low %v788_v22, %v787_v20  ;;  %v5327_v51 = vmul.u32.u64.high %v788_v22, %v787_v20, %v5326_v49  ;;  %v904_v2 = vadd.s32 536870912, %v903_v18 }
 0x116   : > { %v1064_v53 = vsub.s32 32, %v1063_v31  ;;  %v1057_v55 = vor.u32 8388608, %v1056_v23  ;;  %v950_v56 = vshrl.u32 %v949_v26, 23  ;;  %v779_v59 = vsel %vm773_vm11, %v776_v32, %v778_v36 }
 0x117   : > { %v1062_v60 = vshrl.u32 %v1061_v24, 5  ;;  %v1066_v62 = vshll.u32 %v8392_v46, %v1063_v31  ;;  %v1069_v42 = vshll.u32 %v8394_v48, %v1063_v31  ;;  %v1072_v47 = vshll.u32 %v8396_v50, %v1063_v31 }
 0x118   : > { %v1067_v63 = vshrl.u32 %v8394_v48, %v1064_v53  ;;  %v1070_v0 = vshrl.u32 %v8396_v50, %v1064_v53  ;;  %v1073_v1 = vshrl.u32 %v8402_v52, %v1064_v53  ;;  %v5337_v3 = vshrl.u32 %v904_v2, 30 }
 0x119   : > { %v1075_v38 = vshll.u32 %v8402_v52, %v1063_v31  ;;  %v1076_v43 = vshrl.u32 %v8408_v58, %v1064_v53  ;;  %v1078_v45 = vshll.u32 %v8408_v58, %v1063_v31  ;;  %v1079_v13 = vshrl.u32 %v8406_v61, %v1064_v53 }
 0x11a   : > { %8651 = vst [vmem:[#allocation12_spill] sm:$0xff] %v5337_v3  ;;  %v1068_v6 = vor.u32 %v1067_v63, %v1066_v62  ;;  %v1071_v9 = vor.u32 %v1070_v0, %v1069_v42  ;;  %v1074_v44 = vor.u32 %v1073_v1, %v1072_v47  ;;  %v795_v40 = vmul.u32 %v788_v22, %v779_v59 }
 0x11b   : > { %v798_v14 = vadd.s32 1, %v5319_v29  ;;  %v1077_v15 = vor.u32 %v1076_v43, %v1075_v38  ;;  %v1097_v16 = vshll.u32 %v1057_v55, 8  ;;  %vm797_vm13 = vc.u32 %v5327_v51, %v5318_v27 }
 0x11c   : > { %v1080_v19 = vor.u32 %v1079_v13, %v1078_v45  ;;  %vm1081_vm14 = vcmp.lt.s32.totalorder %v1062_v60, 1  ;;  %vm1084_vm15 = vcmp.lt.s32.totalorder %v1062_v60, 4  ;;  %v906_v20 = vshll.u32 %v5337_v3, 30 }
 0x11d   : > { %v1086_v39 = vsel %vm1084_vm15, %v1074_v44, 2102212464  ;;  %v1089_v23 = vsel %vm1081_vm14, %v1068_v6, %v1071_v9  ;;  %v4239_v24 = vadd.s32 4294967169, %v950_v56  ;;  %v1065_v26 = vshrl.u32 %v8392_v46, %v1064_v53 }
 0x11e   : > { %vm1083_vm0 = vcmp.lt.s32.totalorder %v1062_v60, 3  ;;  %v1090_v31 = vsel %vm1084_vm15, %v1077_v15, 920167782  ;;  %v1093_v22 = vsel %vm1081_vm14, %v1071_v9, %v1074_v44  ;;  %v799_v32 = vsel %vm797_vm13, %v798_v14, %v5319_v29 }
 0x11f   : > { %vm1082_vm1 = vcmp.lt.s32.totalorder %v1062_v60, 2  ;;  %v1091_v36 = vsel %vm1083_vm0, %v1074_v44, %v1090_v31  ;;  %v1094_v49 = vsel %vm1084_vm15, %v1080_v19, 1326507024  ;;  %v1085_v2 = vsel %vm1081_vm14, %v1065_v26, %v1068_v6  ;;  %v5358_v60 = vpop.f32.mrb[10].mxu0 }
 0x120   : > { %v1087_v55 = vsel %vm1083_vm0, %v1071_v9, %v1086_v39  ;;  %v1092_v59 = vsel %vm1082_vm1, %v1089_v23, %v1091_v36  ;;  %v1095_v62 = vsel %vm1083_vm0, %v1077_v15, %v1094_v49  ;;  %v5349_v63 = vsub.s32 %v903_v18, %v906_v20  ;;  %v5367_v39 = vpop.permute.xlu0 %360  ;;  %v5369_v23 = vpop.permute.xlu1 %365 }
 0x121   : > { %v1096_v42 = vsel %vm1082_vm1, %v1093_v22, %v1095_v62  ;;  %v5351_v0 = vmul.u32.u64.low %v1097_v16, %v1092_v59  ;;  %v5352_v47 = vmul.u32.u64.high %v1097_v16, %v1092_v59, %v5351_v0  ;;  %v800_v1 = vadd.s32 %v799_v32, %v795_v40  ;;  %8652 = vst [vmem:[#allocation13_spill] sm:$0xff] %v5367_v39  ;;  %8653 = vst [vmem:[#allocation14_spill] sm:$0xff] %v5369_v23 }
 0x122   : > { %v5355_v53 = vmul.u32.u64.low %v1097_v16, %v1096_v42  ;;  %v5356_v56 = vmul.u32.u64.high %v1097_v16, %v1096_v42, %v5355_v53  ;;  %v1088_v38 = vsel %vm1082_vm1, %v1085_v2, %v1087_v55  ;;  %v956_v29 = vadd.s32 1, %v4239_v24 }
 0x123   : > { %v909_v6 = vsub.s32 0, %v5349_v63  ;;  %v1107_v43 = vadd.s32 1, %v5352_v47  ;;  %v1104_v18 = vmul.u32 %v1097_v16, %v1088_v38  ;;  %v801_v44 = vadd.s32 536870912, %v800_v1 }
 0x124   : > { %vm957_vm2 = vcmp.gt.s32.totalorder %v956_v29, 0  ;;  %vm1106_vm3 = vc.u32 %v5356_v56, %v5351_v0  ;;  %v8390_v13 = vand.u32 2147483647, %v5237_v41 }
 0x125   : > { %v958_v9 = vsel %vm957_vm2, %v956_v29, 0  ;;  %v1108_v45 = vsel %vm1106_vm3, %v1107_v43, %v5352_v47  ;;  %v4236_v15 = vmin.u32 %v909_v6, %v5349_v63  ;;  %v5371_v16 = vshrl.u32 %v801_v44, 30  ;;  %v281_v43 = vpop.permute.xlu0 %280 }
 0x126   : > { %v1109_v40 = vadd.s32 %v1108_v45, %v1104_v18  ;;  %v960_v14 = vand.u32 31, %v958_v9  ;;  %v953_v24 = vand.u32 8388607, %v8390_v13  ;;  %v959_v42 = vshrl.u32 %v958_v9, 5  ;;  %v286_v18 = vpop.permute.xlu1 %285 }
 0x127   : > { %8654 = vst [vmem:[#allocation15_spill] sm:$0xff] %v5371_v16  ;;  %v911_v31 = vclz %v4236_v15  ;;  %v803_v59 = vshll.u32 %v5371_v16, 30 }
 0x128   : > { %v1110_v19 = vadd.s32 536870912, %v1109_v40  ;;  %v961_v20 = vsub.s32 32, %v960_v14  ;;  %v963_v49 = vshll.u32 %v8392_v46, %v960_v14  ;;  %v966_v2 = vshll.u32 %v8394_v48, %v960_v14 }
 0x129   : > { %v954_v62 = vor.u32 8388608, %v953_v24  ;;  %v969_v47 = vshll.u32 %v8396_v50, %v960_v14  ;;  %v972_v6 = vshll.u32 %v8402_v52, %v960_v14  ;;  %v975_v15 = vshll.u32 %v8408_v58, %v960_v14 }
 0x12a   : > { %v5375_v26 = vshrl.u32 %v1110_v19, 30  ;;  %v964_v22 = vshrl.u32 %v8394_v48, %v961_v20  ;;  %v967_v32 = vshrl.u32 %v8396_v50, %v961_v20  ;;  %v970_v55 = vshrl.u32 %v8402_v52, %v961_v20 }
 0x12b   : > { %v973_v45 = vshrl.u32 %v8408_v58, %v961_v20  ;;  %v976_v19 = vshrl.u32 %v8406_v61, %v961_v20  ;;  %v4237_v11 = vadd.s32 4294967294, %v911_v31  ;;  %v5393_v24 = vadd.f32 %v5220_v25, %v286_v18 }
 0x12c   : > { %8655 = vst [vmem:[#allocation16_spill] sm:$0xff] %v5375_v26  ;;  %v1112_v36 = vshll.u32 %v5375_v26, 30  ;;  %v965_v38 = vor.u32 %v964_v22, %v963_v49  ;;  %v968_v29 = vor.u32 %v967_v32, %v966_v2  ;;  %v971_v44 = vor.u32 %v970_v55, %v969_v47 }
 0x12d   : > { %8656 = vst [vmem:[#allocation17_spill] sm:$0xff] %v5393_v24  ;;  %v5398_v22 = vsub.s32 %v800_v1, %v803_v59  ;;  %v974_v32 = vor.u32 %v973_v45, %v972_v6  ;;  %vm978_vm4 = vcmp.lt.s32.totalorder %v959_v42, 1  ;;  %vm980_vm5 = vcmp.lt.s32.totalorder %v959_v42, 3 }
 0x12e   : > { %v5385_v53 = vsub.s32 %v1109_v40, %v1112_v36  ;;  %v5396_v40 = vadd.f32 %v5223_v30, %v281_v43  ;;  %v977_v36 = vor.u32 %v976_v19, %v975_v15  ;;  %vm981_vm6 = vcmp.lt.s32.totalorder %v959_v42, 4 }
 0x12f   : > { %v986_v14 = vsel %vm978_vm4, %v965_v38, %v968_v29  ;;  %v983_v31 = vsel %vm981_vm6, %v971_v44, 2102212464  ;;  %v987_v2 = vsel %vm981_vm6, %v974_v32, 920167782  ;;  %v990_v55 = vsel %vm978_vm4, %v968_v29, %v971_v44 }
 0x130   : > { %v1115_v9 = vsub.s32 0, %v5385_v53  ;;  %8657 = vst [vmem:[#allocation18_spill] sm:$0xff] %v5396_v40  ;;  %v991_v25 = vsel %vm981_vm6, %v977_v36, 1326507024  ;;  %v962_v47 = vshrl.u32 %v8392_v46, %v961_v20  ;;  %vm979_vm7 = vcmp.lt.s32.totalorder %v959_v42, 2 }
 0x131   : > { %v988_v30 = vsel %vm980_vm5, %v971_v44, %v987_v2  ;;  %v994_v1 = vshll.u32 %v954_v62, 8  ;;  %v992_v43 = vsel %vm980_vm5, %v974_v32, %v991_v25  ;;  %v1258_v18 = vand.u32 2139095040, %v5393_v24  ;;  %v5418_v62 = vpop.f32.mrb[11].mxu0  ;;  %v5420_v32 = vpop.permute.xlu1 %375 }
 0x132   : > { %v4244_v49 = vmin.u32 %v1115_v9, %v5385_v53  ;;  %v989_v6 = vsel %vm979_vm7, %v986_v14, %v988_v30  ;;  %vm4238_vm8 = vcmp.lt.s32.totalorder %v4237_v11, 0  ;;  %v982_v45 = vsel %vm978_vm4, %v962_v47, %v965_v38  ;;  %8658 = vst [vmem:[#allocation19_spill] sm:$0xff] %v5420_v32 }
 0x133   : > { %v984_v15 = vsel %vm980_vm5, %v968_v29, %v983_v31  ;;  %v993_v19 = vsel %vm979_vm7, %v990_v55, %v992_v43  ;;  %v5414_v36 = vmul.u32.u64.low %v994_v1, %v989_v6  ;;  %v5415_v44 = vmul.u32.u64.high %v994_v1, %v989_v6, %v5414_v36 }
 0x134   : > { %v1117_v59 = vclz %v4244_v49  ;;  %v5411_v9 = vmul.u32.u64.low %v994_v1, %v993_v19  ;;  %v5412_v20 = vmul.u32.u64.high %v994_v1, %v993_v19, %v5411_v9  ;;  %v1259_v49 = vshrl.u32 %v1258_v18, 23 }
 0x135   : > { %v806_v14 = vsub.s32 0, %v5398_v22  ;;  %v985_v38 = vsel %vm979_vm7, %v982_v45, %v984_v15  ;;  %v5424_v29 = vsel %vm4238_vm8, 0, %v4237_v11  ;;  %v8389_v31 = vand.u32 2147483647, %v5393_v24  ;;  %v296_v45 = vpop.permute.xlu1 %295 }
 0x136   : > { %v4245_v2 = vadd.s32 4294967294, %v1117_v59  ;;  %v4251_v55 = vadd.s32 4294967169, %v1259_v49  ;;  %vm1003_vm9 = vc.u32 %v5412_v20, %v5414_v36  ;;  %v1004_v25 = vadd.s32 1, %v5415_v44 }
 0x137   : > { %v1155_v47 = vand.u32 2139095040, %v5396_v40  ;;  %v1001_v30 = vmul.u32 %v994_v1, %v985_v38  ;;  %v915_v43 = vsub.s32 32, %v5424_v29  ;;  %v5433_v59 = vmin.u32 %v806_v14, %v5398_v22 }
 0x138   : > { %v1265_v6 = vadd.s32 1, %v4251_v55  ;;  %vm4246_vm10 = vcmp.lt.s32.totalorder %v4245_v2, 0  ;;  %v1005_v11 = vsel %vm1003_vm9, %v1004_v25, %v5415_v44  ;;  %v1262_v18 = vand.u32 8388607, %v8389_v31 }
 0x139   : > { %v1006_v42 = vadd.s32 %v1005_v11, %v1001_v30  ;;  %v899_v15 = vadd.s32 %v5277_v35, %v5274_v34  ;;  %v1156_v1 = vshrl.u32 %v1155_v47, 23  ;;  %v5442_v49 = vsel %vm4246_vm10, 0, %v4245_v2 }
 0x13a   : > { %vm1266_vm11 = vcmp.gt.s32.totalorder %v1265_v6, 0  ;;  %v5445_v38 = vadd.f32 %v5225_v33, %v296_v45  ;;  %v919_v55 = vsub.s32 4294967266, %v5424_v29  ;;  %v808_v25 = vclz %v5433_v59 }
 0x13b   : > { %v1267_v19 = vsel %vm1266_vm11, %v1265_v6, 0  ;;  %v1007_v14 = vadd.s32 536870912, %v1006_v42  ;;  %v5447_v44 = vshrl.u32 %v899_v15, %v915_v43  ;;  %v1105_v34 = vadd.s32 %v5351_v0, %v5356_v56 }
 0x13c   : > { %8659 = vst [vmem:[#allocation20_spill] sm:$0xff] %v5445_v38  ;;  %v1269_v30 = vand.u32 31, %v1267_v19  ;;  %v1263_v47 = vor.u32 8388608, %v1262_v18  ;;  %v1121_v6 = vsub.s32 32, %v5442_v49  ;;  %v1268_v11 = vshrl.u32 %v1267_v19, 5 }
 0x13d   : > { %v5453_v35 = vshrl.u32 %v1007_v14, 30  ;;  %v4247_v45 = vadd.s32 4294967169, %v1156_v1  ;;  %v1125_v57 = vsub.s32 4294967266, %v5442_v49 }
 0x13e   : > { %v1270_v33 = vsub.s32 32, %v1269_v30  ;;  %v1272_v15 = vshll.u32 %v8392_v46, %v1269_v30  ;;  %v1275_v59 = vshll.u32 %v8394_v48, %v1269_v30  ;;  %v1278_v28 = vshll.u32 %v8396_v50, %v1269_v30 }
 0x13f   : > { %8660 = vst [vmem:[#allocation21_spill] sm:$0xff] %v5453_v35  ;;  %v1009_v43 = vshll.u32 %v5453_v35, 30  ;;  %v1281_v14 = vshll.u32 %v8402_v52, %v1269_v30  ;;  %v1284_v1 = vshll.u32 %v8408_v58, %v1269_v30  ;;  %vm1287_vm12 = vcmp.lt.s32.totalorder %v1268_v11, 1 }
 0x140   : > { %v1273_v0 = vshrl.u32 %v8394_v48, %v1270_v33  ;;  %v1276_v56 = vshrl.u32 %v8396_v50, %v1270_v33  ;;  %v1279_v18 = vshrl.u32 %v8402_v52, %v1270_v33  ;;  %v1282_v19 = vshrl.u32 %v8408_v58, %v1270_v33 }
 0x141   : > { %v5465_v31 = vsub.s32 %v1006_v42, %v1009_v43  ;;  %v1285_v13 = vshrl.u32 %v8406_v61, %v1270_v33  ;;  %v8661_v35 = vmov 683565275   ;;  %vm1290_vm13 = vcmp.lt.s32.totalorder %v1268_v11, 4 }
 0x142   : > { %v1274_v9 = vor.u32 %v1273_v0, %v1272_v15  ;;  %v1277_v2 = vor.u32 %v1276_v56, %v1275_v59  ;;  %v1280_v46 = vor.u32 %v1279_v18, %v1278_v28  ;;  %v1283_v50 = vor.u32 %v1282_v19, %v1281_v14  ;;  %v5475_v18 = vpop.f32.mrb[12].mxu0 }
 0x143   : > { %v1012_v48 = vsub.s32 0, %v5465_v31  ;;  %v1286_v26 = vor.u32 %v1285_v13, %v1284_v1  ;;  %v1271_v52 = vshrl.u32 %v8661_v35, %v1270_v33  ;;  %v1162_v43 = vadd.s32 1, %v4247_v45 }
 0x144   : > { %v1295_v42 = vsel %vm1287_vm12, %v1274_v9, %v1277_v2  ;;  %vm1289_vm14 = vcmp.lt.s32.totalorder %v1268_v11, 3  ;;  %v1292_v30 = vsel %vm1290_vm13, %v1280_v46, 2102212464  ;;  %v1296_v61 = vsel %vm1290_vm13, %v1283_v50, 920167782 }
 0x145   : > { %v4240_v3 = vmin.u32 %v1012_v48, %v5465_v31  ;;  %vm1288_vm15 = vcmp.lt.s32.totalorder %v1268_v11, 2  ;;  %v1297_v58 = vsel %vm1289_vm14, %v1280_v46, %v1296_v61  ;;  %v1299_v15 = vsel %vm1287_vm12, %v1277_v2, %v1280_v46 }
 0x146   : > { %v1303_v59 = vshll.u32 %v1263_v47, 8  ;;  %v1291_v0 = vsel %vm1287_vm12, %v1271_v52, %v1274_v9  ;;  %v1298_v56 = vsel %vm1288_vm15, %v1295_v42, %v1297_v58  ;;  %v1300_v13 = vsel %vm1290_vm13, %v1286_v26, 1326507024 }
 0x147   : > { %v1014_v28 = vclz %v4240_v3  ;;  %v1293_v33 = vsel %vm1289_vm14, %v1277_v2, %v1292_v30  ;;  %v1301_v14 = vsel %vm1289_vm14, %v1283_v50, %v1300_v13  ;;  %v5481_v48 = vadd.s32 127, %v919_v55 }
 0x148   : > { %v5477_v19 = vmul.u32.u64.low %v1303_v59, %v1298_v56  ;;  %v5478_v45 = vmul.u32.u64.high %v1303_v59, %v1298_v56, %v5477_v19  ;;  %v1123_v1 = vshrl.u32 %v1105_v34, %v1121_v6  ;;  %v1302_v61 = vsel %vm1288_vm15, %v1299_v15, %v1301_v14 }
 0x149   : > { %vm1163_vm0 = vcmp.gt.s32.totalorder %v1162_v43, 0  ;;  %v1126_v46 = vadd.s32 127, %v1125_v57  ;;  %v5484_v3 = vmul.u32.u64.low %v1303_v59, %v1302_v61  ;;  %v5485_v52 = vmul.u32.u64.high %v1303_v59, %v1302_v61, %v5484_v3 }
 0x14a   : > { %v1164_v58 = vsel %vm1163_vm0, %v1162_v43, 0  ;;  %v4241_v26 = vadd.s32 4294967294, %v1014_v28  ;;  %v1294_v9 = vsel %vm1288_vm15, %v1291_v0, %v1293_v33  ;;  %v8662_v50 = vand.u32 2147483647, %v5396_v40 }
 0x14b   : > { %v1166_v2 = vand.u32 31, %v1164_v58  ;;  %v4233_v42 = vadd.s32 4294967294, %v808_v25  ;;  %v1122_v55 = vshll.u32 %v5385_v53, %v5442_v49  ;;  %v1313_v34 = vadd.s32 1, %v5478_v45 }
 0x14c   : > { %v1159_v47 = vand.u32 8388607, %v8662_v50  ;;  %v8663_v57 = vshll.u32 %v5349_v63, %v5424_v29  ;;  %v921_v43 = vshll.u32 %v5481_v48, 23  ;;  %v5502_v11 = vadd.s32 %v5318_v27, %v5327_v51 }
 0x14d   : > { %v1167_v30 = vsub.s32 32, %v1166_v2  ;;  %v5504_v15 = vor.u32 %v1123_v1, %v1122_v55  ;;  %v1127_v25 = vshll.u32 %v1126_v46, 23  ;;  %v1310_v28 = vmul.u32 %v1303_v59, %v1294_v9 }
 0x14e   : > { %v5497_v6 = vor.u32 %v5447_v44, %v8663_v57  ;;  %vm1312_vm1 = vc.u32 %v5485_v52, %v5477_v19  ;;  %vm4242_vm2 = vcmp.lt.s32.totalorder %v4241_v26, 0  ;;  %v1160_v53 = vor.u32 8388608, %v1159_v47 }
 0x14f   : > { %v1314_v63 = vsel %vm1312_vm1, %v1313_v34, %v5478_v45  ;;  %v1464_v29 = vand.u32 2139095040, %v5445_v38  ;;  %vm4234_vm3 = vcmp.lt.s32.totalorder %v4233_v42, 0  ;;  %v1165_v44 = vshrl.u32 %v1164_v58, 5 }
 0x150   : > { %v1315_v49 = vadd.s32 %v1314_v63, %v1310_v28  ;;  %v8664_v0 = vmov 2475754826   ;;  %v8665_v51 = vmov 2131351028   ;;  %v1169_v13 = vshll.u32 %v8661_v35, %v1166_v2 }
 0x151   : > { %v1170_v27 = vshrl.u32 %v8664_v0, %v1167_v30  ;;  %v1173_v56 = vshrl.u32 %v8665_v51, %v1167_v30  ;;  %v1172_v59 = vshll.u32 %v8664_v0, %v1166_v2  ;;  %v1175_v33 = vshll.u32 %v8665_v51, %v1166_v2 }
 0x152   : > { %v8666_v14 = vmov 2102212464   ;;  %v5516_v1 = vsel %vm4242_vm2, 0, %v4241_v26  ;;  %v1316_v45 = vadd.s32 536870912, %v1315_v49  ;;  %v8667_v46 = vmov 920167782  }
 0x153   : > { %v1176_v48 = vshrl.u32 %v8666_v14, %v1167_v30  ;;  %v1178_v61 = vshll.u32 %v8666_v14, %v1166_v2  ;;  %v1179_v3 = vshrl.u32 %v8667_v46, %v1167_v30  ;;  %v1128_v58 = vor.u32 4788187, %v1127_v25 }
 0x154   : > { %v1171_v9 = vor.u32 %v1170_v27, %v1169_v13  ;;  %v1174_v50 = vor.u32 %v1173_v56, %v1172_v59  ;;  %v5520_v55 = vshrl.u32 %v1316_v45, 30  ;;  %v1181_v57 = vshll.u32 %v8667_v46, %v1166_v2 }
 0x155   : > { %v1177_v47 = vor.u32 %v1176_v48, %v1175_v33  ;;  %v1180_v34 = vor.u32 %v1179_v3, %v1178_v61  ;;  %v8669_v28 = vmov 1326507024   ;;  %v1022_v16 = vsub.s32 4294967266, %v5516_v1  ;;  %v5533_v61 = vpop.permute.xlu0 %370 }
 0x156   : > { %8668 = vst [vmem:[#allocation22_spill] sm:$0xff] %v5520_v55  ;;  %v1182_v63 = vshrl.u32 %v8669_v28, %v1167_v30  ;;  %vm1187_vm4 = vcmp.lt.s32.totalorder %v1165_v44, 4  ;;  %v1200_v26 = vshll.u32 %v1160_v53, 8  ;;  %v1465_v32 = vshrl.u32 %v1464_v29, 23  ;;  %8670 = vst [vmem:[#allocation23_spill] sm:$0xff] %v5533_v61 }
 0x157   : > { %v1318_v39 = vshll.u32 %v5520_v55, 30  ;;  %vm1184_vm5 = vcmp.lt.s32.totalorder %v1165_v44, 1  ;;  %v1189_v25 = vsel %vm1187_vm4, %v1177_v47, 2102212464  ;;  %v1168_v27 = vshrl.u32 %v8661_v35, %v1167_v30 }
 0x158   : > { %v1183_v23 = vor.u32 %v1182_v63, %v1181_v57  ;;  %vm1186_vm6 = vcmp.lt.s32.totalorder %v1165_v44, 3  ;;  %v1192_v56 = vsel %vm1184_vm5, %v1171_v9, %v1174_v50  ;;  %v1193_v13 = vsel %vm1187_vm4, %v1180_v34, 920167782 }
 0x159   : > { %v5529_v2 = vsub.s32 %v1315_v49, %v1318_v39  ;;  %vm1185_vm7 = vcmp.lt.s32.totalorder %v1165_v44, 2  ;;  %v1194_v59 = vsel %vm1186_vm6, %v1177_v47, %v1193_v13  ;;  %v1196_v33 = vsel %vm1184_vm5, %v1174_v50, %v1177_v47 }
 0x15a   : > { %v1188_v48 = vsel %vm1184_vm5, %v1168_v27, %v1171_v9  ;;  %v1190_v53 = vsel %vm1186_vm6, %v1174_v50, %v1189_v25  ;;  %v1195_v29 = vsel %vm1185_vm7, %v1192_v56, %v1194_v59  ;;  %v1197_v45 = vsel %vm1187_vm4, %v1183_v23, 1326507024 }
 0x15b   : > { %v1321_v3 = vsub.s32 0, %v5529_v2  ;;  %v1198_v30 = vsel %vm1186_vm6, %v1180_v34, %v1197_v45  ;;  %v5536_v57 = vmul.u32.u64.low %v1200_v26, %v1195_v29  ;;  %v5537_v63 = vmul.u32.u64.high %v1200_v26, %v1195_v29, %v5536_v57 }
 0x15c   : > { %v5541_v39 = vsel %vm4234_vm3, 0, %v4233_v42  ;;  %v1129_v49 = vand.u32 2147483647, %v1128_v58  ;;  %v1199_v9 = vsel %vm1185_vm7, %v1196_v33, %v1198_v30  ;;  %v4259_v50 = vadd.s32 4294967169, %v1465_v32 }
 0x15d   : > { %v5544_v47 = vor.u32 4788187, %v921_v43  ;;  %v4252_v23 = vmin.u32 %v1321_v3, %v5529_v2  ;;  %v5547_v25 = vmul.u32.u64.low %v1200_v26, %v1199_v9  ;;  %v5548_v27 = vmul.u32.u64.high %v1200_v26, %v1199_v9, %v5547_v25  ;;  %v5556_v43 = vpop.f32.mrb[13].mxu0 }
 0x15e   : > { %v1131_v34 = vcvt.s32.f32 %v5504_v15  ;;  %v1023_v56 = vadd.s32 127, %v1022_v16  ;;  %v1191_v13 = vsel %vm1185_vm7, %v1188_v48, %v1190_v53  ;;  %v1471_v59 = vadd.s32 1, %v4259_v50  ;;  %v291_v16 = vpop.permute.xlu0 %290 }
 0x15f   : > { %v812_v58 = vsub.s32 32, %v5541_v39  ;;  %v816_v33 = vsub.s32 4294967266, %v5541_v39  ;;  %v1210_v32 = vadd.s32 1, %v5537_v63  ;;  %v1018_v45 = vsub.s32 32, %v5516_v1 }
 0x160   : > { %v5558_v29 = vmul.f32 %v1131_v34, %v1129_v49  ;;  %v8412_v15 = vand.u32 2147483647, %v5445_v38  ;;  %vm1472_vm8 = vcmp.gt.s32.totalorder %v1471_v59, 0  ;;  %v1323_v44 = vclz %v4252_v23 }
 0x161   : > { %v1207_v48 = vmul.u32 %v1200_v26, %v1191_v13  ;;  %vm1209_vm9 = vc.u32 %v5548_v27, %v5536_v57  ;;  %v1473_v53 = vsel %vm1472_vm8, %v1471_v59, 0  ;;  %v1024_v3 = vshll.u32 %v1023_v56, 23 }
 0x162   : > { %v1211_v30 = vsel %vm1209_vm9, %v1210_v32, %v5537_v63  ;;  %v1475_v9 = vand.u32 31, %v1473_v53  ;;  %v5566_v50 = vadd.f32 %v5227_v37, %v291_v16  ;;  %v5570_v25 = vshrl.u32 %v5502_v11, %v812_v58 }
 0x163   : > { %v1002_v23 = vadd.s32 %v5414_v36, %v5412_v20  ;;  %v1212_v26 = vadd.s32 %v1211_v30, %v1207_v48  ;;  %v5574_v34 = vadd.s32 127, %v816_v33  ;;  %v1468_v63 = vand.u32 8388607, %v8412_v15 }
 0x164   : > { %8671 = vst [vmem:[#allocation24_spill] sm:$0xff] %v5566_v50  ;;  %v1476_v56 = vsub.s32 32, %v1475_v9  ;;  %v1019_v37 = vshll.u32 %v5465_v31, %v5516_v1  ;;  %v4253_v32 = vadd.s32 4294967294, %v1323_v44  ;;  %v5581_v11 = vor.u32 4788187, %v1024_v3 }
 0x165   : > { %v1020_v59 = vshrl.u32 %v1002_v23, %v1018_v45  ;;  %v1213_v16 = vadd.s32 536870912, %v1212_v26  ;;  %v1361_v36 = vand.u32 2139095040, %v5566_v50  ;;  %v1478_v48 = vshll.u32 %v8661_v35, %v1475_v9 }
 0x166   : > { %v1479_v58 = vshrl.u32 %v8664_v0, %v1476_v56  ;;  %v1482_v20 = vshrl.u32 %v8665_v51, %v1476_v56  ;;  %v1481_v30 = vshll.u32 %v8664_v0, %v1475_v9  ;;  %v1485_v15 = vshrl.u32 %v8666_v14, %v1476_v56 }
 0x167   : > { %v5586_v33 = vshrl.u32 %v1213_v16, 30  ;;  %v1474_v31 = vshrl.u32 %v1473_v53, 5  ;;  %v1484_v1 = vshll.u32 %v8665_v51, %v1475_v9  ;;  %v1487_v45 = vshll.u32 %v8666_v14, %v1475_v9 }
 0x168   : > { %v1488_v44 = vshrl.u32 %v8667_v46, %v1476_v56  ;;  %vm4254_vm10 = vcmp.lt.s32.totalorder %v4253_v32, 0  ;;  %v1480_v23 = vor.u32 %v1479_v58, %v1478_v48  ;;  %v1483_v13 = vor.u32 %v1482_v20, %v1481_v30 }
 0x169   : > { %8672 = vst [vmem:[#allocation25_spill] sm:$0xff] %v5586_v33  ;;  %v1215_v3 = vshll.u32 %v5586_v33, 30  ;;  %v1486_v16 = vor.u32 %v1485_v15, %v1484_v1  ;;  %v1490_v49 = vshll.u32 %v8667_v46, %v1475_v9  ;;  %v1491_v55 = vshrl.u32 %v8669_v28, %v1476_v56 }
 0x16a   : > { %v1489_v42 = vor.u32 %v1488_v44, %v1487_v45  ;;  %v1021_v61 = vor.u32 %v1020_v59, %v1019_v37  ;;  %v1026_v53 = vand.u32 2147483647, %v5581_v11  ;;  %v1469_v10 = vor.u32 8388608, %v1468_v63 }
 0x16b   : > { %v5598_v21 = vsub.s32 %v1212_v26, %v1215_v3  ;;  %v5600_v8 = vsel %vm4254_vm10, 0, %v4253_v32  ;;  %v1492_v5 = vor.u32 %v1491_v55, %v1490_v49  ;;  %vm1493_vm11 = vcmp.lt.s32.totalorder %v1474_v31, 1  ;;  %v5608_v32 = vpop.permute.xlu1 %385 }
 0x16c   : > { %v1362_v4 = vshrl.u32 %v1361_v36, 23  ;;  %vm8483_vm12 = vcmp.lt.s32.totalorder %v5213_v17, 0  ;;  %vm1495_vm13 = vcmp.lt.s32.totalorder %v1474_v31, 3  ;;  %vm1496_vm14 = vcmp.lt.s32.totalorder %v1474_v31, 4  ;;  %8673 = vst [vmem:[#allocation26_spill] sm:$0xff] %v5608_v32 }
 0x16d   : > { %v1218_v15 = vsub.s32 0, %v5598_v21  ;;  %v1501_v9 = vsel %vm1493_vm11, %v1480_v23, %v1483_v13  ;;  %v1498_v58 = vsel %vm1496_vm14, %v1486_v16, 2102212464  ;;  %v1502_v37 = vsel %vm1496_vm14, %v1489_v42, 920167782 }
 0x16e   : > { %v1505_v59 = vsel %vm1493_vm11, %v1483_v13, %v1486_v16  ;;  %v1506_v26 = vsel %vm1496_vm14, %v1492_v5, 1326507024  ;;  %v1477_v63 = vshrl.u32 %v8661_v35, %v1476_v56  ;;  %vm1494_vm15 = vcmp.lt.s32.totalorder %v1474_v31, 2 }
 0x16f   : > { %v1503_v55 = vsel %vm1495_vm13, %v1486_v16, %v1502_v37  ;;  %v1509_v49 = vshll.u32 %v1469_v10, 8  ;;  %v1331_v11 = vsub.s32 4294967266, %v5600_v8  ;;  %v1507_v36 = vsel %vm1495_vm13, %v1489_v42, %v1506_v26 }
 0x170   : > { %v1504_v20 = vsel %vm1494_vm15, %v1501_v9, %v1503_v55  ;;  %v4255_v48 = vadd.s32 4294967169, %v1362_v4  ;;  %v8674_v30 = vand.u32 2147483647, %v5213_v17  ;;  %v8675_v1 = vmov 0  ;;  %v5630_v4 = vpop.f32.mrb[14].mxu0 }
 0x171   : > { %v4248_v5 = vmin.u32 %v1218_v15, %v5598_v21  ;;  %v1497_v56 = vsel %vm1493_vm11, %v1477_v63, %v1480_v23  ;;  %v1499_v10 = vsel %vm1495_vm13, %v1483_v13, %v1498_v58  ;;  %v1508_v45 = vsel %vm1494_vm15, %v1505_v59, %v1507_v36 }
 0x172   : > { %vm5615_vm0 = vcmp.le.f32.partialorder %v8674_v30, 0.7853982  ;;  %v5623_v44 = vmul.u32.u64.low %v1509_v49, %v1508_v45  ;;  %v5624_v3 = vmul.u32.u64.high %v1509_v49, %v1508_v45, %v5623_v44  ;;  %v813_v9 = vshll.u32 %v5398_v22, %v5541_v39  ;;  %v306_v39 = vpop.permute.xlu1 %305  ;;  %v5700_v45 = vpop.permute.xlu0 %380 }
 0x173   : > { %v8676_v1 = vsel %vm5615_vm0, 4294967295, %v8675_v1  ;;  %v5626_v16 = vmul.u32.u64.low %v1509_v49, %v1504_v20  ;;  %v5627_v42 = vmul.u32.u64.high %v1509_v49, %v1504_v20, %v5626_v16  ;;  %v1327_v15 = vsub.s32 32, %v5600_v8  ;;  %8684 = vst [vmem:[#allocation31_spill] sm:$0xff] %v5700_v45 }
 0x174   : > { %8677 = vst [vmem:[#allocation27_spill] sm:$0xff] %v8676_v1  ;;  %v8419_v23 = vand.u32 2147483647, %v5566_v50  ;;  %v1368_v37 = vadd.s32 1, %v4255_v48  ;;  %v8678_v13 = vand.u32 2147483647, %v5544_v47  ;;  %v8679_v58 = vcvt.s32.f32 %v5497_v6 }
 0x175   : > { %v818_v26 = vshll.u32 %v5574_v34, 23  ;;  %v1028_v63 = vcvt.s32.f32 %v1021_v61  ;;  %v1332_v55 = vadd.s32 127, %v1331_v11  ;;  %v1311_v20 = vadd.s32 %v5477_v19, %v5485_v52 }
 0x176   : > { %v5640_v59 = vmul.f32 %v8679_v58, %v8678_v13  ;;  %v1220_v36 = vclz %v4248_v5  ;;  %v1500_v22 = vsel %vm1494_vm15, %v1497_v56, %v1499_v10  ;;  %vm1369_vm1 = vcmp.gt.s32.totalorder %v1368_v37, 0 }
 0x177   : > { %v5647_v48 = vor.u32 %v5570_v25, %v813_v9  ;;  %v8681_v6 = vxor.u32 2147483648, %v5558_v29  ;;  %v5654_v34 = vmul.f32 %v1028_v63, %v1026_v53  ;;  %vm1518_vm2 = vc.u32 %v5624_v3, %v5626_v16 }
 0x178   : > { %8680 = vst [vmem:[#allocation28_spill] sm:$0xff] %v5640_v59  ;;  %v1329_v19 = vshrl.u32 %v1311_v20, %v1327_v15  ;;  %v1519_v52 = vadd.s32 1, %v5627_v42  ;;  %v1365_v61 = vand.u32 8388607, %v8419_v23  ;;  %v5662_v25 = vadd.f32 %v5245_v54, %v306_v39 }
 0x179   : > { %v1134_v47 = vsel %vm8483_vm12, %v8681_v6, %v5558_v29  ;;  %v1333_v11 = vshll.u32 %v1332_v55, 23  ;;  %v1516_v30 = vmul.u32 %v1509_v49, %v1500_v22  ;;  %v1370_v5 = vsel %vm1369_vm1, %v1368_v37, 0 }
 0x17a   : > { %8682 = vst [vmem:[#allocation29_spill] sm:$0xff] %v5662_v25  ;;  %v5665_v29 = vor.u32 4788187, %v818_v26  ;;  %v1328_v53 = vshll.u32 %v5529_v2, %v5600_v8  ;;  %v4249_v56 = vadd.s32 4294967294, %v1220_v36  ;;  %v1520_v10 = vsel %vm1518_vm2, %v1519_v52, %v5627_v42 }
 0x17b   : > { %v5674_v54 = vsel %vm5615_vm0, %v5213_v17, %v1134_v47  ;;  %v1521_v44 = vadd.s32 %v1520_v10, %v1516_v30  ;;  %v1372_v9 = vand.u32 31, %v1370_v5  ;;  %v1030_v49 = vxor.u32 2147483648, %v5654_v34 }
 0x17c   : > { %v5677_v15 = vor.u32 %v1329_v19, %v1328_v53  ;;  %v1366_v37 = vor.u32 8388608, %v1365_v61  ;;  %v5680_v8 = vor.u32 4788187, %v1333_v11  ;;  %v1670_v58 = vand.u32 2139095040, %v5662_v25 }
 0x17d   : > { %v1522_v2 = vadd.s32 536870912, %v1521_v44  ;;  %v1373_v42 = vsub.s32 32, %v1372_v9  ;;  %vm4250_vm3 = vcmp.lt.s32.totalorder %v4249_v56, 0  ;;  %v1371_v26 = vshrl.u32 %v1370_v5, 5 }
 0x17e   : > { %v1375_v63 = vshll.u32 %v8661_v35, %v1372_v9  ;;  %v1378_v55 = vshll.u32 %v8664_v0, %v1372_v9  ;;  %v1381_v39 = vshll.u32 %v8665_v51, %v1372_v9  ;;  %v1384_v47 = vshll.u32 %v8666_v14, %v1372_v9 }
 0x17f   : > { %v5685_v20 = vshrl.u32 %v1522_v2, 30  ;;  %v1376_v36 = vshrl.u32 %v8664_v0, %v1373_v42  ;;  %v1379_v22 = vshrl.u32 %v8665_v51, %v1373_v42  ;;  %v1382_v6 = vshrl.u32 %v8666_v14, %v1373_v42 }
 0x180   : > { %v1385_v19 = vshrl.u32 %v8667_v46, %v1373_v42  ;;  %v1387_v52 = vshll.u32 %v8667_v46, %v1372_v9  ;;  %vm8484_vm4 = vcmp.lt.s32.totalorder %v5237_v41, 0  ;;  %v1388_v5 = vshrl.u32 %v8669_v28, %v1373_v42 }
 0x181   : > { %8683 = vst [vmem:[#allocation30_spill] sm:$0xff] %v5685_v20  ;;  %v1524_v61 = vshll.u32 %v5685_v20, 30  ;;  %v1377_v11 = vor.u32 %v1376_v36, %v1375_v63  ;;  %v1380_v30 = vor.u32 %v1379_v22, %v1378_v55  ;;  %v5698_v53 = vsel %vm4250_vm3, 0, %v4249_v56 }
 0x182   : > { %v1383_v10 = vor.u32 %v1382_v6, %v1381_v39  ;;  %v1386_v2 = vor.u32 %v1385_v19, %v1384_v47  ;;  %v1671_v31 = vshrl.u32 %v1670_v58, 23  ;;  %v1389_v23 = vor.u32 %v1388_v5, %v1387_v52 }
 0x183   : > { %vm1390_vm5 = vcmp.lt.s32.totalorder %v1371_v26, 1  ;;  %vm1392_vm6 = vcmp.lt.s32.totalorder %v1371_v26, 3  ;;  %vm1393_vm7 = vcmp.lt.s32.totalorder %v1371_v26, 4  ;;  %v8685_v9 = vand.u32 2147483647, %v5237_v41 }
 0x184   : > { %v8686_v13 = vmov 0  ;;  %v5708_v63 = vsub.s32 %v1521_v44, %v1524_v61  ;;  %v1395_v55 = vsel %vm1393_vm7, %v1383_v10, 2102212464  ;;  %v1398_v56 = vsel %vm1390_vm5, %v1377_v11, %v1380_v30 }
 0x185   : > { %vm5704_vm8 = vcmp.le.f32.partialorder %v8685_v9, 0.7853982  ;;  %v1399_v36 = vsel %vm1393_vm7, %v1386_v2, 920167782  ;;  %v1374_v58 = vshrl.u32 %v8661_v35, %v1373_v42  ;;  %vm1391_vm9 = vcmp.lt.s32.totalorder %v1371_v26, 2 }
 0x186   : > { %v8687_v13 = vsel %vm5704_vm8, 4294967295, %v8686_v13  ;;  %v1400_v22 = vsel %vm1392_vm6, %v1383_v10, %v1399_v36  ;;  %v1402_v39 = vsel %vm1390_vm5, %v1380_v30, %v1383_v10  ;;  %v1403_v47 = vsel %vm1393_vm7, %v1389_v23, 1326507024  ;;  %v5725_v10 = vpop.f32.mrb[15].mxu0 }
 0x187   : > { %8688 = vst [vmem:[#allocation32_spill] sm:$0xff] %v8687_v13  ;;  %v1401_v6 = vsel %vm1391_vm9, %v1398_v56, %v1400_v22  ;;  %v1406_v19 = vshll.u32 %v1366_v37, 8  ;;  %v4267_v52 = vadd.s32 4294967169, %v1671_v31  ;;  %v1228_v5 = vsub.s32 4294967266, %v5698_v53 }
 0x188   : > { %v1394_v44 = vsel %vm1390_vm5, %v1374_v58, %v1377_v11  ;;  %v1396_v61 = vsel %vm1392_vm6, %v1380_v30, %v1395_v55  ;;  %v1404_v9 = vsel %vm1392_vm6, %v1386_v2, %v1403_v47  ;;  %v1527_v42 = vsub.s32 0, %v5708_v63  ;;  %v301_v11 = vpop.permute.xlu0 %300 }
 0x189   : > { %v1405_v20 = vsel %vm1391_vm9, %v1402_v39, %v1404_v9  ;;  %v5721_v36 = vmul.u32.u64.low %v1406_v19, %v1401_v6  ;;  %v5722_v33 = vmul.u32.u64.high %v1406_v19, %v1401_v6, %v5721_v36  ;;  %4692 = vcosq.f32 %v5674_v54 }
 0x18a   : > { %v5729_v31 = vmul.u32.u64.low %v1406_v19, %v1405_v20  ;;  %v5730_v37 = vmul.u32.u64.high %v1406_v19, %v1405_v20, %v5729_v31  ;;  %v1031_v30 = vsel %vm8484_vm4, %v1030_v49, %v5654_v34  ;;  %v1335_v2 = vand.u32 2147483647, %v5680_v8 }
 0x18b   : > { %v1397_v55 = vsel %vm1391_vm9, %v1394_v44, %v1396_v61  ;;  %v1677_v56 = vadd.s32 1, %v4267_v52  ;;  %v1337_v58 = vcvt.s32.f32 %v5677_v15  ;;  %v1224_v22 = vsub.s32 32, %v5698_v53 }
 0x18c   : > { %v8689_v39 = vand.u32 2147483647, %v5662_v25  ;;  %v5742_v20 = vadd.f32 %v5302_v12, %v301_v11  ;;  %v1229_v47 = vadd.s32 127, %v1228_v5  ;;  %v4260_v9 = vmin.u32 %v1527_v42, %v5708_v63  ;;  %v5866_v45 = vpop.permute.xlu0 %390 }
 0x18d   : > { %v1416_v34 = vadd.s32 1, %v5722_v33  ;;  %vm1678_vm10 = vcmp.gt.s32.totalorder %v1677_v56, 0  ;;  %v5749_v49 = vsel %vm5704_vm8, %v5237_v41, %v1031_v30  ;;  %v1413_v15 = vmul.u32 %v1406_v19, %v1397_v55  ;;  %8701 = vst [vmem:[#allocation41_spill] sm:$0xff] %v5866_v45 }
 0x18e   : > { %v1674_v6 = vand.u32 8388607, %v8689_v39  ;;  %8690 = vst [vmem:[#allocation33_spill] sm:$0xff] %v5742_v20  ;;  %vm1415_vm11 = vc.u32 %v5730_v37, %v5721_v36  ;;  %v1679_v8 = vsel %vm1678_vm10, %v1677_v56, 0  ;;  %v5753_v26 = vmul.f32 %v1337_v58, %v1335_v2 }
 0x18f   : > { %v1208_v12 = vadd.s32 %v5536_v57, %v5548_v27  ;;  %v1417_v52 = vsel %vm1415_vm11, %v1416_v34, %v5722_v33  ;;  %v1681_v5 = vand.u32 31, %v1679_v8  ;;  %v1225_v44 = vshll.u32 %v5598_v21, %v5698_v53 }
 0x190   : > { %v1418_v61 = vadd.s32 %v1417_v52, %v1413_v15  ;;  %v1675_v42 = vor.u32 8388608, %v1674_v6  ;;  %v1230_v11 = vshll.u32 %v1229_v47, 23  ;;  %v1529_v30 = vclz %v4260_v9  ;;  %v311_v59 = vpop.permute.xlu0 %310 }
 0x191   : > { %v1226_v19 = vshrl.u32 %v1208_v12, %v1224_v22  ;;  %v1682_v55 = vsub.s32 32, %v1681_v5  ;;  %v1684_v2 = vshll.u32 %v8661_v35, %v1681_v5  ;;  %v1687_v58 = vshll.u32 %v8664_v0, %v1681_v5 }
 0x192   : > { %v1419_v56 = vadd.s32 536870912, %v1418_v61  ;;  %v1567_v57 = vand.u32 2139095040, %v5742_v20  ;;  %v1690_v21 = vshll.u32 %v8665_v51, %v1681_v5  ;;  %v1680_v6 = vshrl.u32 %v1679_v8, 5 }
 0x193   : > { %v1685_v27 = vshrl.u32 %v8664_v0, %v1682_v55  ;;  %v1688_v33 = vshrl.u32 %v8665_v51, %v1682_v55  ;;  %v1691_v53 = vshrl.u32 %v8666_v14, %v1682_v55  ;;  %v5768_v39 = vpop.eup %4692  ;;  %v1693_v47 = vshll.u32 %v8666_v14, %v1681_v5 }
 0x194   : > { %8691 = vst [vmem:[#allocation34_spill] sm:$0xff] %v5768_v39  ;;  %v5770_v22 = vshrl.u32 %v1419_v56, 30  ;;  %v1694_v9 = vshrl.u32 %v8667_v46, %v1682_v55  ;;  %v5774_v52 = vshll.u32 %v1675_v42, 8  ;;  %v1227_v31 = vor.u32 %v1226_v19, %v1225_v44 }
 0x195   : > { %v1686_v34 = vor.u32 %v1685_v27, %v1684_v2  ;;  %v1689_v15 = vor.u32 %v1688_v33, %v1687_v58  ;;  %v1692_v12 = vor.u32 %v1691_v53, %v1690_v21  ;;  %v1231_v23 = vor.u32 4788187, %v1230_v11 }
 0x196   : > { %8692 = vst [vmem:[#allocation35_spill] sm:$0xff] %v5770_v22  ;;  %v1421_v1 = vshll.u32 %v5770_v22, 30  ;;  %v1695_v17 = vor.u32 %v1694_v9, %v1693_v47  ;;  %v4261_v13 = vadd.s32 4294967294, %v1529_v30  ;;  %v1696_v39 = vshll.u32 %v8667_v46, %v1681_v5  ;;  %v5798_v9 = vpop.permute.xlu1 %395 }
 0x197   : > { %v1697_v56 = vshrl.u32 %v8669_v28, %v1682_v55  ;;  %v1568_v8 = vshrl.u32 %v1567_v57, 23  ;;  %vm1699_vm13 = vcmp.lt.s32.totalorder %v1680_v6, 1  ;;  %vm1701_vm14 = vcmp.lt.s32.totalorder %v1680_v6, 3  ;;  %8693 = vst [vmem:[#allocation36_spill] sm:$0xff] %v5798_v9 }
 0x198   : > { %v5779_v41 = vsub.s32 %v1418_v61, %v1421_v1  ;;  %vm1702_vm15 = vcmp.lt.s32.totalorder %v1680_v6, 4  ;;  %v1707_v42 = vsel %vm1699_vm13, %v1686_v34, %v1689_v15  ;;  %v1683_v11 = vshrl.u32 %v8661_v35, %v1682_v55 }
 0x199   : > { %v1698_v2 = vor.u32 %v1697_v56, %v1696_v39  ;;  %v1704_v58 = vsel %vm1702_vm15, %v1692_v12, 2102212464  ;;  %v1708_v44 = vsel %vm1702_vm15, %v1695_v17, 920167782  ;;  %vm1700_vm1 = vcmp.lt.s32.totalorder %v1680_v6, 2 }
 0x19a   : > { %v1424_v19 = vsub.s32 0, %v5779_v41  ;;  %v1709_v5 = vsel %vm1701_vm14, %v1692_v12, %v1708_v44  ;;  %vm8466_vm2 = vcmp.lt.s32.totalorder %v5393_v24, 0  ;;  %vm4262_vm3 = vcmp.lt.s32.totalorder %v4261_v13, 0  ;;  %v5814_v44 = vpop.f32.mrb[16].mxu0 }
 0x19b   : > { %v1710_v1 = vsel %vm1700_vm1, %v1707_v42, %v1709_v5  ;;  %v1711_v61 = vsel %vm1699_vm13, %v1689_v15, %v1692_v12  ;;  %v1712_v30 = vsel %vm1702_vm15, %v1698_v2, 1326507024  ;;  %v1703_v27 = vsel %vm1699_vm13, %v1683_v11, %v1686_v34 }
 0x19c   : > { %v4256_v57 = vmin.u32 %v1424_v19, %v5779_v41  ;;  %v1705_v33 = vsel %vm1701_vm14, %v1689_v15, %v1704_v58  ;;  %v1713_v21 = vsel %vm1701_vm14, %v1695_v17, %v1712_v30  ;;  %v4263_v47 = vadd.s32 4294967169, %v1568_v8 }
 0x19d   : > { %v1714_v55 = vsel %vm1700_vm1, %v1711_v61, %v1713_v21  ;;  %v5794_v53 = vmul.u32.u64.low %v5774_v52, %v1710_v1  ;;  %v5795_v39 = vmul.u32.u64.high %v5774_v52, %v1710_v1, %v5794_v53  ;;  %v5800_v12 = vsel %vm4262_vm3, 0, %v4261_v13 }
 0x19e   : > { %v1426_v56 = vclz %v4256_v57  ;;  %v5803_v2 = vmul.u32.u64.low %v5774_v52, %v1714_v55  ;;  %v5804_v34 = vmul.u32.u64.high %v5774_v52, %v1714_v55, %v5803_v2  ;;  %v8694_v15 = vand.u32 2147483647, %v5665_v29  ;;  %v316_v57 = vpop.permute.xlu1 %315 }
 0x19f   : > { %v8695_v17 = vcvt.s32.f32 %v5647_v48  ;;  %4694 = vsinq.f32 %v5674_v54  ;;  %v1706_v42 = vsel %vm1700_vm1, %v1703_v27, %v1705_v33  ;;  %v1574_v8 = vadd.s32 1, %v4263_v47 }
 0x1a0   : > { %4696 = vcosq.f32 %v5749_v49  ;;  %v1339_v13 = vxor.u32 2147483648, %v5753_v26  ;;  %v1232_v19 = vand.u32 2147483647, %v1231_v23  ;;  %v4257_v11 = vadd.s32 4294967294, %v1426_v56 }
 0x1a1   : > { %v5810_v58 = vmul.f32 %v8695_v17, %v8694_v15  ;;  %v1537_v5 = vsub.s32 4294967266, %v5800_v12  ;;  %v1725_v29 = vadd.s32 1, %v5795_v39  ;;  %v8696_v48 = vand.u32 2147483647, %v5742_v20 }
 0x1a2   : > { %vm1575_vm5 = vcmp.gt.s32.totalorder %v1574_v8, 0  ;;  %v1234_v54 = vcvt.s32.f32 %v1227_v31  ;;  %v1722_v6 = vmul.u32 %v5774_v52, %v1706_v42  ;;  %vm1724_vm6 = vc.u32 %v5804_v34, %v5794_v53  ;;  %v5849_v42 = vpop.f32.mrb[17].mxu0 }
 0x1a3   : > { %v1571_v1 = vand.u32 8388607, %v8696_v48  ;;  %v1576_v61 = vsel %vm1575_vm5, %v1574_v8, 0  ;;  %4698 = vsinq.f32 %v5749_v49  ;;  %vm4258_vm7 = vcmp.lt.s32.totalorder %v4257_v11, 0 }
 0x1a4   : > { %v1726_v23 = vsel %vm1724_vm6, %v1725_v29, %v5795_v39  ;;  %v1578_v30 = vand.u32 31, %v1576_v61  ;;  %v5830_v27 = vsel %vm8466_vm2, %v1339_v13, %v5753_v26  ;;  %v5832_v33 = vmul.f32 %v1234_v54, %v1232_v19 }
 0x1a5   : > { %v1517_v31 = vadd.s32 %v5626_v16, %v5624_v3  ;;  %v1727_v52 = vadd.s32 %v1726_v23, %v1722_v6  ;;  %v5836_v21 = vadd.s32 127, %v1537_v5  ;;  %v1572_v55 = vor.u32 8388608, %v1571_v1 }
 0x1a6   : > { %v1579_v49 = vsub.s32 32, %v1578_v30  ;;  %v5839_v47 = vadd.f32 %v5358_v60, %v316_v57  ;;  %v5841_v39 = vsel %vm4258_vm7, 0, %v4257_v11  ;;  %v1581_v2 = vshll.u32 %v8661_v35, %v1578_v30 }
 0x1a7   : > { %v1728_v56 = vadd.s32 536870912, %v1727_v52  ;;  %v1584_v26 = vshll.u32 %v8664_v0, %v1578_v30  ;;  %v1587_v3 = vshll.u32 %v8665_v51, %v1578_v30  ;;  %v1577_v60 = vshrl.u32 %v1576_v61, 5 }
 0x1a8   : > { %8697 = vst [vmem:[#allocation37_spill] sm:$0xff] %v5839_v47  ;;  %v1582_v15 = vshrl.u32 %v8664_v0, %v1579_v49  ;;  %v1585_v17 = vshrl.u32 %v8665_v51, %v1579_v49  ;;  %v1588_v16 = vshrl.u32 %v8666_v14, %v1579_v49  ;;  %v1590_v13 = vshll.u32 %v8666_v14, %v1578_v30 }
 0x1a9   : > { %v5851_v8 = vshrl.u32 %v1728_v56, 30  ;;  %v1591_v19 = vshrl.u32 %v8667_v46, %v1579_v49  ;;  %v5855_v11 = vpop.eup %4694  ;;  %v1533_v5 = vsub.s32 32, %v5800_v12  ;;  %v1539_v6 = vshll.u32 %v5836_v21, 23 }
 0x1aa   : > { %8699 = vst [vmem:[#allocation39_spill] sm:$0xff] %v5855_v11  ;;  %v1583_v29 = vor.u32 %v1582_v15, %v1581_v2  ;;  %v1586_v48 = vor.u32 %v1585_v17, %v1584_v26  ;;  %v1589_v1 = vor.u32 %v1588_v16, %v1587_v3  ;;  %v5858_v54 = vpop.eup %4696  ;;  %v1876_v61 = vand.u32 2139095040, %v5839_v47 }
 0x1ab   : > { %8698 = vst [vmem:[#allocation38_spill] sm:$0xff] %v5851_v8  ;;  %8700 = vst [vmem:[#allocation40_spill] sm:$0xff] %v5858_v54  ;;  %v1730_v23 = vshll.u32 %v5851_v8, 30  ;;  %v1592_v57 = vor.u32 %v1591_v19, %v1590_v13  ;;  %v1434_v56 = vsub.s32 4294967266, %v5841_v39  ;;  %v1593_v22 = vshll.u32 %v8667_v46, %v1578_v30 }
 0x1ac   : > { %v1594_v11 = vshrl.u32 %v8669_v28, %v1579_v49  ;;  %v1612_v9 = vshll.u32 %v1572_v55, 8  ;;  %vm1596_vm9 = vcmp.lt.s32.totalorder %v1577_v60, 1  ;;  %vm1598_vm10 = vcmp.lt.s32.totalorder %v1577_v60, 3 }
 0x1ad   : > { %v5868_v2 = vsub.s32 %v1727_v52, %v1730_v23  ;;  %vm1599_vm11 = vcmp.lt.s32.totalorder %v1577_v60, 4  ;;  %v5870_v21 = vpop.eup %4698  ;;  %v1604_v17 = vsel %vm1596_vm9, %v1583_v29, %v1586_v48  ;;  %v8703_v16 = vand.u32 2147483647, %v5393_v24 }
 0x1ae   : > { %8702 = vst [vmem:[#allocation42_spill] sm:$0xff] %v5870_v21  ;;  %v1595_v26 = vor.u32 %v1594_v11, %v1593_v22  ;;  %v1601_v15 = vsel %vm1599_vm11, %v1589_v1, 2102212464  ;;  %v1605_v3 = vsel %vm1599_vm11, %v1592_v57, 920167782  ;;  %v8704_v30 = vmov 0 }
 0x1af   : > { %vm5875_vm13 = vcmp.le.f32.partialorder %v8703_v16, 0.7853982  ;;  %vm8482_vm14 = vcmp.lt.s32.totalorder %v5396_v40, 0  ;;  %v1733_v52 = vsub.s32 0, %v5868_v2  ;;  %v1580_v55 = vshrl.u32 %v8661_v35, %v1579_v49 }
 0x1b0   : > { %v8705_v30 = vsel %vm5875_vm13, 4294967295, %v8704_v30  ;;  %vm1597_vm15 = vcmp.lt.s32.totalorder %v1577_v60, 2  ;;  %v1606_v13 = vsel %vm1598_vm10, %v1589_v1, %v1605_v3  ;;  %v1430_v22 = vsub.s32 32, %v5841_v39 }
 0x1b1   : > { %8706 = vst [vmem:[#allocation43_spill] sm:$0xff] %v8705_v30  ;;  %v1607_v19 = vsel %vm1597_vm15, %v1604_v17, %v1606_v13  ;;  %v1608_v11 = vsel %vm1596_vm9, %v1586_v48, %v1589_v1  ;;  %v1609_v23 = vsel %vm1599_vm11, %v1595_v26, 1326507024  ;;  %v1435_v16 = vadd.s32 127, %v1434_v56  ;;  %v5913_v13 = vpop.permute.xlu1 %405 }
 0x1b2   : > { %v1600_v8 = vsel %vm1596_vm9, %v1580_v55, %v1583_v29  ;;  %v1602_v54 = vsel %vm1598_vm10, %v1586_v48, %v1601_v15  ;;  %v1610_v21 = vsel %vm1598_vm10, %v1592_v57, %v1609_v23  ;;  %v4268_v45 = vmin.u32 %v1733_v52, %v5868_v2  ;;  %v5911_v55 = vpop.f32.mrb[18].mxu0 }
 0x1b3   : > { %v1611_v49 = vsel %vm1597_vm15, %v1608_v11, %v1610_v21  ;;  %v5891_v32 = vmul.u32.u64.low %v1612_v9, %v1607_v19  ;;  %v5892_v3 = vmul.u32.u64.high %v1612_v9, %v1607_v19, %v5891_v32  ;;  %v8707_v17 = vand.u32 2147483647, %v5396_v40 }
 0x1b4   : > { %v8708_v1 = vmov 0  ;;  %v1535_v29 = vshrl.u32 %v1517_v31, %v1533_v5  ;;  %v1414_v48 = vadd.s32 %v5721_v36, %v5730_v37  ;;  %v1236_v21 = vxor.u32 2147483648, %v5832_v33 }
 0x1b5   : > { %vm5897_vm1 = vcmp.le.f32.partialorder %v8707_v17, 0.7853982  ;;  %v5903_v57 = vmul.u32.u64.low %v1612_v9, %v1611_v49  ;;  %v5904_v56 = vmul.u32.u64.high %v1612_v9, %v1611_v49, %v5903_v57  ;;  %v1603_v26 = vsel %vm1597_vm15, %v1600_v8, %v1602_v54  ;;  %v326_v49 = vpop.permute.xlu1 %325 }
 0x1b6   : > { %v8709_v1 = vsel %vm5897_vm1, 4294967295, %v8708_v1  ;;  %v1877_v15 = vshrl.u32 %v1876_v61, 23  ;;  %v5909_v52 = vadd.f32 %v5418_v62, %v311_v59  ;;  %v1534_v31 = vshll.u32 %v5708_v63, %v5800_v12 }
 0x1b7   : > { %8710 = vst [vmem:[#allocation44_spill] sm:$0xff] %v8709_v1  ;;  %v1540_v5 = vor.u32 4788187, %v1539_v6  ;;  %v1432_v36 = vshrl.u32 %v1414_v48, %v1430_v22  ;;  %v1436_v37 = vshll.u32 %v1435_v16, 23  ;;  %v1735_v19 = vclz %v4268_v45 }
 0x1b8   : > { %8711 = vst [vmem:[#allocation45_spill] sm:$0xff] %v5909_v52  ;;  %v1622_v11 = vadd.s32 1, %v5892_v3  ;;  %v8440_v60 = vand.u32 2147483647, %v5839_v47  ;;  %v4275_v8 = vadd.s32 4294967169, %v1877_v15  ;;  %v1536_v54 = vor.u32 %v1535_v29, %v1534_v31 }
 0x1b9   : > { %v1431_v62 = vshll.u32 %v5779_v41, %v5841_v39  ;;  %v1619_v59 = vmul.u32 %v1612_v9, %v1603_v26  ;;  %vm1621_vm3 = vc.u32 %v5904_v56, %v5891_v32  ;;  %v1343_v63 = vsel %vm5875_vm13, %v5393_v24, %v5830_v27 }
 0x1ba   : > { %v1237_v45 = vsel %vm8482_vm14, %v1236_v21, %v5832_v33  ;;  %v1623_v12 = vsel %vm1621_vm3, %v1622_v11, %v5892_v3  ;;  %v1883_v6 = vadd.s32 1, %v4275_v8  ;;  %v1541_v61 = vand.u32 2147483647, %v1540_v5 }
 0x1bb   : > { %v1433_v22 = vor.u32 %v1432_v36, %v1431_v62  ;;  %v1437_v23 = vor.u32 4788187, %v1436_v37  ;;  %v1624_v41 = vadd.s32 %v1623_v12, %v1619_v59  ;;  %v4269_v9 = vadd.s32 4294967294, %v1735_v19 }
 0x1bc   : > { %v1880_v39 = vand.u32 8388607, %v8440_v60  ;;  %vm1884_vm5 = vcmp.gt.s32.totalorder %v1883_v6, 0  ;;  %v1773_v16 = vand.u32 2139095040, %v5909_v52  ;;  %4700 = vcosq.f32 %v1343_v63 }
 0x1bd   : > { %v1543_v27 = vcvt.s32.f32 %v1536_v54  ;;  %v1625_v17 = vadd.s32 536870912, %v1624_v41  ;;  %v1885_v29 = vsel %vm1884_vm5, %v1883_v6, 0  ;;  %4702 = vsinq.f32 %v1343_v63  ;;  %v5949_v54 = vpop.f32.mrb[19].mxu0 }
 0x1be   : > { %v5937_v33 = vsel %vm5897_vm1, %v5396_v40, %v1237_v45  ;;  %v1887_v3 = vand.u32 31, %v1885_v29  ;;  %v5940_v48 = vadd.f32 %v5475_v18, %v326_v49  ;;  %v1438_v21 = vand.u32 2147483647, %v1437_v23 }
 0x1bf   : > { %v5942_v57 = vmul.f32 %v1543_v27, %v1541_v61  ;;  %v1440_v26 = vcvt.s32.f32 %v1433_v22  ;;  %v5944_v15 = vshrl.u32 %v1625_v17, 30  ;;  %vm4270_vm6 = vcmp.lt.s32.totalorder %v4269_v9, 0 }
 0x1c0   : > { %8712 = vst [vmem:[#allocation46_spill] sm:$0xff] %v5940_v48  ;;  %v1881_v31 = vor.u32 8388608, %v1880_v39  ;;  %v1888_v5 = vsub.s32 32, %v1887_v3  ;;  %v1774_v36 = vshrl.u32 %v1773_v16, 23  ;;  %v1886_v19 = vshrl.u32 %v1885_v29, 5 }
 0x1c1   : > { %8713 = vst [vmem:[#allocation47_spill] sm:$0xff] %v5944_v15  ;;  %v1627_v37 = vshll.u32 %v5944_v15, 30  ;;  %v1890_v11 = vshll.u32 %v8661_v35, %v1887_v3  ;;  %v1893_v8 = vshll.u32 %v8664_v0, %v1887_v3  ;;  %v1896_v59 = vshll.u32 %v8665_v51, %v1887_v3 }
 0x1c2   : > { %v1891_v18 = vshrl.u32 %v8664_v0, %v1888_v5  ;;  %v1894_v62 = vshrl.u32 %v8665_v51, %v1888_v5  ;;  %v1897_v63 = vshrl.u32 %v8666_v14, %v1888_v5  ;;  %v1899_v12 = vshll.u32 %v8666_v14, %v1887_v3 }
 0x1c3   : > { %v5955_v45 = vsub.s32 %v1624_v41, %v1627_v37  ;;  %v1900_v6 = vshrl.u32 %v8667_v46, %v1888_v5  ;;  %v1902_v61 = vshll.u32 %v8667_v46, %v1887_v3  ;;  %v1903_v16 = vshrl.u32 %v8669_v28, %v1888_v5 }
 0x1c4   : > { %v1892_v22 = vor.u32 %v1891_v18, %v1890_v11  ;;  %v1895_v23 = vor.u32 %v1894_v62, %v1893_v8  ;;  %v1898_v39 = vor.u32 %v1897_v63, %v1896_v59  ;;  %v5961_v49 = vmul.f32 %v1440_v26, %v1438_v21 }
 0x1c5   : > { %v1630_v27 = vsub.s32 0, %v5955_v45  ;;  %v1901_v17 = vor.u32 %v1900_v6, %v1899_v12  ;;  %v5966_v41 = vsel %vm4270_vm6, 0, %v4269_v9  ;;  %v1904_v37 = vor.u32 %v1903_v16, %v1902_v61 }
 0x1c6   : > { %v1921_v60 = vshll.u32 %v1881_v31, 8  ;;  %v4271_v15 = vadd.s32 4294967169, %v1774_v36  ;;  %v5968_v30 = vpop.eup %4700  ;;  %v1889_v11 = vshrl.u32 %v8661_v35, %v1888_v5  ;;  %vm1905_vm7 = vcmp.lt.s32.totalorder %v1886_v19, 1 }
 0x1c7   : > { %8714 = vst [vmem:[#allocation48_spill] sm:$0xff] %v5968_v30  ;;  %v4264_v3 = vmin.u32 %v1630_v27, %v5955_v45  ;;  %vm1908_vm9 = vcmp.lt.s32.totalorder %v1886_v19, 4  ;;  %v5972_v21 = vpop.eup %4702  ;;  %vm1907_vm10 = vcmp.lt.s32.totalorder %v1886_v19, 3  ;;  %v1913_v8 = vsel %vm1905_vm7, %v1892_v22, %v1895_v23 }
 0x1c8   : > { %8715 = vst [vmem:[#allocation49_spill] sm:$0xff] %v5972_v21  ;;  %v1910_v26 = vsel %vm1908_vm9, %v1898_v39, 2102212464  ;;  %v1914_v18 = vsel %vm1908_vm9, %v1901_v17, 920167782  ;;  %vm1906_vm11 = vcmp.lt.s32.totalorder %v1886_v19, 2  ;;  %v1917_v59 = vsel %vm1905_vm7, %v1895_v23, %v1898_v39 }
 0x1c9   : > { %v1632_v62 = vclz %v4264_v3  ;;  %v1915_v9 = vsel %vm1907_vm10, %v1898_v39, %v1914_v18  ;;  %v1743_v31 = vsub.s32 4294967266, %v5966_v41  ;;  %v1909_v36 = vsel %vm1905_vm7, %v1889_v11, %v1892_v22 }
 0x1ca   : > { %v1916_v63 = vsel %vm1906_vm11, %v1913_v8, %v1915_v9  ;;  %v1918_v12 = vsel %vm1908_vm9, %v1904_v37, 1326507024  ;;  %v1911_v5 = vsel %vm1907_vm10, %v1895_v23, %v1910_v26  ;;  %v1780_v16 = vadd.s32 1, %v4271_v15 }
 0x1cb   : > { %v4265_v6 = vadd.s32 4294967294, %v1632_v62  ;;  %v1919_v61 = vsel %vm1907_vm10, %v1901_v17, %v1918_v12  ;;  %v1739_v27 = vsub.s32 32, %v5966_v41  ;;  %v1744_v22 = vadd.s32 127, %v1743_v31 }
 0x1cc   : > { %v1920_v29 = vsel %vm1906_vm11, %v1917_v59, %v1919_v61  ;;  %v5978_v30 = vmul.u32.u64.low %v1921_v60, %v1916_v63  ;;  %v5979_v21 = vmul.u32.u64.high %v1921_v60, %v1916_v63, %v5978_v30  ;;  %vm1781_vm3 = vcmp.gt.s32.totalorder %v1780_v16, 0 }
 0x1cd   : > { %vm4266_vm15 = vcmp.lt.s32.totalorder %v4265_v6, 0  ;;  %v5982_v39 = vmul.u32.u64.low %v1921_v60, %v1920_v29  ;;  %v5983_v3 = vmul.u32.u64.high %v1921_v60, %v1920_v29, %v5982_v39  ;;  %v1912_v37 = vsel %vm1906_vm11, %v1909_v36, %v1911_v5  ;;  %v6018_v36 = vpop.f32.mrb[20].mxu0 }
 0x1ce   : > { %v8716_v23 = vand.u32 2147483647, %v5909_v52  ;;  %v1782_v15 = vsel %vm1781_vm3, %v1780_v16, 0  ;;  %v1723_v8 = vadd.s32 %v5794_v53, %v5804_v34  ;;  %v5994_v18 = vadd.s32 %v5891_v32, %v5904_v56 }
 0x1cf   : > { %v1740_v29 = vshll.u32 %v5868_v2, %v5966_v41  ;;  %v5998_v19 = vsel %vm4266_vm15, 0, %v4265_v6  ;;  %v1931_v62 = vadd.s32 1, %v5979_v21  ;;  %v1784_v9 = vand.u32 31, %v1782_v15 }
 0x1d0   : > { %v1777_v17 = vand.u32 8388607, %v8716_v23  ;;  %v1741_v59 = vshrl.u32 %v1723_v8, %v1739_v27  ;;  %v1928_v31 = vmul.u32 %v1921_v60, %v1912_v37  ;;  %vm1930_vm5 = vc.u32 %v5983_v3, %v5978_v30 }
 0x1d1   : > { %v1745_v53 = vshll.u32 %v1744_v22, 23  ;;  %v1932_v34 = vsel %vm1930_vm5, %v1931_v62, %v5979_v21  ;;  %v1785_v56 = vsub.s32 32, %v1784_v9  ;;  %v1640_v63 = vsub.s32 4294967266, %v5998_v19 }
 0x1d2   : > { %v1778_v32 = vor.u32 8388608, %v1777_v17  ;;  %v1933_v2 = vadd.s32 %v1932_v34, %v1928_v31  ;;  %v1787_v41 = vshll.u32 %v8661_v35, %v1784_v9  ;;  %v1790_v12 = vshll.u32 %v8664_v0, %v1784_v9 }
 0x1d3   : > { %v1788_v6 = vshrl.u32 %v8664_v0, %v1785_v56  ;;  %v1791_v60 = vshrl.u32 %v8665_v51, %v1785_v56  ;;  %v1793_v5 = vshll.u32 %v8665_v51, %v1784_v9  ;;  %v1794_v61 = vshrl.u32 %v8666_v14, %v1785_v56 }
 0x1d4   : > { %v1742_v16 = vor.u32 %v1741_v59, %v1740_v29  ;;  %v1934_v27 = vadd.s32 536870912, %v1933_v2  ;;  %v1783_v21 = vshrl.u32 %v1782_v15, 5  ;;  %v1796_v39 = vshll.u32 %v8666_v14, %v1784_v9 }
 0x1d5   : > { %v1789_v22 = vor.u32 %v1788_v6, %v1787_v41  ;;  %v1792_v37 = vor.u32 %v1791_v60, %v1790_v12  ;;  %v1795_v23 = vor.u32 %v1794_v61, %v1793_v5  ;;  %v1797_v17 = vshrl.u32 %v8667_v46, %v1785_v56  ;;  %v6023_v12 = vpop.permute.xlu0 %400 }
 0x1d6   : > { %v1746_v8 = vor.u32 4788187, %v1745_v53  ;;  %v6014_v62 = vshrl.u32 %v1934_v27, 30  ;;  %v1799_v31 = vshll.u32 %v8667_v46, %v1784_v9  ;;  %v1800_v34 = vshrl.u32 %v8669_v28, %v1785_v56  ;;  %8718 = vst [vmem:[#allocation51_spill] sm:$0xff] %v6023_v12 }
 0x1d7   : > { %vm8461_vm6 = vcmp.lt.s32.totalorder %v5445_v38, 0  ;;  %vm8463_vm7 = vcmp.lt.s32.totalorder %v5566_v50, 0  ;;  %v1636_v15 = vsub.s32 32, %v5998_v19  ;;  %v1641_v29 = vadd.s32 127, %v1640_v63 }
 0x1d8   : > { %8717 = vst [vmem:[#allocation50_spill] sm:$0xff] %v6014_v62  ;;  %v1798_v59 = vor.u32 %v1797_v17, %v1796_v39  ;;  %v1818_v41 = vshll.u32 %v1778_v32, 8  ;;  %v1936_v53 = vshll.u32 %v6014_v62, 30  ;;  %v1801_v6 = vor.u32 %v1800_v34, %v1799_v31 }
 0x1d9   : > { %vm1802_vm9 = vcmp.lt.s32.totalorder %v1783_v21, 1  ;;  %vm1805_vm10 = vcmp.lt.s32.totalorder %v1783_v21, 4  ;;  %vm1804_vm11 = vcmp.lt.s32.totalorder %v1783_v21, 3  ;;  %v8719_v61 = vand.u32 2147483647, %v5445_v38  ;;  %v321_v62 = vpop.permute.xlu0 %320 }
 0x1da   : > { %v1807_v9 = vsel %vm1805_vm10, %v1795_v23, 2102212464  ;;  %v1810_v60 = vsel %vm1802_vm9, %v1789_v22, %v1792_v37  ;;  %v1811_v5 = vsel %vm1805_vm10, %v1798_v59, 920167782  ;;  %v8720_v27 = vmov 0 }
 0x1db   : > { %vm6029_vm15 = vcmp.le.f32.partialorder %v8719_v61, 0.7853982  ;;  %v6033_v63 = vsub.s32 %v1933_v2, %v1936_v53  ;;  %v1786_v32 = vshrl.u32 %v8661_v35, %v1785_v56  ;;  %vm1803_vm3 = vcmp.lt.s32.totalorder %v1783_v21, 2 }
 0x1dc   : > { %v8721_v27 = vsel %vm6029_vm15, 4294967295, %v8720_v27  ;;  %v1812_v39 = vsel %vm1804_vm11, %v1795_v23, %v1811_v5  ;;  %v1814_v31 = vsel %vm1802_vm9, %v1792_v37, %v1795_v23  ;;  %v1815_v34 = vsel %vm1805_vm10, %v1801_v6, 1326507024 }
 0x1dd   : > { %8722 = vst [vmem:[#allocation52_spill] sm:$0xff] %v8721_v27  ;;  %v1813_v17 = vsel %vm1803_vm3, %v1810_v60, %v1812_v39  ;;  %v2082_v26 = vand.u32 2139095040, %v5940_v48  ;;  %v8723_v11 = vand.u32 2147483647, %v5566_v50  ;;  %v8724_v61 = vmov 0 }
 0x1de   : > { %v1939_v2 = vsub.s32 0, %v6033_v63  ;;  %v1806_v56 = vsel %vm1802_vm9, %v1786_v32, %v1789_v22  ;;  %v1808_v53 = vsel %vm1804_vm11, %v1792_v37, %v1807_v9  ;;  %v1816_v5 = vsel %vm1804_vm11, %v1798_v59, %v1815_v34  ;;  %v6082_v34 = vpop.permute.xlu1 %415 }
 0x1df   : > { %vm6042_vm5 = vcmp.le.f32.partialorder %v8723_v11, 0.7853982  ;;  %v1747_v60 = vand.u32 2147483647, %v1746_v8  ;;  %v1817_v23 = vsel %vm1803_vm3, %v1814_v31, %v1816_v5  ;;  %v1642_v11 = vshll.u32 %v1641_v29, 23 }
 0x1e0   : > { %v8725_v61 = vsel %vm6042_vm5, 4294967295, %v8724_v61  ;;  %v6051_v6 = vmul.u32.u64.low %v1818_v41, %v1813_v17  ;;  %v6052_v39 = vmul.u32.u64.high %v1818_v41, %v1813_v17, %v6051_v6  ;;  %v4276_v24 = vmin.u32 %v1939_v2, %v6033_v63 }
 0x1e1   : > { %8726 = vst [vmem:[#allocation53_spill] sm:$0xff] %v8725_v61  ;;  %v6056_v1 = vmul.u32.u64.low %v1818_v41, %v1817_v23  ;;  %v6057_v40 = vmul.u32.u64.high %v1818_v41, %v1817_v23, %v6056_v1  ;;  %v1749_v12 = vcvt.s32.f32 %v1742_v16  ;;  %v1809_v22 = vsel %vm1803_vm3, %v1806_v56, %v1808_v53 }
 0x1e2   : > { %v2083_v37 = vshrl.u32 %v2082_v26, 23  ;;  %v6061_v59 = vadd.f32 %v5556_v43, %v321_v62  ;;  %v8728_v8 = vxor.u32 2147483648, %v5942_v57  ;;  %v8729_v29 = vxor.u32 2147483648, %v5961_v49 }
 0x1e3   : > { %vm8459_vm9 = vcmp.lt.s32.totalorder %v5662_v25, 0  ;;  %v1638_v1 = vshrl.u32 %v5994_v18, %v1636_v15  ;;  %v1941_v26 = vclz %v4276_v24  ;;  %v1750_v16 = vmul.f32 %v1749_v12, %v1747_v60 }
 0x1e4   : > { %8727 = vst [vmem:[#allocation54_spill] sm:$0xff] %v6061_v59  ;;  %v1546_v9 = vsel %vm8461_vm6, %v8728_v8, %v5942_v57  ;;  %v1443_v32 = vsel %vm8463_vm7, %v8729_v29, %v5961_v49  ;;  %v1637_v43 = vshll.u32 %v5955_v45, %v5998_v19  ;;  %v1828_v21 = vadd.s32 1, %v6052_v39 }
 0x1e5   : > { %v4283_v62 = vadd.s32 4294967169, %v2083_v37  ;;  %v1643_v17 = vor.u32 4788187, %v1642_v11  ;;  %v1825_v57 = vmul.u32 %v1818_v41, %v1809_v22  ;;  %vm1827_vm10 = vc.u32 %v6057_v40, %v6051_v6 }
 0x1e6   : > { %v8730_v31 = vand.u32 2147483647, %v5940_v48  ;;  %v1549_v24 = vsel %vm6029_vm15, %v5445_v38, %v1546_v9  ;;  %v1829_v18 = vsel %vm1827_vm10, %v1828_v21, %v6052_v39  ;;  %v1979_v19 = vand.u32 2139095040, %v6061_v59  ;;  %v6111_v21 = vpop.f32.mrb[21].mxu0 }
 0x1e7   : > { %v2089_v45 = vadd.s32 1, %v4283_v62  ;;  %4704 = vcosq.f32 %v5937_v33  ;;  %v1639_v15 = vor.u32 %v1638_v1, %v1637_v43  ;;  %v4277_v41 = vadd.s32 4294967294, %v1941_v26 }
 0x1e8   : > { %v2086_v49 = vand.u32 8388607, %v8730_v31  ;;  %v1830_v12 = vadd.s32 %v1829_v18, %v1825_v57  ;;  %4706 = vsinq.f32 %v5937_v33  ;;  %v1446_v2 = vsel %vm6042_vm5, %v5566_v50, %v1443_v32  ;;  %v336_v33 = vpop.permute.xlu1 %335 }
 0x1e9   : > { %v1751_v56 = vxor.u32 2147483648, %v1750_v16  ;;  %vm2090_vm11 = vcmp.gt.s32.totalorder %v2089_v45, 0  ;;  %4708 = vcosq.f32 %v1549_v24  ;;  %v1644_v53 = vand.u32 2147483647, %v1643_v17 }
 0x1ea   : > { %v1831_v5 = vadd.s32 536870912, %v1830_v12  ;;  %v2087_v60 = vor.u32 8388608, %v2086_v49  ;;  %4710 = vsinq.f32 %v1549_v24  ;;  %v2091_v23 = vsel %vm2090_vm11, %v2089_v45, 0 }
 0x1eb   : > { %v8453_v39 = vand.u32 2147483647, %v6061_v59  ;;  %v1980_v11 = vshrl.u32 %v1979_v19, 23  ;;  %4712 = vcosq.f32 %v1446_v2  ;;  %v1646_v22 = vcvt.s32.f32 %v1639_v15 }
 0x1ec   : > { %vm4278_vm3 = vcmp.lt.s32.totalorder %v4277_v41, 0  ;;  %v6095_v37 = vshrl.u32 %v1831_v5, 30  ;;  %4714 = vsinq.f32 %v1446_v2  ;;  %v6099_v8 = vsel %vm8459_vm9, %v1751_v56, %v1750_v16 }
 0x1ed   : > { %v1929_v9 = vadd.s32 %v5978_v30, %v5983_v3  ;;  %v2093_v29 = vand.u32 31, %v2091_v23  ;;  %v6103_v32 = vmul.f32 %v1646_v22, %v1644_v53  ;;  %v6106_v26 = vshll.u32 %v2087_v60, 8 }
 0x1ee   : > { %8731 = vst [vmem:[#allocation55_spill] sm:$0xff] %v6095_v37  ;;  %v1833_v1 = vshll.u32 %v6095_v37, 30  ;;  %v6109_v43 = vadd.f32 %v5630_v4, %v336_v33  ;;  %v6113_v62 = vsel %vm4278_vm3, 0, %v4277_v41  ;;  %v4279_v16 = vadd.s32 4294967169, %v1980_v11 }
 0x1ef   : > { %v2094_v17 = vsub.s32 32, %v2093_v29  ;;  %v6117_v57 = vand.u32 8388607, %v8453_v39  ;;  %v2092_v3 = vshrl.u32 %v2091_v23, 5  ;;  %v2096_v31 = vshll.u32 %v8661_v35, %v2093_v29 }
 0x1f0   : > { %8732 = vst [vmem:[#allocation56_spill] sm:$0xff] %v6109_v43  ;;  %v6119_v30 = vsub.s32 %v1830_v12, %v1833_v1  ;;  %v2099_v49 = vshll.u32 %v8664_v0, %v2093_v29  ;;  %v2102_v18 = vshll.u32 %v8665_v51, %v2093_v29  ;;  %v2105_v41 = vshll.u32 %v8666_v14, %v2093_v29 }
 0x1f1   : > { %v2097_v4 = vshrl.u32 %v8664_v0, %v2094_v17  ;;  %v2100_v24 = vshrl.u32 %v8665_v51, %v2094_v17  ;;  %v2103_v45 = vshrl.u32 %v8666_v14, %v2094_v17  ;;  %v6127_v19 = vpop.eup %4704  ;;  %v2106_v12 = vshrl.u32 %v8667_v46, %v2094_v17 }
 0x1f2   : > { %8733 = vst [vmem:[#allocation57_spill] sm:$0xff] %v6127_v19  ;;  %v1836_v15 = vsub.s32 0, %v6119_v30  ;;  %v2108_v2 = vshll.u32 %v8667_v46, %v2093_v29  ;;  %v6133_v56 = vpop.eup %4706  ;;  %v8735_v53 = vand.u32 2147483647, %v5662_v25  ;;  %v8736_v5 = vmov 0 }
 0x1f3   : > { %8734 = vst [vmem:[#allocation58_spill] sm:$0xff] %v6133_v56  ;;  %v2098_v60 = vor.u32 %v2097_v4, %v2096_v31  ;;  %v2101_v23 = vor.u32 %v2100_v24, %v2099_v49  ;;  %v2104_v11 = vor.u32 %v2103_v45, %v2102_v18  ;;  %v2109_v22 = vshrl.u32 %v8669_v28, %v2094_v17  ;;  %v6142_v33 = vpop.eup %4708  ;;  %v8805_v56 = vld [vmem:[#allocation14_spill] sm:$0xff] }
 0x1f4   : > { %vm6137_vm10 = vcmp.le.f32.partialorder %v8735_v53, 0.7853982  ;;  %8739 = vst [vmem:[#allocation60_spill] sm:$0xff] %v6142_v33  ;;  %v1945_v1 = vsub.s32 32, %v6113_v62  ;;  %v1949_v39 = vsub.s32 4294967266, %v6113_v62  ;;  %v4272_v29 = vmin.u32 %v1836_v15, %v6119_v30  ;;  %v6147_v27 = vpop.eup %4710 }
 0x1f5   : > { %v8737_v5 = vsel %vm6137_vm10, 4294967295, %v8736_v5  ;;  %v2107_v37 = vor.u32 %v2106_v12, %v2105_v41  ;;  %8740 = vst [vmem:[#allocation61_spill] sm:$0xff] %v6147_v27  ;;  %v2110_v53 = vor.u32 %v2109_v22, %v2108_v2  ;;  %vm2111_vm11 = vcmp.lt.s32.totalorder %v2092_v3, 1  ;;  %v6149_v31 = vpop.eup %4712 }
 0x1f6   : > { %8738 = vst [vmem:[#allocation59_spill] sm:$0xff] %v8737_v5  ;;  %vm2114_vm3 = vcmp.lt.s32.totalorder %v2092_v3, 4  ;;  %v1986_v38 = vadd.s32 1, %v4279_v16  ;;  %8741 = vst [vmem:[#allocation62_spill] sm:$0xff] %v6149_v31  ;;  %v1838_v49 = vclz %v4272_v29  ;;  %v2095_v4 = vshrl.u32 %v8661_v35, %v2094_v17  ;;  %v6152_v18 = vpop.eup %4714 }
 0x1f7   : > { %vm2113_vm9 = vcmp.lt.s32.totalorder %v2092_v3, 3  ;;  %v2116_v24 = vsel %vm2114_vm3, %v2104_v11, 2102212464  ;;  %8742 = vst [vmem:[#allocation63_spill] sm:$0xff] %v6152_v18  ;;  %v2119_v45 = vsel %vm2111_vm11, %v2098_v60, %v2101_v23  ;;  %v2120_v33 = vsel %vm2114_vm3, %v2107_v37, 920167782 }
 0x1f8   : > { %v2123_v15 = vsel %vm2111_vm11, %v2101_v23, %v2104_v11  ;;  %v2124_v41 = vsel %vm2114_vm3, %v2110_v53, 1326507024  ;;  %v1947_v12 = vshrl.u32 %v1929_v9, %v1945_v1  ;;  %v4273_v2 = vadd.s32 4294967294, %v1838_v49 }
 0x1f9   : > { %v2121_v22 = vsel %vm2113_vm9, %v2104_v11, %v2120_v33  ;;  %v1984_v16 = vor.u32 8388608, %v6117_v57  ;;  %vm2112_vm6 = vcmp.lt.s32.totalorder %v2092_v3, 2  ;;  %v2115_v29 = vsel %vm2111_vm11, %v2095_v4, %v2098_v60 }
 0x1fa   : > { %v2117_v27 = vsel %vm2113_vm9, %v2101_v23, %v2116_v24  ;;  %v2125_v17 = vsel %vm2113_vm9, %v2107_v37, %v2124_v41  ;;  %vm4274_vm7 = vcmp.lt.s32.totalorder %v4273_v2, 0  ;;  %v2122_v61 = vsel %vm2112_vm6, %v2119_v45, %v2121_v22 }
 0x1fb   : > { %v2126_v31 = vsel %vm2112_vm6, %v2123_v15, %v2125_v17  ;;  %vm1987_vm2 = vcmp.gt.s32.totalorder %v1986_v38, 0  ;;  %v1950_v50 = vadd.s32 127, %v1949_v39  ;;  %v6158_v18 = vsel %vm4274_vm7, 0, %v4273_v2 }
 0x1fc   : > { %v6161_v19 = vmul.u32.u64.low %v6106_v26, %v2126_v31  ;;  %v6162_v53 = vmul.u32.u64.high %v6106_v26, %v2126_v31, %v6161_v19  ;;  %v6168_v9 = vsel %vm6137_vm10, %v5662_v25, %v6099_v8  ;;  %v1946_v37 = vshll.u32 %v6033_v63, %v6113_v62 }
 0x1fd   : > { %v1988_v3 = vsel %vm1987_vm2, %v1986_v38, 0  ;;  %v2118_v60 = vsel %vm2112_vm6, %v2115_v29, %v2117_v27  ;;  %v6174_v39 = vmul.u32.u64.low %v6106_v26, %v2122_v61  ;;  %v6175_v23 = vmul.u32.u64.high %v6106_v26, %v2122_v61, %v6174_v39 }
 0x1fe   : > { %v1990_v11 = vand.u32 31, %v1988_v3  ;;  %v1826_v19 = vadd.s32 %v6051_v6, %v6057_v40  ;;  %v1846_v33 = vsub.s32 4294967266, %v6158_v18  ;;  %v6181_v8 = vshll.u32 %v1984_v16, 8 }
 0x1ff   : > { %v6184_v31 = vor.u32 %v1947_v12, %v1946_v37  ;;  %v1951_v63 = vshll.u32 %v1950_v50, 23  ;;  %v2288_v27 = vand.u32 2139095040, %v6109_v43  ;;  %v2134_v61 = vmul.u32 %v6106_v26, %v2118_v60  ;;  %v6195_v50 = vpop.f32.mrb[22].mxu0 }
 0x200   : > { %v1991_v38 = vsub.s32 32, %v1990_v11  ;;  %vm2136_vm2 = vc.u32 %v6162_v53, %v6174_v39  ;;  %v1989_v62 = vshrl.u32 %v1988_v3, 5  ;;  %v1993_v40 = vshll.u32 %v8661_v35, %v1990_v11 }
 0x201   : > { %v2137_v6 = vadd.s32 1, %v6175_v23  ;;  %v1996_v4 = vshll.u32 %v8664_v0, %v1990_v11  ;;  %v1847_v45 = vadd.s32 127, %v1846_v33  ;;  %v1999_v15 = vshll.u32 %v8665_v51, %v1990_v11 }
 0x202   : > { %v1994_v49 = vshrl.u32 %v8664_v0, %v1991_v38  ;;  %v1997_v24 = vshrl.u32 %v8665_v51, %v1991_v38  ;;  %v2000_v26 = vshrl.u32 %v8666_v14, %v1991_v38  ;;  %v2002_v41 = vshll.u32 %v8666_v14, %v1990_v11 }
 0x203   : > { %v2138_v12 = vsel %vm2136_vm2, %v2137_v6, %v6175_v23  ;;  %v2003_v16 = vshrl.u32 %v8667_v46, %v1991_v38  ;;  %v1952_v29 = vor.u32 4788187, %v1951_v63  ;;  %v1842_v17 = vsub.s32 32, %v6158_v18  ;;  %v6206_v23 = vpop.permute.xlu0 %410 }
 0x204   : > { %v1995_v2 = vor.u32 %v1994_v49, %v1993_v40  ;;  %v1998_v22 = vor.u32 %v1997_v24, %v1996_v4  ;;  %v2139_v37 = vadd.s32 %v2138_v12, %v2134_v61  ;;  %v2001_v3 = vor.u32 %v2000_v26, %v1999_v15 }
 0x205   : > { %v2004_v60 = vor.u32 %v2003_v16, %v2002_v41  ;;  %v2005_v33 = vshll.u32 %v8667_v46, %v1990_v11  ;;  %v2006_v1 = vshrl.u32 %v8669_v28, %v1991_v38  ;;  %v2289_v57 = vshrl.u32 %v2288_v27, 23 }
 0x206   : > { %vm8481_vm6 = vcmp.lt.s32.totalorder %v5742_v20, 0  ;;  %v1848_v5 = vshll.u32 %v1847_v45, 23  ;;  %v2140_v25 = vadd.s32 536870912, %v2139_v37  ;;  %vm2008_vm7 = vcmp.lt.s32.totalorder %v1989_v62, 1 }
 0x207   : > { %vm2011_vm9 = vcmp.lt.s32.totalorder %v1989_v62, 4  ;;  %v1992_v63 = vshrl.u32 %v8661_v35, %v1991_v38  ;;  %v2007_v40 = vor.u32 %v2006_v1, %v2005_v33  ;;  %v2016_v61 = vsel %vm2008_vm7, %v1995_v2, %v1998_v22 }
 0x208   : > { %v2013_v6 = vsel %vm2011_vm9, %v2001_v3, 2102212464  ;;  %v6209_v49 = vshrl.u32 %v2140_v25, 30  ;;  %vm2009_vm11 = vcmp.lt.s32.totalorder %v1989_v62, 2  ;;  %vm2010_vm3 = vcmp.lt.s32.totalorder %v1989_v62, 3 }
 0x209   : > { %v2017_v11 = vsel %vm2011_vm9, %v2004_v60, 920167782  ;;  %v2012_v4 = vsel %vm2008_vm7, %v1992_v63, %v1995_v2  ;;  %v2020_v24 = vsel %vm2008_vm7, %v1998_v22, %v2001_v3  ;;  %v2021_v15 = vsel %vm2011_vm9, %v2007_v40, 1326507024 }
 0x20a   : > { %8743 = vst [vmem:[#allocation64_spill] sm:$0xff] %v6209_v49  ;;  %v2018_v27 = vsel %vm2010_vm3, %v2001_v3, %v2017_v11  ;;  %v8744_v45 = vand.u32 2147483647, %v5742_v20  ;;  %v8745_v26 = vmov 0  ;;  %v2142_v38 = vshll.u32 %v6209_v49, 30 }
 0x20b   : > { %v2014_v1 = vsel %vm2010_vm3, %v1998_v22, %v2013_v6  ;;  %v2019_v41 = vsel %vm2009_vm11, %v2016_v61, %v2018_v27  ;;  %v2022_v25 = vsel %vm2010_vm3, %v2004_v60, %v2021_v15  ;;  %v1844_v12 = vshrl.u32 %v1826_v19, %v1842_v17 }
 0x20c   : > { %vm6213_vm2 = vcmp.le.f32.partialorder %v8744_v45, 0.7853982  ;;  %v2023_v16 = vsel %vm2009_vm11, %v2020_v24, %v2022_v25  ;;  %v6221_v2 = vmul.u32.u64.low %v6181_v8, %v2019_v41  ;;  %v6222_v33 = vmul.u32.u64.high %v6181_v8, %v2019_v41, %v6221_v2  ;;  %v331_v45 = vpop.permute.xlu0 %330 }
 0x20d   : > { %v8746_v26 = vsel %vm6213_vm2, 4294967295, %v8745_v26  ;;  %v1953_v3 = vand.u32 2147483647, %v1952_v29  ;;  %v6225_v63 = vsub.s32 %v2139_v37, %v2142_v38  ;;  %v1843_v22 = vshll.u32 %v6119_v30, %v6158_v18 }
 0x20e   : > { %8747 = vst [vmem:[#allocation65_spill] sm:$0xff] %v8746_v26  ;;  %v6228_v40 = vmul.u32.u64.low %v6181_v8, %v2023_v16  ;;  %v6229_v11 = vmul.u32.u64.high %v6181_v8, %v2023_v16, %v6228_v40  ;;  %v1849_v60 = vor.u32 4788187, %v1848_v5  ;;  %v2015_v19 = vsel %vm2009_vm11, %v2012_v4, %v2014_v1 }
 0x20f   : > { %v4291_v17 = vadd.s32 4294967169, %v2289_v57  ;;  %4716 = vcosq.f32 %v6168_v9  ;;  %v1955_v6 = vcvt.s32.f32 %v6184_v31  ;;  %v2145_v29 = vsub.s32 0, %v6225_v63 }
 0x210   : > { %v6238_v37 = vadd.f32 %v5725_v10, %v331_v45  ;;  %v8749_v61 = vxor.u32 2147483648, %v6103_v32  ;;  %v1845_v30 = vor.u32 %v1844_v12, %v1843_v22  ;;  %v2034_v5 = vadd.s32 1, %v6222_v33 }
 0x211   : > { %v2295_v18 = vadd.s32 1, %v4291_v17  ;;  %v6246_v57 = vmul.f32 %v1955_v6, %v1953_v3  ;;  %v4284_v62 = vmin.u32 %v2145_v29, %v6225_v63  ;;  %v2031_v31 = vmul.u32 %v6181_v8, %v2015_v19 }
 0x212   : > { %8748 = vst [vmem:[#allocation66_spill] sm:$0xff] %v6238_v37  ;;  %v1649_v27 = vsel %vm8481_vm6, %v8749_v61, %v6103_v32  ;;  %vm2033_vm7 = vc.u32 %v6229_v11, %v6221_v2  ;;  %v1850_v10 = vand.u32 2147483647, %v1849_v60  ;;  %v8750_v24 = vand.u32 2147483647, %v6109_v43 }
 0x213   : > { %v2035_v4 = vsel %vm2033_vm7, %v2034_v5, %v6222_v33  ;;  %vm2296_vm9 = vcmp.gt.s32.totalorder %v2295_v18, 0  ;;  %v2147_v32 = vclz %v4284_v62  ;;  %v2185_v41 = vand.u32 2139095040, %v6238_v37 }
 0x214   : > { %v2292_v15 = vand.u32 8388607, %v8750_v24  ;;  %v2036_v38 = vadd.s32 %v2035_v4, %v2031_v31  ;;  %v2297_v1 = vsel %vm2296_vm9, %v2295_v18, 0  ;;  %4718 = vsinq.f32 %v6168_v9 }
 0x215   : > { %v6260_v8 = vsel %vm6213_vm2, %v5742_v20, %v1649_v27  ;;  %v1852_v25 = vcvt.s32.f32 %v1845_v30  ;;  %v2299_v12 = vand.u32 31, %v2297_v1  ;;  %v4285_v33 = vadd.s32 4294967294, %v2147_v32  ;;  %v6280_v27 = vpop.f32.mrb[23].mxu0 }
 0x216   : > { %v2037_v3 = vadd.s32 536870912, %v2036_v38  ;;  %v6265_v40 = vadd.f32 %v5814_v44, %v5204_v7  ;;  %v2135_v9 = vadd.s32 %v6174_v39, %v6162_v53  ;;  %v2293_v22 = vor.u32 8388608, %v2292_v15 }
 0x217   : > { %v6267_v45 = vmul.f32 %v1852_v25, %v1850_v10  ;;  %v2300_v60 = vsub.s32 32, %v2299_v12  ;;  %vm4286_vm11 = vcmp.lt.s32.totalorder %v4285_v33, 0  ;;  %v6273_v17 = vshrl.u32 %v2297_v1, 5 }
 0x218   : > { %8751 = vst [vmem:[#allocation67_spill] sm:$0xff] %v6265_v40  ;;  %v6271_v19 = vshrl.u32 %v2037_v3, 30  ;;  %v2186_v6 = vshrl.u32 %v2185_v41, 23  ;;  %v6275_v29 = vsel %vm4286_vm11, 0, %v4285_v33  ;;  %v2302_v61 = vshll.u32 %v8661_v35, %v2299_v12 }
 0x219   : > { %v2303_v7 = vshrl.u32 %v8664_v0, %v2300_v60  ;;  %v2306_v44 = vshrl.u32 %v8665_v51, %v2300_v60  ;;  %v6282_v30 = vpop.eup %4716  ;;  %v2305_v39 = vshll.u32 %v8664_v0, %v2299_v12  ;;  %v2308_v5 = vshll.u32 %v8665_v51, %v2299_v12 }
 0x21a   : > { %8752 = vst [vmem:[#allocation68_spill] sm:$0xff] %v6271_v19  ;;  %8753 = vst [vmem:[#allocation69_spill] sm:$0xff] %v6282_v30  ;;  %v2039_v53 = vshll.u32 %v6271_v19, 30  ;;  %v2311_v18 = vshll.u32 %v8666_v14, %v2299_v12  ;;  %v2155_v62 = vsub.s32 4294967266, %v6275_v29  ;;  %v2309_v31 = vshrl.u32 %v8666_v14, %v2300_v60 }
 0x21b   : > { %v2312_v10 = vshrl.u32 %v8667_v46, %v2300_v60  ;;  %v2314_v4 = vshll.u32 %v8667_v46, %v2299_v12  ;;  %v2304_v15 = vor.u32 %v2303_v7, %v2302_v61  ;;  %v2307_v32 = vor.u32 %v2306_v44, %v2305_v39 }
 0x21c   : > { %v6292_v24 = vsub.s32 %v2036_v38, %v2039_v53  ;;  %v2315_v1 = vshrl.u32 %v8669_v28, %v2300_v60  ;;  %v2310_v41 = vor.u32 %v2309_v31, %v2308_v5  ;;  %v2333_v33 = vshll.u32 %v2293_v22, 8 }
 0x21d   : > { %v2313_v25 = vor.u32 %v2312_v10, %v2311_v18  ;;  %v8480_v3 = vand.u32 2147483647, %v6238_v37  ;;  %v2151_v16 = vsub.s32 32, %v6275_v29  ;;  %v2494_v30 = vand.u32 2139095040, %v6265_v40 }
 0x21e   : > { %v2042_v49 = vsub.s32 0, %v6292_v24  ;;  %v2316_v19 = vor.u32 %v2315_v1, %v2314_v4  ;;  %v6299_v26 = vpop.eup %4718  ;;  %v2156_v38 = vadd.s32 127, %v2155_v62  ;;  %v2301_v12 = vshrl.u32 %v8661_v35, %v2300_v60 }
 0x21f   : > { %8754 = vst [vmem:[#allocation70_spill] sm:$0xff] %v6299_v26  ;;  %vm2317_vm3 = vcmp.lt.s32.totalorder %v6273_v17, 1  ;;  %v4287_v61 = vadd.s32 4294967169, %v2186_v6  ;;  %vm2319_vm7 = vcmp.lt.s32.totalorder %v6273_v17, 3  ;;  %vm2320_vm9 = vcmp.lt.s32.totalorder %v6273_v17, 4 }
 0x220   : > { %v4280_v7 = vmin.u32 %v2042_v49, %v6292_v24  ;;  %v2325_v22 = vsel %vm2317_vm3, %v2304_v15, %v2307_v32  ;;  %v2322_v44 = vsel %vm2320_vm9, %v2310_v41, 2102212464  ;;  %v2326_v53 = vsel %vm2320_vm9, %v2313_v25, 920167782 }
 0x221   : > { %v2329_v39 = vsel %vm2317_vm3, %v2307_v32, %v2310_v41  ;;  %v2330_v5 = vsel %vm2320_vm9, %v2316_v19, 1326507024  ;;  %v2153_v18 = vshrl.u32 %v2135_v9, %v2151_v16  ;;  %vm2318_vm11 = vcmp.lt.s32.totalorder %v6273_v17, 2 }
 0x222   : > { %v2044_v60 = vclz %v4280_v7  ;;  %v2327_v49 = vsel %vm2319_vm7, %v2310_v41, %v2326_v53  ;;  %v2157_v6 = vshll.u32 %v2156_v38, 23  ;;  %v2331_v31 = vsel %vm2319_vm7, %v2313_v25, %v2330_v5 }
 0x223   : > { %v2328_v62 = vsel %vm2318_vm11, %v2325_v22, %v2327_v49  ;;  %v2192_v10 = vadd.s32 1, %v4287_v61  ;;  %v2321_v1 = vsel %vm2317_vm3, %v2301_v12, %v2304_v15  ;;  %v2323_v16 = vsel %vm2319_vm7, %v2307_v32, %v2322_v44 }
 0x224   : > { %v4281_v4 = vadd.s32 4294967294, %v2044_v60  ;;  %v2332_v9 = vsel %vm2318_vm11, %v2329_v39, %v2331_v31  ;;  %v6326_v38 = vmul.u32.u64.low %v2333_v33, %v2328_v62  ;;  %v6327_v7 = vmul.u32.u64.high %v2333_v33, %v2328_v62, %v6326_v38 }
 0x225   : > { %v6323_v19 = vmul.u32.u64.low %v2333_v33, %v2332_v9  ;;  %v6324_v41 = vmul.u32.u64.high %v2333_v33, %v2332_v9, %v6323_v19  ;;  %v2152_v25 = vshll.u32 %v6225_v63, %v6275_v29  ;;  %v2189_v15 = vand.u32 8388607, %v8480_v3 }
 0x226   : > { %vm4282_vm9 = vcmp.lt.s32.totalorder %v4281_v4, 0  ;;  %vm2193_vm3 = vcmp.gt.s32.totalorder %v2192_v10, 0  ;;  %v2032_v32 = vadd.s32 %v6221_v2, %v6229_v11  ;;  %v2324_v61 = vsel %vm2318_vm11, %v2321_v1, %v2323_v16  ;;  %v8755_v16 = vld [vmem:[#allocation5_spill] sm:$0xff] }
 0x227   : > { %v2047_v12 = vsel %vm4282_vm9, 0, %v4281_v4  ;;  %v2495_v22 = vshrl.u32 %v2494_v30, 23  ;;  %v2154_v44 = vor.u32 %v2153_v18, %v2152_v25  ;;  %v2194_v5 = vsel %vm2193_vm3, %v2192_v10, 0 }
 0x228   : > { %v2048_v53 = vsub.s32 32, %v2047_v12  ;;  %v2052_v39 = vsub.s32 4294967266, %v2047_v12  ;;  %v2158_v63 = vor.u32 4788187, %v2157_v6  ;;  %vm2342_vm7 = vc.u32 %v6324_v41, %v6326_v38 }
 0x229   : > { %v2343_v29 = vadd.s32 1, %v6327_v7  ;;  %v2340_v2 = vmul.u32 %v2333_v33, %v2324_v61  ;;  %v2190_v11 = vor.u32 8388608, %v2189_v15  ;;  %v2049_v17 = vshll.u32 %v6292_v24, %v2047_v12  ;;  %v6350_v33 = vpop.f32.mrb[24].mxu0 }
 0x22a   : > { %v2050_v49 = vshrl.u32 %v2032_v32, %v2048_v53  ;;  %v2053_v62 = vadd.s32 127, %v2052_v39  ;;  %v2196_v18 = vand.u32 31, %v2194_v5  ;;  %v4299_v31 = vadd.s32 4294967169, %v2495_v22 }
 0x22b   : > { %v2344_v30 = vsel %vm2342_vm7, %v2343_v29, %v6327_v7  ;;  %v2161_v4 = vcvt.s32.f32 %v2154_v44  ;;  %v6346_v6 = vadd.f32 %v5849_v42, %v8755_v16  ;;  %v2159_v9 = vand.u32 2147483647, %v2158_v63 }
 0x22c   : > { %v2054_v10 = vshll.u32 %v2053_v62, 23  ;;  %v2345_v1 = vadd.s32 %v2344_v30, %v2340_v2  ;;  %v2051_v19 = vor.u32 %v2050_v49, %v2049_v17  ;;  %v6348_v25 = vshrl.u32 %v2194_v5, 5 }
 0x22d   : > { %v2197_v32 = vsub.s32 32, %v2196_v18  ;;  %v2199_v24 = vshll.u32 %v8661_v35, %v2196_v18  ;;  %v2202_v7 = vshll.u32 %v8664_v0, %v2196_v18  ;;  %v2205_v12 = vshll.u32 %v8665_v51, %v2196_v18 }
 0x22e   : > { %v2346_v15 = vadd.s32 536870912, %v2345_v1  ;;  %vm8485_vm11 = vcmp.lt.s32.totalorder %v5839_v47, 0  ;;  %v2055_v61 = vor.u32 4788187, %v2054_v10  ;;  %v2208_v39 = vshll.u32 %v8666_v14, %v2196_v18 }
 0x22f   : > { %v2200_v42 = vshrl.u32 %v8664_v0, %v2197_v32  ;;  %v2203_v22 = vshrl.u32 %v8665_v51, %v2197_v32  ;;  %v2206_v44 = vshrl.u32 %v8666_v14, %v2197_v32  ;;  %v2209_v5 = vshrl.u32 %v8667_v46, %v2197_v32 }
 0x230   : > { %v6359_v53 = vshrl.u32 %v2346_v15, 30  ;;  %v2211_v63 = vshll.u32 %v8667_v46, %v2196_v18  ;;  %v2212_v2 = vshrl.u32 %v8669_v28, %v2197_v32  ;;  %vm8486_vm9 = vcmp.lt.s32.totalorder %v5909_v52, 0 }
 0x231   : > { %v2201_v29 = vor.u32 %v2200_v42, %v2199_v24  ;;  %v2204_v49 = vor.u32 %v2203_v22, %v2202_v7  ;;  %v2207_v62 = vor.u32 %v2206_v44, %v2205_v12  ;;  %v2162_v17 = vmul.f32 %v2161_v4, %v2159_v9 }
 0x232   : > { %8756 = vst [vmem:[#allocation5_spill] sm:$0xff] %v6359_v53  ;;  %v2348_v30 = vshll.u32 %v6359_v53, 30  ;;  %v2210_v10 = vor.u32 %v2209_v5, %v2208_v39  ;;  %v6367_v16 = vshll.u32 %v2190_v11, 8  ;;  %v2058_v15 = vcvt.s32.f32 %v2051_v19 }
 0x233   : > { %v2213_v3 = vor.u32 %v2212_v2, %v2211_v63  ;;  %vm2214_vm3 = vcmp.lt.s32.totalorder %v6348_v25, 1  ;;  %v2501_v60 = vadd.s32 1, %v4299_v31  ;;  %v8757_v18 = vand.u32 2147483647, %v5839_v47 }
 0x234   : > { %v8758_v24 = vmov 0  ;;  %v2056_v7 = vand.u32 2147483647, %v2055_v61  ;;  %v6376_v12 = vsub.s32 %v2345_v1, %v2348_v30  ;;  %vm2217_vm6 = vcmp.lt.s32.totalorder %v6348_v25, 4 }
 0x235   : > { %vm6372_vm7 = vcmp.le.f32.partialorder %v8757_v18, 0.7853982  ;;  %v2222_v11 = vsel %vm2214_vm3, %v2201_v29, %v2204_v49  ;;  %v8761_v4 = vand.u32 2147483647, %v5909_v52  ;;  %v8762_v9 = vmov 0 }
 0x236   : > { %v8759_v24 = vsel %vm6372_vm7, 4294967295, %v8758_v24  ;;  %vm2216_vm12 = vcmp.lt.s32.totalorder %v6348_v25, 3  ;;  %v2223_v31 = vsel %vm2217_vm6, %v2210_v10, 920167782  ;;  %v2226_v19 = vsel %vm2214_vm3, %v2204_v49, %v2207_v62 }
 0x237   : > { %8760 = vst [vmem:[#allocation71_spill] sm:$0xff] %v8759_v24  ;;  %vm6383_vm14 = vcmp.le.f32.partialorder %v8761_v4, 0.7853982  ;;  %v2227_v61 = vsel %vm2217_vm6, %v2213_v3, 1326507024  ;;  %v2351_v1 = vsub.s32 0, %v6376_v12  ;;  %v2224_v22 = vsel %vm2216_vm12, %v2207_v62, %v2223_v31 }
 0x238   : > { %v8763_v9 = vsel %vm6383_vm14, 4294967295, %v8762_v9  ;;  %vm2215_vm4 = vcmp.lt.s32.totalorder %v6348_v25, 2  ;;  %v2219_v42 = vsel %vm2217_vm6, %v2207_v62, 2102212464  ;;  %v2198_v44 = vshrl.u32 %v8661_v35, %v2197_v32 }
 0x239   : > { %8764 = vst [vmem:[#allocation72_spill] sm:$0xff] %v8763_v9  ;;  %v2225_v39 = vsel %vm2215_vm4, %v2222_v11, %v2224_v22  ;;  %v2228_v5 = vsel %vm2216_vm12, %v2210_v10, %v2227_v61  ;;  %v2391_v63 = vand.u32 2139095040, %v6346_v6  ;;  %v8765_v3 = vxor.u32 2147483648, %v6246_v57 }
 0x23a   : > { %v2059_v30 = vmul.f32 %v2058_v15, %v2056_v7  ;;  %v4292_v18 = vmin.u32 %v2351_v1, %v6376_v12  ;;  %v2229_v32 = vsel %vm2215_vm4, %v2226_v19, %v2228_v5  ;;  %v8766_v62 = vand.u32 2147483647, %v5940_v48  ;;  %v8773_v5 = vld [vmem:[#allocation7_spill] sm:$0xff] }
 0x23b   : > { %v1958_v2 = vsel %vm8485_vm11, %v8765_v3, %v6246_v57  ;;  %v8767_v11 = vmov 0  ;;  %v2218_v10 = vsel %vm2214_vm3, %v2198_v44, %v2201_v29  ;;  %v2220_v4 = vsel %vm2216_vm12, %v2204_v49, %v2219_v42  ;;  %v8771_v49 = vld [vmem:[#allocation6_spill] sm:$0xff]  ;;  %v8774_v3 = vld [vmem:[#allocation8_spill] sm:$0xff] }
 0x23c   : > { %vm6410_vm6 = vcmp.le.f32.partialorder %v8766_v62, 0.7853982  ;;  %v6419_v57 = vmul.u32.u64.low %v6367_v16, %v2229_v32  ;;  %v6420_v15 = vmul.u32.u64.high %v6367_v16, %v2229_v32, %v6419_v57  ;;  %v2353_v7 = vclz %v4292_v18 }
 0x23d   : > { %v8768_v11 = vsel %vm6410_vm6, 4294967295, %v8767_v11  ;;  %v6423_v31 = vmul.u32.u64.low %v6367_v16, %v2225_v39  ;;  %v6424_v19 = vmul.u32.u64.high %v6367_v16, %v2225_v39, %v6423_v31  ;;  %v8770_v61 = vxor.u32 2147483648, %v6267_v45 }
 0x23e   : > { %8769 = vst [vmem:[#allocation73_spill] sm:$0xff] %v8768_v11  ;;  %v2163_v1 = vxor.u32 2147483648, %v2162_v17  ;;  %v2392_v22 = vshrl.u32 %v2391_v63, 23  ;;  %v6434_v42 = vadd.f32 %v5911_v55, %v8771_v49  ;;  %4720 = vcosq.f32 %v6260_v8 }
 0x23f   : > { %v1855_v29 = vsel %vm8486_vm9, %v8770_v61, %v6267_v45  ;;  %vm8488_vm12 = vcmp.lt.s32.totalorder %v5940_v48, 0  ;;  %v4293_v44 = vadd.s32 4294967294, %v2353_v7  ;;  %v2221_v39 = vsel %vm2215_vm4, %v2218_v10, %v2220_v4 }
 0x240   : > { %8772 = vst [vmem:[#allocation6_spill] sm:$0xff] %v6434_v42  ;;  %vm8518_vm3 = vcmp.lt.s32.totalorder %v8773_v5, 0  ;;  %vm8519_vm11 = vcmp.lt.s32.totalorder %v8774_v3, 0  ;;  %v1961_v45 = vsel %vm6372_vm7, %v5839_v47, %v1958_v2  ;;  %v2060_v63 = vxor.u32 2147483648, %v2059_v30 }
 0x241   : > { %vm2239_vm9 = vc.u32 %v6420_v15, %v6423_v31  ;;  %vm8775_vm10 = vcmp.gt.s32.totalorder %v2501_v60, 0  ;;  %4722 = vsinq.f32 %v6260_v8  ;;  %v1858_v25 = vsel %vm6383_vm14, %v5909_v52, %v1855_v29 }
 0x242   : > { %v2503_v55 = vsel %vm8775_vm10, %v2501_v60, 0  ;;  %vm4294_vm4 = vcmp.lt.s32.totalorder %v4293_v44, 0  ;;  %v2240_v18 = vadd.s32 1, %v6424_v19  ;;  %v2164_v32 = vsel %vm8488_vm12, %v2163_v1, %v2162_v17 }
 0x243   : > { %v2237_v2 = vmul.u32 %v6367_v16, %v2221_v39  ;;  %v4295_v62 = vadd.s32 4294967169, %v2392_v22  ;;  %v2700_v10 = vand.u32 2139095040, %v6434_v42  ;;  %4724 = vcosq.f32 %v1961_v45 }
 0x244   : > { %vm8517_vm10 = vcmp.lt.s32.totalorder %v6061_v59, 0  ;;  %v2241_v8 = vsel %vm2239_vm9, %v2240_v18, %v6424_v19  ;;  %v6459_v60 = vand.u32 31, %v2503_v55  ;;  %4726 = vsinq.f32 %v1961_v45  ;;  %v6479_v45 = vpop.f32.mrb[25].mxu0 }
 0x245   : > { %v2061_v4 = vsel %vm8517_vm10, %v2060_v63, %v2059_v30  ;;  %v2356_v57 = vsel %vm4294_vm4, 0, %v4293_v44  ;;  %v2242_v7 = vadd.s32 %v2241_v8, %v2237_v2  ;;  %v824_v17 = vxor.u32 2147483648, %v5810_v58  ;;  %v8784_v2 = vld [vmem:[#allocation28_spill] sm:$0xff] }
 0x246   : > { %8776 = vst [vmem:[#allocation74_spill] sm:$0xff] %v6459_v60  ;;  %4728 = vcosq.f32 %v1858_v25  ;;  %v2167_v16 = vsel %vm6410_vm6, %v5940_v48, %v2164_v32  ;;  %v2701_v61 = vshrl.u32 %v2700_v10, 23  ;;  %v8777_v29 = vand.u32 2147483647, %v6061_v59 }
 0x247   : > { %4730 = vsinq.f32 %v1858_v25  ;;  %v8778_v19 = vmov 0  ;;  %v2243_v1 = vadd.s32 536870912, %v2242_v7  ;;  %v2398_v22 = vadd.s32 1, %v4295_v62 }
 0x248   : > { %vm6469_vm9 = vcmp.le.f32.partialorder %v8777_v29, 0.7853982  ;;  %v2357_v49 = vsub.s32 32, %v2356_v57  ;;  %v6477_v44 = vsub.s32 32, %v6459_v60  ;;  %v4307_v39 = vadd.s32 4294967169, %v2701_v61  ;;  %v6484_v32 = vpop.eup %4720 }
 0x249   : > { %v8779_v19 = vsel %vm6469_vm9, 4294967295, %v8778_v19  ;;  %v2064_v30 = vsel %vm6469_vm9, %v6061_v59, %v2061_v4  ;;  %4732 = vcosq.f32 %v2167_v16  ;;  %v2361_v63 = vsub.s32 4294967266, %v2356_v57  ;;  %8783 = vst [vmem:[#allocation78_spill] sm:$0xff] %v6484_v32 }
 0x24a   : > { %8780 = vst [vmem:[#allocation75_spill] sm:$0xff] %v8779_v19  ;;  %8781 = vst [vmem:[#allocation76_spill] sm:$0xff] %v6477_v44  ;;  %v6481_v25 = vshrl.u32 %v2243_v1, 30  ;;  %v8785_v62 = vxor.u32 2147483648, %v8784_v2  ;;  %v6496_v8 = vsel %vm8519_vm11, %v824_v17, %v5810_v58  ;;  %4734 = vsinq.f32 %v2167_v16 }
 0x24b   : > { %8787 = vst [vmem:[#allocation79_spill] sm:$0xff] %v6496_v8  ;;  %v2341_v4 = vadd.s32 %v6326_v38, %v6324_v41  ;;  %4736 = vcosq.f32 %v2064_v30  ;;  %vm2399_vm4 = vcmp.gt.s32.totalorder %v2398_v22, 0  ;;  %v2707_v29 = vadd.s32 1, %v4307_v39  ;;  %v6501_v1 = vpop.eup %4722 }
 0x24c   : > { %8782 = vst [vmem:[#allocation77_spill] sm:$0xff] %v6481_v25  ;;  %v6491_v10 = vsel %vm8518_vm3, %v8785_v62, %v8784_v2  ;;  %v2245_v61 = vshll.u32 %v6481_v25, 30  ;;  %8788 = vst [vmem:[#allocation80_spill] sm:$0xff] %v6501_v1  ;;  %4738 = vsinq.f32 %v2064_v30  ;;  %v2517_v2 = vshll.u32 %v8666_v14, %v6459_v60 }
 0x24d   : > { %8786 = vst [vmem:[#allocation28_spill] sm:$0xff] %v6491_v10  ;;  %v2359_v18 = vshrl.u32 %v2341_v4, %v2357_v49  ;;  %v2518_v58 = vshrl.u32 %v8667_v46, %v6477_v44  ;;  %v2362_v17 = vadd.s32 127, %v2361_v63  ;;  %v8789_v41 = vand.u32 2147483647, %v6434_v42  ;;  %v6513_v62 = vpop.eup %4724  ;;  %v8791_v4 = vld [vmem:[#allocation10_spill] sm:$0xff] }
 0x24e   : > { %v6507_v16 = vsub.s32 %v2242_v7, %v2245_v61  ;;  %vm2708_vm12 = vcmp.gt.s32.totalorder %v2707_v29, 0  ;;  %8790 = vst [vmem:[#allocation81_spill] sm:$0xff] %v6513_v62  ;;  %v2358_v39 = vshll.u32 %v6376_v12, %v2356_v57  ;;  %v6516_v30 = vsel %vm2399_vm4, %v2398_v22, 0  ;;  %v6522_v25 = vpop.eup %4726 }
 0x24f   : > { %v6511_v38 = vand.u32 8388607, %v8789_v41  ;;  %v2709_v49 = vsel %vm2708_vm12, %v2707_v29, 0  ;;  %v6520_v53 = vadd.f32 %v5949_v54, %v8791_v4  ;;  %8792 = vst [vmem:[#allocation10_spill] sm:$0xff] %v6522_v25  ;;  %v6525_v63 = vshrl.u32 %v2503_v55, 5 }
 0x250   : > { %v2248_v7 = vsub.s32 0, %v6507_v16  ;;  %v6529_v61 = vshll.u32 %v8667_v46, %v6459_v60  ;;  %v2711_v41 = vand.u32 31, %v2709_v49  ;;  %v6531_v11 = vpop.eup %4728  ;;  %v6533_v12 = vor.u32 %v2359_v18, %v2358_v39 }
 0x251   : > { %8793 = vst [vmem:[#allocation82_spill] sm:$0xff] %v6525_v63  ;;  %8795 = vst [vmem:[#allocation84_spill] sm:$0xff] %v6531_v11  ;;  %v6537_v57 = vadd.s32 %v6423_v31, %v6420_v15  ;;  %v6539_v54 = vor.u32 %v2518_v58, %v2517_v2  ;;  %v6543_v22 = vshrl.u32 %v8669_v28, %v6477_v44  ;;  %v6545_v55 = vpop.eup %4730  ;;  %v2363_v29 = vshll.u32 %v2362_v17, 23 }
 0x252   : > { %8794 = vst [vmem:[#allocation83_spill] sm:$0xff] %v6529_v61  ;;  %8798 = vst [vmem:[#allocation87_spill] sm:$0xff] %v6545_v55  ;;  %v4288_v4 = vmin.u32 %v2248_v7, %v6507_v16  ;;  %v6549_v48 = vand.u32 31, %v6516_v30  ;;  %v2712_v18 = vsub.s32 32, %v2711_v41  ;;  %v2705_v39 = vor.u32 8388608, %v6511_v38 }
 0x253   : > { %8796 = vst [vmem:[#allocation85_spill] sm:$0xff] %v6539_v54  ;;  %8797 = vst [vmem:[#allocation86_spill] sm:$0xff] %v6543_v22  ;;  %v6552_v19 = vshrl.u32 %v2709_v49, 5  ;;  %v2714_v15 = vshll.u32 %v8661_v35, %v2711_v41  ;;  %v2597_v31 = vand.u32 2139095040, %v6520_v53  ;;  %v6556_v2 = vpop.eup %4732  ;;  %v2717_v17 = vshll.u32 %v8664_v0, %v2711_v41 }
 0x254   : > { %8799 = vst [vmem:[#allocation88_spill] sm:$0xff] %v6556_v2  ;;  %v2250_v58 = vclz %v4288_v4  ;;  %v2715_v59 = vshrl.u32 %v8664_v0, %v2712_v18  ;;  %v2720_v7 = vshll.u32 %v8665_v51, %v2711_v41  ;;  %v6561_v62 = vpop.eup %4734  ;;  %v2718_v25 = vshrl.u32 %v8665_v51, %v2712_v18 }
 0x255   : > { %8800 = vst [vmem:[#allocation89_spill] sm:$0xff] %v6561_v62  ;;  %v2721_v38 = vshrl.u32 %v8666_v14, %v2712_v18  ;;  %v2723_v49 = vshll.u32 %v8666_v14, %v2711_v41  ;;  %v2724_v24 = vshrl.u32 %v8667_v46, %v2712_v18  ;;  %v6567_v47 = vpop.eup %4736  ;;  %v2726_v11 = vshll.u32 %v8667_v46, %v2711_v41 }
 0x256   : > { %8801 = vst [vmem:[#allocation90_spill] sm:$0xff] %v6567_v47  ;;  %v4289_v2 = vadd.s32 4294967294, %v2250_v58  ;;  %v2716_v4 = vor.u32 %v2715_v59, %v2714_v15  ;;  %v2727_v55 = vshrl.u32 %v8669_v28, %v2712_v18  ;;  %v6571_v9 = vpop.eup %4738  ;;  %v2364_v52 = vor.u32 4788187, %v2363_v29 }
 0x257   : > { %8802 = vst [vmem:[#allocation91_spill] sm:$0xff] %v6571_v9  ;;  %vm8529_vm12 = vcmp.lt.s32.totalorder %v6525_v63, 4  ;;  %v2719_v62 = vor.u32 %v2718_v25, %v2717_v17  ;;  %v2722_v26 = vor.u32 %v2721_v38, %v2720_v7  ;;  %v2725_v32 = vor.u32 %v2724_v24, %v2723_v49  ;;  %v6590_v49 = vpop.f32.mrb[26].mxu0 }
 0x258   : > { %v2367_v1 = vcvt.s32.f32 %v6533_v12  ;;  %vm4290_vm4 = vcmp.lt.s32.totalorder %v4289_v2, 0  ;;  %v2728_v20 = vor.u32 %v2727_v55, %v2726_v11  ;;  %v2713_v59 = vshrl.u32 %v8661_v35, %v2712_v18 }
 0x259   : > { %v6576_v58 = vsel %vm4290_vm4, 0, %v4289_v2  ;;  %vm2729_vm10 = vcmp.lt.s32.totalorder %v6552_v19, 1  ;;  %v2598_v41 = vshrl.u32 %v2597_v31, 23  ;;  %vm2731_vm3 = vcmp.lt.s32.totalorder %v6552_v19, 3 }
 0x25a   : > { %v2258_v29 = vsub.s32 4294967266, %v6576_v58  ;;  %vm2732_vm11 = vcmp.lt.s32.totalorder %v6552_v19, 4  ;;  %v2737_v24 = vsel %vm2729_vm10, %v2716_v4, %v2719_v62  ;;  %v2741_v15 = vsel %vm2729_vm10, %v2719_v62, %v2722_v26 }
 0x25b   : > { %v2734_v25 = vsel %vm2732_vm11, %v2722_v26, 2102212464  ;;  %v2738_v12 = vsel %vm2732_vm11, %v2725_v32, 920167782  ;;  %v2742_v11 = vsel %vm2732_vm11, %v2728_v20, 1326507024  ;;  %v2733_v17 = vsel %vm2729_vm10, %v2713_v59, %v2716_v4 }
 0x25c   : > { %v2365_v55 = vand.u32 2147483647, %v2364_v52  ;;  %vm2730_vm4 = vcmp.lt.s32.totalorder %v6552_v19, 2  ;;  %v2739_v18 = vsel %vm2731_vm3, %v2722_v26, %v2738_v12  ;;  %v2745_v2 = vshll.u32 %v2705_v39, 8 }
 0x25d   : > { %v2740_v31 = vsel %vm2730_vm4, %v2737_v24, %v2739_v18  ;;  %v2743_v7 = vsel %vm2731_vm3, %v2725_v32, %v2742_v11  ;;  %v4303_v38 = vadd.s32 4294967169, %v2598_v41  ;;  %v2259_v47 = vadd.s32 127, %v2258_v29 }
 0x25e   : > { %v2735_v20 = vsel %vm2731_vm3, %v2719_v62, %v2734_v25  ;;  %v2744_v52 = vsel %vm2730_vm4, %v2741_v15, %v2743_v7  ;;  %v8803_v26 = vand.u32 2147483647, %v6520_v53  ;;  %v6610_v62 = vsel %vm8529_vm12, %v6539_v54, 920167782 }
 0x25f   : > { %v6598_v4 = vmul.u32.u64.low %v2745_v2, %v2744_v52  ;;  %v6599_v59 = vmul.u32.u64.high %v2745_v2, %v2744_v52, %v6598_v4  ;;  %v6601_v24 = vmul.u32.u64.low %v2745_v2, %v2740_v31  ;;  %v6602_v12 = vmul.u32.u64.high %v2745_v2, %v2740_v31, %v6601_v24  ;;  %8804 = vst [vmem:[#allocation92_spill] sm:$0xff] %v6610_v62 }
 0x260   : > { %v2601_v39 = vand.u32 8388607, %v8803_v26  ;;  %v6613_v41 = vsub.s32 32, %v6549_v48  ;;  %v2604_v29 = vadd.s32 1, %v4303_v38  ;;  %v6615_v25 = vmul.f32 %v2367_v1, %v2365_v55 }
 0x261   : > { %v2254_v15 = vsub.s32 32, %v6576_v58  ;;  %v6619_v11 = vshrl.u32 %v6516_v30, 5  ;;  %v2736_v18 = vsel %vm2730_vm4, %v2733_v17, %v2735_v20  ;;  %v2260_v31 = vshll.u32 %v2259_v47, 23  ;;  %v8807_v20 = vld [vmem:[#allocation13_spill] sm:$0xff] }
 0x262   : > { %v6625_v7 = vshll.u32 %v8666_v14, %v6549_v48  ;;  %v6629_v52 = vshll.u32 %v8667_v46, %v6549_v48  ;;  %vm2605_vm11 = vcmp.gt.s32.totalorder %v2604_v29, 0  ;;  %vm2754_vm3 = vc.u32 %v6599_v59, %v6601_v24 }
 0x263   : > { %v2755_v1 = vadd.s32 1, %v6602_v12  ;;  %v2602_v30 = vor.u32 8388608, %v2601_v39  ;;  %v2606_v55 = vsel %vm2605_vm11, %v2604_v29, 0  ;;  %v6636_v19 = vshrl.u32 %v8667_v46, %v6613_v41 }
 0x264   : > { %v6640_v47 = vshrl.u32 %v8669_v28, %v6613_v41  ;;  %v2752_v17 = vmul.u32 %v2745_v2, %v2736_v18  ;;  %v2608_v38 = vand.u32 31, %v2606_v55  ;;  %v2255_v26 = vshll.u32 %v6507_v16, %v6576_v58 }
 0x265   : > { %v2256_v4 = vshrl.u32 %v6537_v57, %v2254_v15  ;;  %v2756_v39 = vsel %vm2754_vm3, %v2755_v1, %v6602_v12  ;;  %v6647_v29 = vor.u32 4788187, %v2260_v31  ;;  %v6651_v10 = vadd.f32 %v6018_v36, %v8805_v56 }
 0x266   : > { %v2757_v32 = vadd.s32 %v2756_v39, %v2752_v17  ;;  %v2609_v9 = vsub.s32 32, %v2608_v38  ;;  %v2607_v5 = vshrl.u32 %v2606_v55, 5  ;;  %v2611_v2 = vshll.u32 %v8661_v35, %v2608_v38 }
 0x267   : > { %8806 = vst [vmem:[#allocation14_spill] sm:$0xff] %v6651_v10  ;;  %v6654_v18 = vshll.u32 %v2602_v30, 8  ;;  %v6658_v16 = vadd.f32 %v6111_v21, %v8807_v20  ;;  %v2614_v12 = vshll.u32 %v8664_v0, %v2608_v38  ;;  %v2617_v15 = vshll.u32 %v8665_v51, %v2608_v38 }
 0x268   : > { %v2758_v57 = vadd.s32 536870912, %v2757_v32  ;;  %v2612_v58 = vshrl.u32 %v8664_v0, %v2609_v9  ;;  %v2615_v31 = vshrl.u32 %v8665_v51, %v2609_v9  ;;  %v2618_v36 = vshrl.u32 %v8666_v14, %v2609_v9 }
 0x269   : > { %8808 = vst [vmem:[#allocation13_spill] sm:$0xff] %v6658_v16  ;;  %v2620_v56 = vshll.u32 %v8666_v14, %v2608_v38  ;;  %v2621_v1 = vshrl.u32 %v8667_v46, %v2609_v9  ;;  %v2623_v21 = vshll.u32 %v8667_v46, %v2608_v38  ;;  %v2624_v17 = vshrl.u32 %v8669_v28, %v2609_v9 }
 0x26a   : > { %v6667_v30 = vshrl.u32 %v2758_v57, 30  ;;  %v2613_v55 = vor.u32 %v2612_v58, %v2611_v2  ;;  %v2616_v20 = vor.u32 %v2615_v31, %v2614_v12  ;;  %v2619_v39 = vor.u32 %v2618_v36, %v2617_v15 }
 0x26b   : > { %v2622_v8 = vor.u32 %v2621_v1, %v2620_v56  ;;  %v2625_v54 = vor.u32 %v2624_v17, %v2623_v21  ;;  %vm2626_vm4 = vcmp.lt.s32.totalorder %v2607_v5, 1  ;;  %v2906_v60 = vand.u32 2139095040, %v6651_v10 }
 0x26c   : > { %8809 = vst [vmem:[#allocation93_spill] sm:$0xff] %v6667_v30  ;;  %v2760_v62 = vshll.u32 %v6667_v30, 30  ;;  %v2610_v57 = vshrl.u32 %v8661_v35, %v2609_v9  ;;  %vm2628_vm11 = vcmp.lt.s32.totalorder %v2607_v5, 3  ;;  %vm2629_vm3 = vcmp.lt.s32.totalorder %v2607_v5, 4 }
 0x26d   : > { %v2634_v38 = vsel %vm2626_vm4, %v2613_v55, %v2616_v20  ;;  %v2631_v58 = vsel %vm2629_vm3, %v2619_v39, 2102212464  ;;  %v2635_v44 = vsel %vm2629_vm3, %v2622_v8, 920167782  ;;  %v2638_v12 = vsel %vm2626_vm4, %v2616_v20, %v2619_v39 }
 0x26e   : > { %v6676_v2 = vsub.s32 %v2757_v32, %v2760_v62  ;;  %vm2627_vm12 = vcmp.lt.s32.totalorder %v2607_v5, 2  ;;  %v2630_v15 = vsel %vm2626_vm4, %v2610_v57, %v2613_v55  ;;  %v2636_v31 = vsel %vm2628_vm11, %v2619_v39, %v2635_v44  ;;  %v6686_v62 = vpop.f32.mrb[27].mxu0 }
 0x26f   : > { %v2639_v36 = vsel %vm2629_vm3, %v2625_v54, 1326507024  ;;  %v8810_v56 = vand.u32 2147483647, %v6109_v43  ;;  %v8811_v1 = vmov 0  ;;  %v2632_v21 = vsel %vm2628_vm11, %v2616_v20, %v2631_v58 }
 0x270   : > { %v2763_v9 = vsub.s32 0, %v6676_v2  ;;  %v2637_v17 = vsel %vm2627_vm12, %v2634_v38, %v2636_v31  ;;  %v2640_v32 = vsel %vm2628_vm11, %v2622_v8, %v2639_v36  ;;  %v2257_v3 = vor.u32 %v2256_v4, %v2255_v26 }
 0x271   : > { %vm6680_vm10 = vcmp.le.f32.partialorder %v8810_v56, 0.7853982  ;;  %v2641_v30 = vsel %vm2627_vm12, %v2638_v12, %v2640_v32  ;;  %v6690_v44 = vmul.u32.u64.low %v6654_v18, %v2637_v17  ;;  %v6691_v54 = vmul.u32.u64.high %v6654_v18, %v2637_v17, %v6690_v44  ;;  %v8818_v56 = vld [vmem:[#allocation19_spill] sm:$0xff] }
 0x272   : > { %v8812_v1 = vsel %vm6680_vm10, 4294967295, %v8811_v1  ;;  %v4308_v55 = vmin.u32 %v2763_v9, %v6676_v2  ;;  %v6696_v39 = vmul.u32.u64.low %v6654_v18, %v2641_v30  ;;  %v6697_v57 = vmul.u32.u64.high %v6654_v18, %v2641_v30, %v6696_v39 }
 0x273   : > { %8813 = vst [vmem:[#allocation94_spill] sm:$0xff] %v8812_v1  ;;  %v2907_v20 = vshrl.u32 %v2906_v60, 23  ;;  %v2262_v38 = vand.u32 2147483647, %v6647_v29  ;;  %v2633_v8 = vsel %vm2627_vm12, %v2630_v15, %v2632_v21  ;;  %v8814_v26 = vand.u32 2147483647, %v6651_v10 }
 0x274   : > { %v2803_v58 = vand.u32 2139095040, %v6658_v16  ;;  %v8815_v12 = vxor.u32 2147483648, %v6615_v25  ;;  %vm8816_vm4 = vcmp.lt.s32.totalorder %v6109_v43, 0  ;;  %v6711_v30 = vor.u32 %v6636_v19, %v6625_v7 }
 0x275   : > { %v2910_v4 = vand.u32 8388607, %v8814_v26  ;;  %v2765_v60 = vclz %v4308_v55  ;;  %v4315_v36 = vadd.s32 4294967169, %v2907_v20  ;;  %v2264_v29 = vcvt.s32.f32 %v2257_v3 }
 0x276   : > { %v2370_v31 = vsel %vm8816_vm4, %v8815_v12, %v6615_v25  ;;  %8817 = vst [vmem:[#allocation95_spill] sm:$0xff] %v6711_v30  ;;  %v2652_v5 = vadd.s32 1, %v6691_v54  ;;  %v2804_v15 = vshrl.u32 %v2803_v58, 23  ;;  %v6716_v9 = vadd.f32 %v6195_v50, %v8818_v56 }
 0x277   : > { %v4309_v21 = vadd.s32 4294967294, %v2765_v60  ;;  %v2649_v17 = vmul.u32 %v6654_v18, %v2633_v8  ;;  %vm2651_vm12 = vc.u32 %v6697_v57, %v6690_v44  ;;  %v2913_v25 = vadd.s32 1, %v4315_v36 }
 0x278   : > { %8819 = vst [vmem:[#allocation19_spill] sm:$0xff] %v6716_v9  ;;  %v6721_v32 = vmul.f32 %v2264_v29, %v2262_v38  ;;  %v2653_v7 = vsel %vm2651_vm12, %v2652_v5, %v6691_v54  ;;  %v2911_v19 = vor.u32 8388608, %v2910_v4  ;;  %v8532_v3 = vand.u32 2147483647, %v6658_v16  ;;  %v8820_v4 = vld [vmem:[#allocation23_spill] sm:$0xff] }
 0x279   : > { %vm4310_vm11 = vcmp.lt.s32.totalorder %v4309_v21, 0  ;;  %v2654_v55 = vadd.s32 %v2653_v7, %v2649_v17  ;;  %vm2914_vm3 = vcmp.gt.s32.totalorder %v2913_v25, 0  ;;  %v4311_v39 = vadd.s32 4294967169, %v2804_v15 }
 0x27a   : > { %v6728_v50 = vsel %vm6680_vm10, %v6109_v43, %v2370_v31  ;;  %v2768_v20 = vsel %vm4310_vm11, 0, %v4309_v21  ;;  %v2915_v38 = vsel %vm2914_vm3, %v2913_v25, 0  ;;  %v2753_v54 = vadd.s32 %v6601_v24, %v6599_v59 }
 0x27b   : > { %v2773_v8 = vsub.s32 4294967266, %v2768_v20  ;;  %v2655_v26 = vadd.s32 536870912, %v2654_v55  ;;  %v6736_v58 = vadd.f32 %v6280_v27, %v8820_v4  ;;  %v2917_v60 = vand.u32 31, %v2915_v38 }
 0x27c   : > { %v6741_v31 = vand.u32 8388607, %v8532_v3  ;;  %v6746_v15 = vshll.u32 %v2911_v19, 8  ;;  %v2810_v59 = vadd.s32 1, %v4311_v39  ;;  %v2769_v24 = vsub.s32 32, %v2768_v20 }
 0x27d   : > { %v2774_v29 = vadd.s32 127, %v2773_v8  ;;  %v6744_v5 = vshrl.u32 %v2655_v26, 30  ;;  %v2770_v56 = vshll.u32 %v6676_v2, %v2768_v20  ;;  %v2916_v27 = vshrl.u32 %v2915_v38, 5 }
 0x27e   : > { %v2918_v21 = vsub.s32 32, %v2917_v60  ;;  %v2920_v25 = vshll.u32 %v8661_v35, %v2917_v60  ;;  %v2923_v7 = vshll.u32 %v8664_v0, %v2917_v60  ;;  %v2926_v4 = vshll.u32 %v8665_v51, %v2917_v60 }
 0x27f   : > { %8821 = vst [vmem:[#allocation23_spill] sm:$0xff] %v6744_v5  ;;  %v2657_v17 = vshll.u32 %v6744_v5, 30  ;;  %v2775_v3 = vshll.u32 %v2774_v29, 23  ;;  %v2929_v2 = vshll.u32 %v8666_v14, %v2917_v60  ;;  %v2771_v38 = vshrl.u32 %v2753_v54, %v2769_v24 }
 0x280   : > { %v2921_v8 = vshrl.u32 %v8664_v0, %v2918_v21  ;;  %v2924_v19 = vshrl.u32 %v8665_v51, %v2918_v21  ;;  %v2927_v39 = vshrl.u32 %v8666_v14, %v2918_v21  ;;  %v2930_v20 = vshrl.u32 %v8667_v46, %v2918_v21 }
 0x281   : > { %v6756_v26 = vsub.s32 %v2654_v55, %v2657_v17  ;;  %v2932_v43 = vshll.u32 %v8667_v46, %v2917_v60  ;;  %v2933_v5 = vshrl.u32 %v8669_v28, %v2918_v21  ;;  %v2776_v40 = vor.u32 4788187, %v2775_v3 }
 0x282   : > { %v2922_v36 = vor.u32 %v2921_v8, %v2920_v25  ;;  %v2925_v18 = vor.u32 %v2924_v19, %v2923_v7  ;;  %v2928_v12 = vor.u32 %v2927_v39, %v2926_v4  ;;  %v2931_v29 = vor.u32 %v2930_v20, %v2929_v2 }
 0x283   : > { %v2660_v1 = vsub.s32 0, %v6756_v26  ;;  %v2919_v55 = vshrl.u32 %v8661_v35, %v2918_v21  ;;  %vm2935_vm12 = vcmp.lt.s32.totalorder %v2916_v27, 1  ;;  %vm2936_vm11 = vcmp.lt.s32.totalorder %v2916_v27, 2 }
 0x284   : > { %v2934_v63 = vor.u32 %v2933_v5, %v2932_v43  ;;  %vm2937_vm3 = vcmp.lt.s32.totalorder %v2916_v27, 3  ;;  %vm2938_vm4 = vcmp.lt.s32.totalorder %v2916_v27, 4  ;;  %v2943_v25 = vsel %vm2935_vm12, %v2922_v36, %v2925_v18 }
 0x285   : > { %v4304_v17 = vmin.u32 %v2660_v1, %v6756_v26  ;;  %v2939_v54 = vsel %vm2935_vm12, %v2919_v55, %v2922_v36  ;;  %v2940_v24 = vsel %vm2938_vm4, %v2928_v12, 2102212464  ;;  %v2944_v7 = vsel %vm2938_vm4, %v2931_v29, 920167782 }
 0x286   : > { %v2941_v8 = vsel %vm2937_vm3, %v2925_v18, %v2940_v24  ;;  %v2945_v60 = vsel %vm2937_vm3, %v2928_v12, %v2944_v7  ;;  %v2947_v19 = vsel %vm2935_vm12, %v2925_v18, %v2928_v12  ;;  %v2772_v3 = vor.u32 %v2771_v38, %v2770_v56  ;;  %v6778_v18 = vpop.f32.mrb[28].mxu0 }
 0x287   : > { %v2662_v4 = vclz %v4304_v17  ;;  %v2946_v21 = vsel %vm2936_vm11, %v2943_v25, %v2945_v60  ;;  %v2948_v39 = vsel %vm2938_vm4, %v2934_v63, 1326507024  ;;  %vm8822_vm10 = vcmp.gt.s32.totalorder %v2810_v59, 0 }
 0x288   : > { %v2812_v2 = vsel %vm8822_vm10, %v2810_v59, 0  ;;  %v2777_v1 = vand.u32 2147483647, %v2776_v40  ;;  %v2949_v5 = vsel %vm2937_vm3, %v2931_v29, %v2948_v39  ;;  %v2808_v20 = vor.u32 8388608, %v6741_v31 }
 0x289   : > { %v4305_v43 = vadd.s32 4294967294, %v2662_v4  ;;  %v2942_v36 = vsel %vm2936_vm11, %v2939_v54, %v2941_v8  ;;  %v2950_v55 = vsel %vm2936_vm11, %v2947_v19, %v2949_v5  ;;  %v6784_v12 = vshrl.u32 %v2812_v2, 5 }
 0x28a   : > { %v6774_v17 = vmul.u32.u64.low %v6746_v15, %v2946_v21  ;;  %v6775_v24 = vmul.u32.u64.high %v6746_v15, %v2946_v21, %v6774_v17  ;;  %v6781_v63 = vmul.u32.u64.low %v6746_v15, %v2950_v55  ;;  %v6782_v40 = vmul.u32.u64.high %v6746_v15, %v2950_v55, %v6781_v63 }
 0x28b   : > { %vm4306_vm4 = vcmp.lt.s32.totalorder %v4305_v43, 0  ;;  %v2779_v59 = vcvt.s32.f32 %v2772_v3  ;;  %v2650_v31 = vadd.s32 %v6690_v44, %v6697_v57  ;;  %v2814_v27 = vand.u32 31, %v2812_v2 }
 0x28c   : > { %v2665_v56 = vsel %vm4306_vm4, 0, %v4305_v43  ;;  %v6788_v54 = vshll.u32 %v2808_v20, 8  ;;  %v3112_v25 = vand.u32 2139095040, %v6716_v9  ;;  %v2958_v4 = vmul.u32 %v6746_v15, %v2942_v36 }
 0x28d   : > { %v2666_v38 = vsub.s32 32, %v2665_v56  ;;  %v2670_v29 = vsub.s32 4294967266, %v2665_v56  ;;  %v6791_v7 = vmul.f32 %v2779_v59, %v2777_v1  ;;  %v2961_v8 = vadd.s32 1, %v6775_v24 }
 0x28e   : > { %v2815_v60 = vsub.s32 32, %v2814_v27  ;;  %vm2960_vm10 = vc.u32 %v6782_v40, %v6774_v17  ;;  %v2817_v44 = vshll.u32 %v8661_v35, %v2814_v27  ;;  %vm2832_vm12 = vcmp.lt.s32.totalorder %v6784_v12, 1 }
 0x28f   : > { %v2671_v19 = vadd.s32 127, %v2670_v29  ;;  %v2962_v57 = vsel %vm2960_vm10, %v2961_v8, %v6775_v24  ;;  %v2820_v21 = vshll.u32 %v8664_v0, %v2814_v27  ;;  %v2667_v15 = vshll.u32 %v6756_v26, %v2665_v56 }
 0x290   : > { %v2818_v3 = vshrl.u32 %v8664_v0, %v2815_v60  ;;  %v2821_v39 = vshrl.u32 %v8665_v51, %v2815_v60  ;;  %v2668_v2 = vshrl.u32 %v2650_v31, %v2666_v38  ;;  %v2963_v43 = vadd.s32 %v2962_v57, %v2958_v4 }
 0x291   : > { %v2672_v1 = vshll.u32 %v2671_v19, 23  ;;  %v2823_v36 = vshll.u32 %v8665_v51, %v2814_v27  ;;  %v2824_v55 = vshrl.u32 %v8666_v14, %v2815_v60  ;;  %v2826_v59 = vshll.u32 %v8666_v14, %v2814_v27 }
 0x292   : > { %v2819_v5 = vor.u32 %v2818_v3, %v2817_v44  ;;  %v2822_v20 = vor.u32 %v2821_v39, %v2820_v21  ;;  %v2964_v63 = vadd.s32 536870912, %v2963_v43  ;;  %v2827_v29 = vshrl.u32 %v8667_v46, %v2815_v60 }
 0x293   : > { %v2673_v24 = vor.u32 4788187, %v2672_v1  ;;  %v2825_v26 = vor.u32 %v2824_v55, %v2823_v36  ;;  %v2829_v31 = vshll.u32 %v8667_v46, %v2814_v27  ;;  %v2830_v56 = vshrl.u32 %v8669_v28, %v2815_v60 }
 0x294   : > { %v6813_v38 = vshrl.u32 %v2964_v63, 30  ;;  %v2816_v4 = vshrl.u32 %v8661_v35, %v2815_v60  ;;  %v2828_v8 = vor.u32 %v2827_v29, %v2826_v59  ;;  %vm2835_vm10 = vcmp.lt.s32.totalorder %v6784_v12, 4 }
 0x295   : > { %v8824_v19 = vand.u32 2147483647, %v6238_v37  ;;  %v8825_v44 = vmov 0  ;;  %v2669_v57 = vor.u32 %v2668_v2, %v2667_v15  ;;  %v2831_v3 = vor.u32 %v2830_v56, %v2829_v31 }
 0x296   : > { %8823 = vst [vmem:[#allocation96_spill] sm:$0xff] %v6813_v38  ;;  %v2837_v27 = vsel %vm2835_vm10, %v2825_v26, 2102212464  ;;  %v2840_v21 = vsel %vm2832_vm12, %v2819_v5, %v2822_v20  ;;  %v2674_v39 = vand.u32 2147483647, %v2673_v24  ;;  %v2966_v60 = vshll.u32 %v6813_v38, 30 }
 0x297   : > { %vm6819_vm11 = vcmp.le.f32.partialorder %v8824_v19, 0.7853982  ;;  %vm2834_vm4 = vcmp.lt.s32.totalorder %v6784_v12, 3  ;;  %v2841_v1 = vsel %vm2835_vm10, %v2828_v8, 920167782  ;;  %v2836_v36 = vsel %vm2832_vm12, %v2816_v4, %v2819_v5 }
 0x298   : > { %v8826_v44 = vsel %vm6819_vm11, 4294967295, %v8825_v44  ;;  %v2842_v55 = vsel %vm2834_vm4, %v2825_v26, %v2841_v1  ;;  %v2844_v15 = vsel %vm2832_vm12, %v2822_v20, %v2825_v26  ;;  %v2845_v2 = vsel %vm2835_vm10, %v2831_v3, 1326507024 }
 0x299   : > { %8827 = vst [vmem:[#allocation97_spill] sm:$0xff] %v8826_v44  ;;  %v6832_v63 = vsub.s32 %v2963_v43, %v2966_v60  ;;  %v2838_v59 = vsel %vm2834_vm4, %v2822_v20, %v2837_v27  ;;  %vm8828_vm6 = vcmp.lt.s32.totalorder %v6784_v12, 2  ;;  %v2846_v24 = vsel %vm2834_vm4, %v2828_v8, %v2845_v2  ;;  %v6860_v27 = vpop.f32.mrb[29].mxu0 }
 0x29a   : > { %v2843_v29 = vsel %vm8828_vm6, %v2840_v21, %v2842_v55  ;;  %v8829_v31 = vand.u32 2147483647, %v6434_v42  ;;  %v8830_v56 = vmov 0  ;;  %v2676_v19 = vcvt.s32.f32 %v2669_v57  ;;  %vm8833_vm9 = vmmov %vm8828_vm6 }
 0x29b   : > { %v2847_v5 = vsel %vm8833_vm9, %v2844_v15, %v2846_v24  ;;  %v6845_v26 = vmul.u32.u64.low %v6788_v54, %v2843_v29  ;;  %v6846_v4 = vmul.u32.u64.high %v6788_v54, %v2843_v29, %v6845_v26  ;;  %v8834_v43 = vxor.u32 2147483648, %v6721_v32 }
 0x29c   : > { %vm6838_vm3 = vcmp.le.f32.partialorder %v8829_v31, 0.7853982  ;;  %vm8835_vm6 = vcmp.lt.s32.totalorder %v6238_v37, 0  ;;  %vm8559_vm12 = vcmp.lt.s32.totalorder %v6520_v53, 0  ;;  %v2969_v8 = vsub.s32 0, %v6832_v63 }
 0x29d   : > { %v8831_v56 = vsel %vm6838_vm3, 4294967295, %v8830_v56  ;;  %v2267_v20 = vsel %vm8835_vm6, %v8834_v43, %v6721_v32  ;;  %v6857_v57 = vmul.u32.u64.low %v6788_v54, %v2847_v5  ;;  %v6858_v3 = vmul.u32.u64.high %v6788_v54, %v2847_v5, %v6857_v57 }
 0x29e   : > { %8832 = vst [vmem:[#allocation98_spill] sm:$0xff] %v8831_v56  ;;  %v2781_v21 = vxor.u32 2147483648, %v6791_v7  ;;  %v2677_v60 = vmul.f32 %v2676_v19, %v2674_v39  ;;  %v2839_v1 = vsel %vm8833_vm9, %v2836_v36, %v2838_v59  ;;  %v3113_v55 = vshrl.u32 %v3112_v25, 23 }
 0x29f   : > { %vm8836_vm4 = vcmp.lt.s32.totalorder %v6619_v11, 4  ;;  %v8837_v15 = vor.u32 %v6640_v47, %v6629_v52  ;;  %v4316_v39 = vmin.u32 %v2969_v8, %v6832_v63  ;;  %v8839_v12 = vand.u32 2147483647, %v6716_v9 }
 0x2a0   : > { %v6870_v32 = vsel %vm8836_vm4, %v6711_v30, 920167782  ;;  %vm8838_vm10 = vmmov %vm8836_vm4  ;;  %4740 = vcosq.f32 %v6728_v50  ;;  %v2858_v25 = vadd.s32 1, %v6846_v4  ;;  %v4323_v59 = vadd.s32 4294967169, %v3113_v55 }
 0x2a1   : > { %v6877_v2 = vsel %vm8838_vm10, %v8837_v15, 1326507024  ;;  %v3116_v36 = vand.u32 8388607, %v8839_v12  ;;  %v3009_v29 = vand.u32 2139095040, %v6736_v58  ;;  %v6888_v52 = vsel %vm6819_vm11, %v6238_v37, %v2267_v20 }
 0x2a2   : > { %v2971_v47 = vclz %v4316_v39  ;;  %v2855_v24 = vmul.u32 %v6788_v54, %v2839_v1  ;;  %vm2857_vm6 = vc.u32 %v6858_v3, %v6845_v26  ;;  %vm8840_vm9 = vcmp.lt.s32.totalorder %v6434_v42, 0  ;;  %v8841_v1 = vld [vmem:[#allocation26_spill] sm:$0xff] }
 0x2a3   : > { %v2782_v31 = vsel %vm8840_vm9, %v2781_v21, %v6791_v7  ;;  %v2678_v19 = vxor.u32 2147483648, %v2677_v60  ;;  %v2859_v5 = vsel %vm2857_vm6, %v2858_v25, %v6846_v4  ;;  %v3119_v43 = vadd.s32 1, %v4323_v59 }
 0x2a4   : > { %4742 = vsinq.f32 %v6728_v50  ;;  %v4317_v8 = vadd.s32 4294967294, %v2971_v47  ;;  %v2860_v57 = vadd.s32 %v2859_v5, %v2855_v24  ;;  %v3117_v20 = vor.u32 8388608, %v3116_v36 }
 0x2a5   : > { %4744 = vcosq.f32 %v6888_v52  ;;  %vm3120_vm4 = vcmp.gt.s32.totalorder %v3119_v43, 0  ;;  %v3010_v54 = vshrl.u32 %v3009_v29, 23  ;;  %v6901_v55 = vadd.f32 %v6350_v33, %v8841_v1 }
 0x2a6   : > { %v6906_v7 = vsel %vm6838_vm3, %v6434_v42, %v2782_v31  ;;  %vm4318_vm10 = vcmp.lt.s32.totalorder %v4317_v8, 0  ;;  %v2861_v4 = vadd.s32 536870912, %v2860_v57  ;;  %v3121_v21 = vsel %vm3120_vm4, %v3119_v43, 0 }
 0x2a7   : > { %8842 = vst [vmem:[#allocation26_spill] sm:$0xff] %v6901_v55  ;;  %v6910_v50 = vsel %vm8559_vm12, %v2678_v19, %v2677_v60  ;;  %v2959_v15 = vadd.s32 %v6774_v17, %v6782_v40  ;;  %v2974_v39 = vsel %vm4318_vm10, 0, %v4317_v8  ;;  %v3123_v12 = vand.u32 31, %v3121_v21 }
 0x2a8   : > { %v2979_v36 = vsub.s32 4294967266, %v2974_v39  ;;  %v6914_v33 = vshrl.u32 %v2861_v4, 30  ;;  %v6916_v25 = vshll.u32 %v3117_v20, 8  ;;  %v2975_v29 = vsub.s32 32, %v2974_v39 }
 0x2a9   : > { %v3122_v47 = vshrl.u32 %v3121_v21, 5  ;;  %v3124_v24 = vsub.s32 32, %v3123_v12  ;;  %v4319_v31 = vadd.s32 4294967169, %v3010_v54  ;;  %v3126_v19 = vshll.u32 %v8661_v35, %v3123_v12 }
 0x2aa   : > { %8843 = vst [vmem:[#allocation99_spill] sm:$0xff] %v6914_v33  ;;  %v2980_v5 = vadd.s32 127, %v2979_v36  ;;  %v2863_v60 = vshll.u32 %v6914_v33, 30  ;;  %v3129_v17 = vshll.u32 %v8664_v0, %v3123_v12  ;;  %v6922_v40 = vpop.eup %4740  ;;  %v3132_v20 = vshll.u32 %v8665_v51, %v3123_v12 }
 0x2ab   : > { %8844 = vst [vmem:[#allocation100_spill] sm:$0xff] %v6922_v40  ;;  %v3127_v43 = vshrl.u32 %v8664_v0, %v3124_v24  ;;  %v3130_v8 = vshrl.u32 %v8665_v51, %v3124_v24  ;;  %v3133_v1 = vshrl.u32 %v8666_v14, %v3124_v24  ;;  %v3135_v54 = vshll.u32 %v8666_v14, %v3123_v12 }
 0x2ac   : > { %v2981_v4 = vshll.u32 %v2980_v5, 23  ;;  %v6928_v21 = vsub.s32 %v2860_v57, %v2863_v60  ;;  %v3136_v36 = vshrl.u32 %v8667_v46, %v3124_v24  ;;  %v3016_v38 = vadd.s32 1, %v4319_v31 }
 0x2ad   : > { %v3128_v59 = vor.u32 %v3127_v43, %v3126_v19  ;;  %v3131_v44 = vor.u32 %v3130_v8, %v3129_v17  ;;  %v3134_v37 = vor.u32 %v3133_v1, %v3132_v20  ;;  %v2976_v33 = vshll.u32 %v6832_v63, %v2974_v39 }
 0x2ae   : > { %v6932_v40 = vpop.eup %4742  ;;  %v2977_v56 = vshrl.u32 %v2959_v15, %v2975_v29  ;;  %v2866_v42 = vsub.s32 0, %v6928_v21  ;;  %v3137_v61 = vor.u32 %v3136_v36, %v3135_v54  ;;  %v2982_v57 = vor.u32 4788187, %v2981_v4 }
 0x2af   : > { %8845 = vst [vmem:[#allocation101_spill] sm:$0xff] %v6932_v40  ;;  %v6936_v22 = vpop.eup %4744  ;;  %v3125_v5 = vshrl.u32 %v8661_v35, %v3124_v24  ;;  %v3138_v60 = vshll.u32 %v8667_v46, %v3123_v12  ;;  %v3139_v19 = vshrl.u32 %v8669_v28, %v3124_v24  ;;  %vm3141_vm6 = vcmp.lt.s32.totalorder %v3122_v47, 1 }
 0x2b0   : > { %8846 = vst [vmem:[#allocation102_spill] sm:$0xff] %v6936_v22  ;;  %v4312_v17 = vmin.u32 %v2866_v42, %v6928_v21  ;;  %vm3143_vm9 = vcmp.lt.s32.totalorder %v3122_v47, 3  ;;  %vm3144_vm4 = vcmp.lt.s32.totalorder %v3122_v47, 4  ;;  %v3149_v15 = vsel %vm3141_vm6, %v3128_v59, %v3131_v44 }
 0x2b1   : > { %v3140_v31 = vor.u32 %v3139_v19, %v3138_v60  ;;  %v3146_v63 = vsel %vm3144_vm4, %v3134_v37, 2102212464  ;;  %v3150_v39 = vsel %vm3144_vm4, %v3137_v61, 920167782  ;;  %vm3142_vm10 = vcmp.lt.s32.totalorder %v3122_v47, 2 }
 0x2b2   : > { %v2868_v29 = vclz %v4312_v17  ;;  %v3145_v43 = vsel %vm3141_vm6, %v3125_v5, %v3128_v59  ;;  %v3151_v8 = vsel %vm3143_vm9, %v3134_v37, %v3150_v39  ;;  %v3147_v20 = vsel %vm3143_vm9, %v3131_v44, %v3146_v63 }
 0x2b3   : > { %v3152_v1 = vsel %vm3142_vm10, %v3149_v15, %v3151_v8  ;;  %v3153_v12 = vsel %vm3141_vm6, %v3131_v44, %v3134_v37  ;;  %v3154_v4 = vsel %vm3144_vm4, %v3140_v31, 1326507024  ;;  %v2978_v24 = vor.u32 %v2977_v56, %v2976_v33  ;;  %v6956_v44 = vpop.f32.mrb[30].mxu0 }
 0x2b4   : > { %v4313_v54 = vadd.s32 4294967294, %v2868_v29  ;;  %v3155_v42 = vsel %vm3143_vm9, %v3137_v61, %v3154_v4  ;;  %v8847_v36 = vand.u32 2147483647, %v6736_v58  ;;  %vm3017_vm12 = vcmp.gt.s32.totalorder %v3016_v38, 0 }
 0x2b5   : > { %v3156_v19 = vsel %vm3142_vm10, %v3153_v12, %v3155_v42  ;;  %v6948_v40 = vmul.u32.u64.low %v6916_v25, %v3152_v1  ;;  %v6949_v17 = vmul.u32.u64.high %v6916_v25, %v3152_v1, %v6948_v40  ;;  %v3148_v59 = vsel %vm3142_vm10, %v3145_v43, %v3147_v20 }
 0x2b6   : > { %v3013_v60 = vand.u32 8388607, %v8847_v36  ;;  %vm4314_vm11 = vcmp.lt.s32.totalorder %v4313_v54, 0  ;;  %v6953_v5 = vmul.u32.u64.low %v6916_v25, %v3156_v19  ;;  %v6954_v37 = vmul.u32.u64.high %v6916_v25, %v3156_v19, %v6953_v5 }
 0x2b7   : > { %v2983_v56 = vand.u32 2147483647, %v2982_v57  ;;  %v2856_v61 = vadd.s32 %v6845_v26, %v6858_v3  ;;  %v2871_v33 = vsel %vm4314_vm11, 0, %v4313_v54  ;;  %v3018_v47 = vsel %vm3017_vm12, %v3016_v38, 0 }
 0x2b8   : > { %v2872_v31 = vsub.s32 32, %v2871_v33  ;;  %v2876_v63 = vsub.s32 4294967266, %v2871_v33  ;;  %v3014_v15 = vor.u32 8388608, %v3013_v60  ;;  %v2985_v29 = vcvt.s32.f32 %v2978_v24 }
 0x2b9   : > { %v3164_v43 = vmul.u32 %v6916_v25, %v3148_v59  ;;  %v3167_v8 = vadd.s32 1, %v6949_v17  ;;  %v3020_v20 = vand.u32 31, %v3018_v47  ;;  %v2873_v1 = vshll.u32 %v6928_v21, %v2871_v33 }
 0x2ba   : > { %v2874_v12 = vshrl.u32 %v2856_v61, %v2872_v31  ;;  %v2877_v57 = vadd.s32 127, %v2876_v63  ;;  %vm3166_vm6 = vc.u32 %v6954_v37, %v6948_v40  ;;  %v6966_v26 = vmul.f32 %v2985_v29, %v2983_v56 }
 0x2bb   : > { %v3168_v38 = vsel %vm3166_vm6, %v3167_v8, %v6949_v17  ;;  %v3021_v3 = vsub.s32 32, %v3020_v20  ;;  %v3023_v4 = vshll.u32 %v8661_v35, %v3020_v20  ;;  %v3026_v42 = vshll.u32 %v8664_v0, %v3020_v20 }
 0x2bc   : > { %v2875_v24 = vor.u32 %v2874_v12, %v2873_v1  ;;  %v2878_v54 = vshll.u32 %v2877_v57, 23  ;;  %v3169_v25 = vadd.s32 %v3168_v38, %v3164_v43  ;;  %v3029_v60 = vshll.u32 %v8665_v51, %v3020_v20 }
 0x2bd   : > { %v3024_v36 = vshrl.u32 %v8664_v0, %v3021_v3  ;;  %v3027_v21 = vshrl.u32 %v8665_v51, %v3021_v3  ;;  %v3030_v19 = vshrl.u32 %v8666_v14, %v3021_v3  ;;  %v3019_v56 = vshrl.u32 %v3018_v47, 5 }
 0x2be   : > { %v2879_v59 = vor.u32 4788187, %v2878_v54  ;;  %v3170_v5 = vadd.s32 536870912, %v3169_v25  ;;  %v3032_v17 = vshll.u32 %v8666_v14, %v3020_v20  ;;  %v3033_v63 = vshrl.u32 %v8667_v46, %v3021_v3 }
 0x2bf   : > { %v3025_v61 = vor.u32 %v3024_v36, %v3023_v4  ;;  %v3028_v33 = vor.u32 %v3027_v21, %v3026_v42  ;;  %v3031_v31 = vor.u32 %v3030_v19, %v3029_v60  ;;  %v3035_v43 = vshll.u32 %v8667_v46, %v3020_v20 }
 0x2c0   : > { %v6977_v29 = vshrl.u32 %v3170_v5, 30  ;;  %v3036_v8 = vshrl.u32 %v8669_v28, %v3021_v3  ;;  %v3054_v1 = vshll.u32 %v3014_v15, 8  ;;  %v8849_v12 = vand.u32 2147483647, %v6520_v53 }
 0x2c1   : > { %v2880_v47 = vand.u32 2147483647, %v2879_v59  ;;  %v2882_v38 = vcvt.s32.f32 %v2875_v24  ;;  %v3022_v4 = vshrl.u32 %v8661_v35, %v3021_v3  ;;  %v3034_v54 = vor.u32 %v3033_v63, %v3032_v17 }
 0x2c2   : > { %8848 = vst [vmem:[#allocation103_spill] sm:$0xff] %v6977_v29  ;;  %vm6983_vm11 = vcmp.le.f32.partialorder %v8849_v12, 0.7853982  ;;  %v3172_v42 = vshll.u32 %v6977_v29, 30  ;;  %v3037_v36 = vor.u32 %v3036_v8, %v3035_v43  ;;  %vm3038_vm12 = vcmp.lt.s32.totalorder %v3019_v56, 1 }
 0x2c3   : > { %vm3041_vm9 = vcmp.lt.s32.totalorder %v3019_v56, 4  ;;  %vm3040_vm4 = vcmp.lt.s32.totalorder %v3019_v56, 3  ;;  %v3046_v21 = vsel %vm3038_vm12, %v3025_v61, %v3028_v33  ;;  %vm3039_vm10 = vcmp.lt.s32.totalorder %v3019_v56, 2 }
 0x2c4   : > { %v3043_v20 = vsel %vm3041_vm9, %v3031_v31, 2102212464  ;;  %v3047_v15 = vsel %vm3041_vm9, %v3034_v54, 920167782  ;;  %v6989_v60 = vsub.s32 %v3169_v25, %v3172_v42  ;;  %v3042_v19 = vsel %vm3038_vm12, %v3022_v4, %v3025_v61 }
 0x2c5   : > { %v3048_v5 = vsel %vm3040_vm4, %v3031_v31, %v3047_v15  ;;  %v3044_v12 = vsel %vm3040_vm4, %v3028_v33, %v3043_v20  ;;  %v3050_v24 = vsel %vm3038_vm12, %v3028_v33, %v3031_v31  ;;  %v3051_v39 = vsel %vm3041_vm9, %v3037_v36, 1326507024 }
 0x2c6   : > { %v3049_v59 = vsel %vm3039_vm10, %v3046_v21, %v3048_v5  ;;  %v2987_v3 = vxor.u32 2147483648, %v6966_v26  ;;  %v3175_v17 = vsub.s32 0, %v6989_v60  ;;  %v3052_v63 = vsel %vm3040_vm4, %v3034_v54, %v3051_v39  ;;  %v8857_v5 = vld [vmem:[#allocation31_spill] sm:$0xff] }
 0x2c7   : > { %v8567_v43 = vand.u32 2147483647, %v6901_v55  ;;  %v2883_v8 = vmul.f32 %v2882_v38, %v2880_v47  ;;  %v3053_v22 = vsel %vm3039_vm10, %v3050_v24, %v3052_v63  ;;  %v3045_v56 = vsel %vm3039_vm10, %v3042_v19, %v3044_v12  ;;  %v7011_v38 = vpop.f32.mrb[31].mxu0 }
 0x2c8   : > { %v6994_v29 = vmul.u32.u64.low %v3054_v1, %v3049_v59  ;;  %v6995_v30 = vmul.u32.u64.high %v3054_v1, %v3049_v59, %v6994_v29  ;;  %v4324_v25 = vmin.u32 %v3175_v17, %v6989_v60  ;;  %4746 = vsinq.f32 %v6888_v52 }
 0x2c9   : > { %v6998_v61 = vmul.u32.u64.low %v3054_v1, %v3053_v22  ;;  %v6999_v4 = vmul.u32.u64.high %v3054_v1, %v3053_v22, %v6998_v61  ;;  %v8852_v33 = vand.u32 2147483647, %v6651_v10  ;;  %v8853_v31 = vmov 0 }
 0x2ca   : > { %vm8565_vm12 = vcmp.lt.s32.totalorder %v6651_v10, 0  ;;  %v8856_v39 = vand.u32 2139095040, %v6901_v55  ;;  %4748 = vcosq.f32 %v6906_v7  ;;  %v2682_v22 = vsel %vm6983_vm11, %v6520_v53, %v6910_v50 }
 0x2cb   : > { %vm7004_vm6 = vcmp.le.f32.partialorder %v8852_v33, 0.7853982  ;;  %v2988_v52 = vsel %vm8565_vm12, %v2987_v3, %v6966_v26  ;;  %v3177_v54 = vclz %v4324_v25  ;;  %v2884_v42 = vxor.u32 2147483648, %v2883_v8 }
 0x2cc   : > { %v8854_v31 = vsel %vm7004_vm6, 4294967295, %v8853_v31  ;;  %v3319_v47 = vshrl.u32 %v8856_v39, 23  ;;  %v3061_v36 = vmul.u32 %v3054_v1, %v3045_v56  ;;  %v3064_v20 = vadd.s32 1, %v6995_v30 }
 0x2cd   : > { %8855 = vst [vmem:[#allocation104_spill] sm:$0xff] %v8854_v31  ;;  %v4325_v15 = vadd.s32 4294967294, %v3177_v54  ;;  %vm3063_vm9 = vc.u32 %v6999_v4, %v6994_v29  ;;  %v3322_v19 = vand.u32 8388607, %v8567_v43  ;;  %v7027_v12 = vadd.f32 %v6479_v45, %v8857_v5 }
 0x2ce   : > { %v4331_v21 = vadd.s32 4294967169, %v3319_v47  ;;  %4750 = vsinq.f32 %v6906_v7  ;;  %vm8579_vm4 = vcmp.lt.s32.totalorder %v6658_v16, 0  ;;  %v3065_v50 = vsel %vm3063_vm9, %v3064_v20, %v6995_v30 }
 0x2cf   : > { %4752 = vcosq.f32 %v2682_v22  ;;  %v2991_v1 = vsel %vm7004_vm6, %v6651_v10, %v2988_v52  ;;  %vm4326_vm10 = vcmp.lt.s32.totalorder %v4325_v15, 0  ;;  %v3066_v59 = vadd.s32 %v3065_v50, %v3061_v36 }
 0x2d0   : > { %v3325_v26 = vadd.s32 1, %v4331_v21  ;;  %4754 = vsinq.f32 %v2682_v22  ;;  %v2885_v24 = vsel %vm8579_vm4, %v2884_v42, %v2883_v8  ;;  %v7037_v45 = vsel %vm4326_vm10, 0, %v4325_v15  ;;  %v8864_v42 = vld [vmem:[#allocation36_spill] sm:$0xff] }
 0x2d1   : > { %v3185_v7 = vsub.s32 4294967266, %v7037_v45  ;;  %v3067_v3 = vadd.s32 536870912, %v3066_v59  ;;  %v3323_v17 = vor.u32 8388608, %v3322_v19  ;;  %v8566_v30 = vand.u32 2147483647, %v7027_v12 }
 0x2d2   : > { %vm3326_vm12 = vcmp.gt.s32.totalorder %v3325_v26, 0  ;;  %4756 = vcosq.f32 %v2991_v1  ;;  %v8858_v63 = vand.u32 2147483647, %v6658_v16  ;;  %v8859_v25 = vmov 0  ;;  %v7052_v47 = vpop.eup %4746 }
 0x2d3   : > { %v3327_v56 = vsel %vm3326_vm12, %v3325_v26, 0  ;;  %v3215_v61 = vand.u32 2139095040, %v7027_v12  ;;  %4758 = vsinq.f32 %v2991_v1  ;;  %v3165_v8 = vadd.s32 %v6948_v40, %v6954_v37  ;;  %8863 = vst [vmem:[#allocation106_spill] sm:$0xff] %v7052_v47 }
 0x2d4   : > { %vm7043_vm9 = vcmp.le.f32.partialorder %v8858_v63, 0.7853982  ;;  %v3186_v33 = vadd.s32 127, %v3185_v7  ;;  %v7050_v39 = vshrl.u32 %v3067_v3, 30  ;;  %v7060_v52 = vadd.s32 %v6994_v29, %v6999_v4  ;;  %v7066_v20 = vpop.eup %4748 }
 0x2d5   : > { %v8860_v25 = vsel %vm7043_vm9, 4294967295, %v8859_v25  ;;  %v7057_v22 = vsel %vm7043_vm9, %v6658_v16, %v2885_v24  ;;  %v3329_v54 = vand.u32 31, %v3327_v56  ;;  %v7064_v36 = vadd.f32 %v6590_v49, %v8864_v42  ;;  %8866 = vst [vmem:[#allocation107_spill] sm:$0xff] %v7066_v20 }
 0x2d6   : > { %8861 = vst [vmem:[#allocation31_spill] sm:$0xff] %v8860_v25  ;;  %8862 = vst [vmem:[#allocation105_spill] sm:$0xff] %v7050_v39  ;;  %v3181_v40 = vsub.s32 32, %v7037_v45  ;;  %v3069_v37 = vshll.u32 %v7050_v39, 30  ;;  %v7070_v21 = vshll.u32 %v3323_v17, 8  ;;  %v3182_v29 = vshll.u32 %v6989_v60, %v7037_v45 }
 0x2d7   : > { %8865 = vst [vmem:[#allocation36_spill] sm:$0xff] %v7064_v36  ;;  %v7074_v15 = vand.u32 8388607, %v8566_v30  ;;  %v3328_v4 = vshrl.u32 %v3327_v56, 5  ;;  %v3330_v19 = vsub.s32 32, %v3329_v54  ;;  %v3216_v5 = vshrl.u32 %v3215_v61, 23 }
 0x2d8   : > { %v3187_v49 = vshll.u32 %v3186_v33, 23  ;;  %v7078_v50 = vsub.s32 %v3066_v59, %v3069_v37  ;;  %v3332_v26 = vshll.u32 %v8661_v35, %v3329_v54  ;;  %v3335_v1 = vshll.u32 %v8664_v0, %v3329_v54  ;;  %v7082_v24 = vpop.eup %4750 }
 0x2d9   : > { %8867 = vst [vmem:[#allocation108_spill] sm:$0xff] %v7082_v24  ;;  %v3333_v7 = vshrl.u32 %v8664_v0, %v3330_v19  ;;  %v3336_v3 = vshrl.u32 %v8665_v51, %v3330_v19  ;;  %v3338_v17 = vshll.u32 %v8665_v51, %v3329_v54  ;;  %v3339_v60 = vshrl.u32 %v8666_v14, %v3330_v19  ;;  %v7088_v45 = vpop.eup %4752 }
 0x2da   : > { %8868 = vst [vmem:[#allocation109_spill] sm:$0xff] %v7088_v45  ;;  %v3072_v63 = vsub.s32 0, %v7078_v50  ;;  %v3341_v59 = vshll.u32 %v8666_v14, %v3329_v54  ;;  %v3342_v56 = vshrl.u32 %v8667_v46, %v3330_v19  ;;  %v3344_v61 = vshll.u32 %v8667_v46, %v3329_v54  ;;  %v7094_v33 = vpop.eup %4754 }
 0x2db   : > { %v3334_v42 = vor.u32 %v3333_v7, %v3332_v26  ;;  %v3337_v37 = vor.u32 %v3336_v3, %v3335_v1  ;;  %v3340_v30 = vor.u32 %v3339_v60, %v3338_v17  ;;  %v3345_v43 = vshrl.u32 %v8669_v28, %v3330_v19 }
 0x2dc   : > { %v3183_v47 = vshrl.u32 %v3165_v8, %v3181_v40  ;;  %v4320_v39 = vmin.u32 %v3072_v63, %v7078_v50  ;;  %v3343_v31 = vor.u32 %v3342_v56, %v3341_v59  ;;  %v4327_v10 = vadd.s32 4294967169, %v3216_v5  ;;  %v7098_v25 = vpop.eup %4756 }
 0x2dd   : > { %8869 = vst [vmem:[#allocation110_spill] sm:$0xff] %v7098_v25  ;;  %v3188_v16 = vor.u32 4788187, %v3187_v49  ;;  %v3346_v20 = vor.u32 %v3345_v43, %v3344_v61  ;;  %vm3347_vm12 = vcmp.lt.s32.totalorder %v3328_v4, 1  ;;  %vm3350_vm10 = vcmp.lt.s32.totalorder %v3328_v4, 4  ;;  %v7100_v24 = vpop.eup %4758 }
 0x2de   : > { %8870 = vst [vmem:[#allocation111_spill] sm:$0xff] %v7100_v24  ;;  %v3074_v54 = vclz %v4320_v39  ;;  %v3331_v26 = vshrl.u32 %v8661_v35, %v3330_v19  ;;  %vm3349_vm4 = vcmp.lt.s32.totalorder %v3328_v4, 3  ;;  %v3352_v1 = vsel %vm3350_vm10, %v3340_v30, 2102212464 }
 0x2df   : > { %v3355_v7 = vsel %vm3347_vm12, %v3334_v42, %v3337_v37  ;;  %v3356_v8 = vsel %vm3350_vm10, %v3343_v31, 920167782  ;;  %v3359_v40 = vsel %vm3347_vm12, %v3337_v37, %v3340_v30  ;;  %v3360_v3 = vsel %vm3350_vm10, %v3346_v20, 1326507024 }
 0x2e0   : > { %v3184_v5 = vor.u32 %v3183_v47, %v3182_v29  ;;  %v4321_v17 = vadd.s32 4294967294, %v3074_v54  ;;  %v3357_v60 = vsel %vm3349_vm4, %v3340_v30, %v3356_v8  ;;  %vm3348_vm7 = vcmp.lt.s32.totalorder %v3328_v4, 2 }
 0x2e1   : > { %v3351_v49 = vsel %vm3347_vm12, %v3331_v26, %v3334_v42  ;;  %v3353_v63 = vsel %vm3349_vm4, %v3337_v37, %v3352_v1  ;;  %v3361_v39 = vsel %vm3349_vm4, %v3343_v31, %v3360_v3  ;;  %v3358_v19 = vsel %vm3348_vm7, %v3355_v7, %v3357_v60 }
 0x2e2   : > { %vm4322_vm14 = vcmp.lt.s32.totalorder %v4321_v17, 0  ;;  %v3362_v59 = vsel %vm3348_vm7, %v3359_v40, %v3361_v39  ;;  %v3222_v56 = vadd.s32 1, %v4327_v10  ;;  %v3189_v61 = vand.u32 2147483647, %v3188_v16 }
 0x2e3   : > { %v3077_v25 = vsel %vm4322_vm14, 0, %v4321_v17  ;;  %v7108_v24 = vmul.u32.u64.low %v7070_v21, %v3362_v59  ;;  %v7109_v45 = vmul.u32.u64.high %v7070_v21, %v3362_v59, %v7108_v24  ;;  %v3354_v30 = vsel %vm3348_vm7, %v3351_v49, %v3353_v63 }
 0x2e4   : > { %v3078_v47 = vsub.s32 32, %v3077_v25  ;;  %v3082_v20 = vsub.s32 4294967266, %v3077_v25  ;;  %vm3223_vm10 = vcmp.gt.s32.totalorder %v3222_v56, 0  ;;  %v3191_v29 = vcvt.s32.f32 %v3184_v5 }
 0x2e5   : > { %v7112_v4 = vmul.u32.u64.low %v7070_v21, %v3358_v19  ;;  %v7113_v42 = vmul.u32.u64.high %v7070_v21, %v3358_v19, %v7112_v4  ;;  %v3224_v31 = vsel %vm3223_vm10, %v3222_v56, 0  ;;  %v3220_v16 = vor.u32 8388608, %v7074_v15 }
 0x2e6   : > { %v3080_v37 = vshrl.u32 %v7060_v52, %v3078_v47  ;;  %v3083_v10 = vadd.s32 127, %v3082_v20  ;;  %v3226_v54 = vand.u32 31, %v3224_v31  ;;  %v3192_v26 = vmul.f32 %v3191_v29, %v3189_v61 }
 0x2e7   : > { %v3079_v24 = vshll.u32 %v7078_v50, %v3077_v25  ;;  %v3370_v1 = vmul.u32 %v7070_v21, %v3354_v30  ;;  %v3524_v7 = vand.u32 2139095040, %v7064_v36  ;;  %vm3372_vm14 = vc.u32 %v7109_v45, %v7112_v4 }
 0x2e8   : > { %v3084_v8 = vshll.u32 %v3083_v10, 23  ;;  %v7123_v40 = vshrl.u32 %v3224_v31, 5  ;;  %v3227_v3 = vsub.s32 32, %v3226_v54  ;;  %v3373_v52 = vadd.s32 1, %v7113_v42 }
 0x2e9   : > { %v3081_v5 = vor.u32 %v3080_v37, %v3079_v24  ;;  %v3229_v15 = vshll.u32 %v8661_v35, %v3226_v54  ;;  %v3232_v17 = vshll.u32 %v8664_v0, %v3226_v54  ;;  %v3235_v50 = vshll.u32 %v8665_v51, %v3226_v54 }
 0x2ea   : > { %v3085_v25 = vor.u32 4788187, %v3084_v8  ;;  %v3230_v21 = vshrl.u32 %v8664_v0, %v3227_v3  ;;  %v3238_v60 = vshll.u32 %v8666_v14, %v3226_v54  ;;  %v3374_v49 = vsel %vm3372_vm14, %v3373_v52, %v7113_v42 }
 0x2eb   : > { %v3233_v63 = vshrl.u32 %v8665_v51, %v3227_v3  ;;  %v3236_v39 = vshrl.u32 %v8666_v14, %v3227_v3  ;;  %v3239_v19 = vshrl.u32 %v8667_v46, %v3227_v3  ;;  %v3375_v56 = vadd.s32 %v3374_v49, %v3370_v1 }
 0x2ec   : > { %v3086_v59 = vand.u32 2147483647, %v3085_v25  ;;  %v3231_v61 = vor.u32 %v3230_v21, %v3229_v15  ;;  %v3241_v47 = vshll.u32 %v8667_v46, %v3226_v54  ;;  %v3242_v31 = vshrl.u32 %v8669_v28, %v3227_v3 }
 0x2ed   : > { %v3234_v20 = vor.u32 %v3233_v63, %v3232_v17  ;;  %v3237_v30 = vor.u32 %v3236_v39, %v3235_v50  ;;  %v3240_v29 = vor.u32 %v3239_v19, %v3238_v60  ;;  %v3193_v37 = vxor.u32 2147483648, %v3192_v26 }
 0x2ee   : > { %v3088_v10 = vcvt.s32.f32 %v3081_v5  ;;  %v3376_v24 = vadd.s32 536870912, %v3375_v56  ;;  %v3260_v42 = vshll.u32 %v3220_v16, 8  ;;  %v3228_v8 = vshrl.u32 %v8661_v35, %v3227_v3 }
 0x2ef   : > { %v3243_v52 = vor.u32 %v3242_v31, %v3241_v47  ;;  %vm3244_vm4 = vcmp.lt.s32.totalorder %v7123_v40, 1  ;;  %v3525_v43 = vshrl.u32 %v3524_v7, 23  ;;  %v8871_v1 = vand.u32 2147483647, %v6716_v9 }
 0x2f0   : > { %v8872_v15 = vmov 0  ;;  %v3089_v54 = vmul.f32 %v3088_v10, %v3086_v59  ;;  %v7146_v17 = vshrl.u32 %v3376_v24, 30  ;;  %vm3247_vm10 = vcmp.lt.s32.totalorder %v7123_v40, 4 }
 0x2f1   : > { %vm7142_vm12 = vcmp.le.f32.partialorder %v8871_v1, 0.7853982  ;;  %v3252_v16 = vsel %vm3244_vm4, %v3231_v61, %v3234_v20  ;;  %vm3246_vm14 = vcmp.lt.s32.totalorder %v7123_v40, 3  ;;  %v3253_v3 = vsel %vm3247_vm10, %v3240_v29, 920167782 }
 0x2f2   : > { %v8873_v15 = vsel %vm7142_vm12, 4294967295, %v8872_v15  ;;  %8875 = vst [vmem:[#allocation113_spill] sm:$0xff] %v7146_v17  ;;  %v3256_v7 = vsel %vm3244_vm4, %v3234_v20, %v3237_v30  ;;  %v3257_v5 = vsel %vm3247_vm10, %v3243_v52, 1326507024  ;;  %v3378_v25 = vshll.u32 %v7146_v17, 30 }
 0x2f3   : > { %8874 = vst [vmem:[#allocation112_spill] sm:$0xff] %v8873_v15  ;;  %vm3245_vm7 = vcmp.lt.s32.totalorder %v7123_v40, 2  ;;  %v3249_v21 = vsel %vm3247_vm10, %v3237_v30, 2102212464  ;;  %v3254_v50 = vsel %vm3246_vm14, %v3237_v30, %v3253_v3  ;;  %vm8876_vm2 = vcmp.lt.s32.totalorder %v6716_v9, 0 }
 0x2f4   : > { %v3194_v60 = vsel %vm8876_vm2, %v3193_v37, %v3192_v26  ;;  %v3255_v49 = vsel %vm3245_vm7, %v3252_v16, %v3254_v50  ;;  %v3258_v63 = vsel %vm3246_vm14, %v3240_v29, %v3257_v5  ;;  %v8877_v39 = vand.u32 2147483647, %v7064_v36 }
 0x2f5   : > { %v7166_v59 = vsub.s32 %v3375_v56, %v3378_v25  ;;  %v3248_v47 = vsel %vm3244_vm4, %v3228_v8, %v3231_v61  ;;  %v3259_v30 = vsel %vm3245_vm7, %v3256_v7, %v3258_v63  ;;  %v4339_v31 = vadd.s32 4294967169, %v3525_v43  ;;  %v8878_v43 = vld [vmem:[#allocation41_spill] sm:$0xff] }
 0x2f6   : > { %v3528_v19 = vand.u32 8388607, %v8877_v39  ;;  %v3090_v10 = vxor.u32 2147483648, %v3089_v54  ;;  %v3250_v26 = vsel %vm3246_vm14, %v3234_v20, %v3249_v21  ;;  %4760 = vcosq.f32 %v7057_v22 }
 0x2f7   : > { %v7174_v37 = vmul.u32.u64.low %v3260_v42, %v3259_v30  ;;  %v7175_v24 = vmul.u32.u64.high %v3260_v42, %v3259_v30, %v7174_v37  ;;  %v3381_v29 = vsub.s32 0, %v7166_v59  ;;  %v3531_v56 = vadd.s32 1, %v4339_v31 }
 0x2f8   : > { %v7178_v52 = vmul.u32.u64.low %v3260_v42, %v3255_v49  ;;  %v7179_v1 = vmul.u32.u64.high %v3260_v42, %v3255_v49, %v7178_v52  ;;  %vm8591_vm2 = vcmp.lt.s32.totalorder %v6736_v58, 0  ;;  %v3529_v61 = vor.u32 8388608, %v3528_v19 }
 0x2f9   : > { %v7186_v8 = vadd.f32 %v6686_v62, %v8878_v43  ;;  %v4332_v20 = vmin.u32 %v3381_v29, %v7166_v59  ;;  %v3251_v16 = vsel %vm3245_vm7, %v3248_v47, %v3250_v26  ;;  %vm3532_vm4 = vcmp.gt.s32.totalorder %v3531_v56, 0 }
 0x2fa   : > { %v7193_v3 = vadd.f32 %v6778_v18, %v5913_v13  ;;  %v7198_v7 = vsel %vm7142_vm12, %v6716_v9, %v3194_v60  ;;  %v3371_v5 = vadd.s32 %v7112_v4, %v7109_v45  ;;  %vm3269_vm10 = vc.u32 %v7175_v24, %v7178_v52 }
 0x2fb   : > { %v3533_v62 = vsel %vm3532_vm4, %v3531_v56, 0  ;;  %v7206_v40 = vsel %vm8591_vm2, %v3090_v10, %v3089_v54  ;;  %v3383_v25 = vclz %v4332_v20  ;;  %v3270_v13 = vadd.s32 1, %v7179_v1 }
 0x2fc   : > { %8879 = vst [vmem:[#allocation41_spill] sm:$0xff] %v7193_v3  ;;  %v3535_v18 = vand.u32 31, %v3533_v62  ;;  %v3267_v21 = vmul.u32 %v3260_v42, %v3251_v16  ;;  %v7209_v50 = vshll.u32 %v3529_v61, 8  ;;  %v3421_v49 = vand.u32 2139095040, %v7186_v8 }
 0x2fd   : > { %v4333_v45 = vadd.s32 4294967294, %v3383_v25  ;;  %v3271_v4 = vsel %vm3269_vm10, %v3270_v13, %v7179_v1  ;;  %v7214_v63 = vshrl.u32 %v3533_v62, 5  ;;  %v8881_v15 = vand.u32 2147483647, %v6736_v58 }
 0x2fe   : > { %v3536_v39 = vsub.s32 32, %v3535_v18  ;;  %v3272_v19 = vadd.s32 %v3271_v4, %v3267_v21  ;;  %v3538_v54 = vshll.u32 %v8661_v35, %v3535_v18  ;;  %v3541_v47 = vshll.u32 %v8664_v0, %v3535_v18 }
 0x2ff   : > { %v3544_v30 = vshll.u32 %v8665_v51, %v3535_v18  ;;  %vm4334_vm7 = vcmp.lt.s32.totalorder %v4333_v45, 0  ;;  %v3547_v10 = vshll.u32 %v8666_v14, %v3535_v18  ;;  %v3422_v20 = vshrl.u32 %v3421_v49, 23 }
 0x300   : > { %v3539_v42 = vshrl.u32 %v8664_v0, %v3536_v39  ;;  %v3542_v31 = vshrl.u32 %v8665_v51, %v3536_v39  ;;  %v3386_v26 = vsel %vm4334_vm7, 0, %v4333_v45  ;;  %v3273_v37 = vadd.s32 536870912, %v3272_v19  ;;  %v7224_v16 = vpop.eup %4760 }
 0x301   : > { %v3545_v29 = vshrl.u32 %v8666_v14, %v3536_v39  ;;  %v3548_v1 = vshrl.u32 %v8667_v46, %v3536_v39  ;;  %v3387_v56 = vsub.s32 32, %v3386_v26  ;;  %v3391_v61 = vsub.s32 4294967266, %v3386_v26 }
 0x302   : > { %v3540_v43 = vor.u32 %v3539_v42, %v3538_v54  ;;  %v7226_v62 = vshrl.u32 %v3273_v37, 30  ;;  %v3543_v25 = vor.u32 %v3542_v31, %v3541_v47  ;;  %v3550_v45 = vshll.u32 %v8667_v46, %v3535_v18 }
 0x303   : > { %v3546_v13 = vor.u32 %v3545_v29, %v3544_v30  ;;  %v3549_v21 = vor.u32 %v3548_v1, %v3547_v10  ;;  %v3389_v4 = vshrl.u32 %v3371_v5, %v3387_v56  ;;  %v3392_v60 = vadd.s32 127, %v3391_v61 }
 0x304   : > { %8880 = vst [vmem:[#allocation114_spill] sm:$0xff] %v7226_v62  ;;  %v3551_v17 = vshrl.u32 %v8669_v28, %v3536_v39  ;;  %vm7232_vm14 = vcmp.le.f32.partialorder %v8881_v15, 0.7853982  ;;  %v8882_v9 = vmov 0  ;;  %v3388_v49 = vshll.u32 %v7166_v59, %v3386_v26 }
 0x305   : > { %v8883_v9 = vsel %vm7232_vm14, 4294967295, %v8882_v9  ;;  %v3275_v54 = vshll.u32 %v7226_v62, 30  ;;  %v3537_v47 = vshrl.u32 %v8661_v35, %v3536_v39  ;;  %v8884_v30 = vand.u32 2147483647, %v7186_v8 }
 0x306   : > { %v3393_v42 = vshll.u32 %v3392_v60, 23  ;;  %v3552_v31 = vor.u32 %v3551_v17, %v3550_v45  ;;  %vm3553_vm4 = vcmp.lt.s32.totalorder %v7214_v63, 1  ;;  %vm3556_vm10 = vcmp.lt.s32.totalorder %v7214_v63, 4 }
 0x307   : > { %v3425_v5 = vand.u32 8388607, %v8884_v30  ;;  %v7243_v18 = vsub.s32 %v3272_v19, %v3275_v54  ;;  %vm3554_vm7 = vcmp.lt.s32.totalorder %v7214_v63, 2  ;;  %v3558_v15 = vsel %vm3556_vm10, %v3546_v13, 2102212464 }
 0x308   : > { %v3561_v59 = vsel %vm3553_vm4, %v3540_v43, %v3543_v25  ;;  %v3390_v10 = vor.u32 %v3389_v4, %v3388_v49  ;;  %v3394_v26 = vor.u32 4788187, %v3393_v42  ;;  %vm3555_vm2 = vcmp.lt.s32.totalorder %v7214_v63, 3 }
 0x309   : > { %v3562_v60 = vsel %vm3556_vm10, %v3549_v21, 920167782  ;;  %v3278_v17 = vsub.s32 0, %v7243_v18  ;;  %v3557_v39 = vsel %vm3553_vm4, %v3537_v47, %v3540_v43  ;;  %v3565_v29 = vsel %vm3553_vm4, %v3543_v25, %v3546_v13 }
 0x30a   : > { %v3563_v37 = vsel %vm3555_vm2, %v3546_v13, %v3562_v60  ;;  %v3395_v19 = vand.u32 2147483647, %v3394_v26  ;;  %v3559_v1 = vsel %vm3555_vm2, %v3543_v25, %v3558_v15  ;;  %v3566_v61 = vsel %vm3556_vm10, %v3552_v31, 1326507024 }
 0x30b   : > { %v3564_v56 = vsel %vm3554_vm7, %v3561_v59, %v3563_v37  ;;  %v4328_v4 = vmin.u32 %v3278_v17, %v7243_v18  ;;  %v3567_v45 = vsel %vm3555_vm2, %v3549_v21, %v3566_v61  ;;  %4762 = vsinq.f32 %v7057_v22 }
 0x30c   : > { %v7258_v49 = vmul.u32.u64.low %v7209_v50, %v3564_v56  ;;  %v7259_v54 = vmul.u32.u64.high %v7209_v50, %v3564_v56, %v7258_v49  ;;  %v3568_v43 = vsel %vm3554_vm7, %v3565_v29, %v3567_v45  ;;  %v4335_v25 = vadd.s32 4294967169, %v3422_v20 }
 0x30d   : > { %v3730_v13 = vand.u32 2139095040, %v7193_v3  ;;  %v3397_v47 = vcvt.s32.f32 %v3390_v10  ;;  %v3280_v30 = vclz %v4328_v4  ;;  %4764 = vcosq.f32 %v7198_v7 }
 0x30e   : > { %v7267_v42 = vmul.u32.u64.low %v7209_v50, %v3568_v43  ;;  %v7268_v31 = vmul.u32.u64.high %v7209_v50, %v3568_v43, %v7267_v42  ;;  %v7275_v21 = vsel %vm7232_vm14, %v6736_v58, %v7206_v40  ;;  %v3560_v22 = vsel %vm3554_vm7, %v3557_v39, %v3559_v1 }
 0x30f   : > { %v3428_v20 = vadd.s32 1, %v4335_v25  ;;  %v3398_v15 = vmul.f32 %v3397_v47, %v3395_v19  ;;  %v4329_v59 = vadd.s32 4294967294, %v3280_v30  ;;  %v3579_v10 = vadd.s32 1, %v7259_v54 }
 0x310   : > { %v3426_v26 = vor.u32 8388608, %v3425_v5  ;;  %4766 = vsinq.f32 %v7198_v7  ;;  %v8592_v60 = vand.u32 2147483647, %v7193_v3  ;;  %v3731_v17 = vshrl.u32 %v3730_v13, 23 }
 0x311   : > { %vm3429_vm2 = vcmp.gt.s32.totalorder %v3428_v20, 0  ;;  %4768 = vcosq.f32 %v7275_v21  ;;  %v3268_v40 = vadd.s32 %v7178_v52, %v7175_v24  ;;  %vm4330_vm4 = vcmp.lt.s32.totalorder %v4329_v59, 0 }
 0x312   : > { %vm3578_vm10 = vc.u32 %v7268_v31, %v7258_v49  ;;  %v3283_v63 = vsel %vm4330_vm4, 0, %v4329_v59  ;;  %v3576_v39 = vmul.u32 %v7209_v50, %v3560_v22  ;;  %v3430_v37 = vsel %vm3429_vm2, %v3428_v20, 0 }
 0x313   : > { %v3580_v5 = vsel %vm3578_vm10, %v3579_v10, %v7259_v54  ;;  %vm8603_vm7 = vcmp.lt.s32.totalorder %v6901_v55, 0  ;;  %v3399_v7 = vxor.u32 2147483648, %v3398_v15  ;;  %v3284_v29 = vsub.s32 32, %v3283_v63  ;;  %v8885_v54 = vld [vmem:[#allocation51_spill] sm:$0xff] }
 0x314   : > { %v3288_v19 = vsub.s32 4294967266, %v3283_v63  ;;  %v7290_v1 = vshll.u32 %v3426_v26, 8  ;;  %v3581_v56 = vadd.s32 %v3580_v5, %v3576_v39  ;;  %v3432_v61 = vand.u32 31, %v3430_v37 }
 0x315   : > { %v4347_v24 = vadd.s32 4294967169, %v3731_v17  ;;  %v7294_v52 = vand.u32 8388607, %v8592_v60  ;;  %v3285_v4 = vshll.u32 %v7243_v18, %v3283_v63  ;;  %v3286_v50 = vshrl.u32 %v3268_v40, %v3284_v29  ;;  %v7301_v25 = vpop.eup %4762 }
 0x316   : > { %v3289_v45 = vadd.s32 127, %v3288_v19  ;;  %v7299_v43 = vadd.f32 %v6860_v27, %v8885_v54  ;;  %v3582_v13 = vadd.s32 536870912, %v3581_v56  ;;  %v3431_v47 = vshrl.u32 %v3430_v37, 5 }
 0x317   : > { %v3433_v30 = vsub.s32 32, %v3432_v61  ;;  %v3435_v42 = vshll.u32 %v8661_v35, %v3432_v61  ;;  %v3287_v22 = vor.u32 %v3286_v50, %v3285_v4  ;;  %v3438_v59 = vshll.u32 %v8664_v0, %v3432_v61  ;;  %v7306_v18 = vpop.eup %4764 }
 0x318   : > { %v3290_v20 = vshll.u32 %v3289_v45, 23  ;;  %v3441_v10 = vshll.u32 %v8665_v51, %v3432_v61  ;;  %8886 = vst [vmem:[#allocation51_spill] sm:$0xff] %v7306_v18  ;;  %v7308_v26 = vshrl.u32 %v3582_v13, 30  ;;  %v3444_v40 = vshll.u32 %v8666_v14, %v3432_v61 }
 0x319   : > { %v3436_v27 = vshrl.u32 %v8664_v0, %v3433_v30  ;;  %v3439_v17 = vshrl.u32 %v8665_v51, %v3433_v30  ;;  %v3294_v39 = vcvt.s32.f32 %v3287_v22  ;;  %v3442_v5 = vshrl.u32 %v8666_v14, %v3433_v30 }
 0x31a   : > { %8887 = vst [vmem:[#allocation115_spill] sm:$0xff] %v7308_v26  ;;  %v3291_v63 = vor.u32 4788187, %v3290_v20  ;;  %v3445_v37 = vshrl.u32 %v8667_v46, %v3433_v30  ;;  %v7315_v29 = vpop.eup %4766  ;;  %v3584_v19 = vshll.u32 %v7308_v26, 30  ;;  %v3447_v45 = vshll.u32 %v8667_v46, %v3432_v61 }
 0x31b   : > { %8888 = vst [vmem:[#allocation116_spill] sm:$0xff] %v7315_v29  ;;  %v3437_v4 = vor.u32 %v3436_v27, %v3435_v42  ;;  %v3440_v50 = vor.u32 %v3439_v17, %v3438_v59  ;;  %v7319_v54 = vpop.eup %4768  ;;  %v3443_v60 = vor.u32 %v3442_v5, %v3441_v10  ;;  %v3448_v20 = vshrl.u32 %v8669_v28, %v3433_v30 }
 0x31c   : > { %8889 = vst [vmem:[#allocation117_spill] sm:$0xff] %v7319_v54  ;;  %v3292_v13 = vand.u32 2147483647, %v3291_v63  ;;  %v3446_v62 = vor.u32 %v3445_v37, %v3444_v40  ;;  %v8890_v22 = vand.u32 2147483647, %v6901_v55  ;;  %v8891_v18 = vmov 0 }
 0x31d   : > { %v3400_v26 = vsel %vm8603_vm7, %v3399_v7, %v3398_v15  ;;  %v7330_v42 = vsub.s32 %v3581_v56, %v3584_v19  ;;  %v3434_v61 = vshrl.u32 %v8661_v35, %v3433_v30  ;;  %vm3450_vm4 = vcmp.lt.s32.totalorder %v3431_v47, 1 }
 0x31e   : > { %vm7324_vm2 = vcmp.le.f32.partialorder %v8890_v22, 0.7853982  ;;  %vm8604_vm10 = vcmp.lt.s32.totalorder %v7027_v12, 0  ;;  %v3295_v59 = vmul.f32 %v3294_v39, %v3292_v13  ;;  %v3449_v10 = vor.u32 %v3448_v20, %v3447_v45 }
 0x31f   : > { %v8892_v18 = vsel %vm7324_vm2, 4294967295, %v8891_v18  ;;  %vm3452_vm15 = vcmp.lt.s32.totalorder %v3431_v47, 3  ;;  %vm3453_vm5 = vcmp.lt.s32.totalorder %v3431_v47, 4  ;;  %v3587_v27 = vsub.s32 0, %v7330_v42 }
 0x320   : > { %8893 = vst [vmem:[#allocation118_spill] sm:$0xff] %v8892_v18  ;;  %v3455_v17 = vsel %vm3453_vm5, %v3443_v60, 2102212464  ;;  %v3458_v40 = vsel %vm3450_vm4, %v3437_v4, %v3440_v50  ;;  %v3459_v63 = vsel %vm3453_vm5, %v3446_v62, 920167782  ;;  %vm3451_vm12 = vcmp.lt.s32.totalorder %v3431_v47, 2 }
 0x321   : > { %v3460_v5 = vsel %vm3452_vm15, %v3443_v60, %v3459_v63  ;;  %v3462_v37 = vsel %vm3450_vm4, %v3440_v50, %v3443_v60  ;;  %v3737_v15 = vadd.s32 1, %v4347_v24  ;;  %v4340_v7 = vmin.u32 %v3587_v27, %v7330_v42 }
 0x322   : > { %v3454_v56 = vsel %vm3450_vm4, %v3434_v61, %v3437_v4  ;;  %v3461_v30 = vsel %vm3451_vm12, %v3458_v40, %v3460_v5  ;;  %v3463_v19 = vsel %vm3453_vm5, %v3449_v10, 1326507024  ;;  %v3456_v22 = vsel %vm3452_vm15, %v3440_v50, %v3455_v17 }
 0x323   : > { %v3464_v39 = vsel %vm3452_vm15, %v3446_v62, %v3463_v19  ;;  %v7338_v45 = vmul.u32.u64.low %v7290_v1, %v3461_v30  ;;  %v7339_v13 = vmul.u32.u64.high %v7290_v1, %v3461_v30, %v7338_v45  ;;  %v3296_v20 = vxor.u32 2147483648, %v3295_v59 }
 0x324   : > { %v3589_v29 = vclz %v4340_v7  ;;  %v3465_v54 = vsel %vm3451_vm12, %v3462_v37, %v3464_v39  ;;  %v3735_v60 = vor.u32 8388608, %v7294_v52  ;;  %4770 = vsinq.f32 %v7275_v21 }
 0x325   : > { %v7346_v24 = vmul.u32.u64.low %v7290_v1, %v3465_v54  ;;  %v7347_v4 = vmul.u32.u64.high %v7290_v1, %v3465_v54, %v7346_v24  ;;  %vm3738_vm5 = vcmp.gt.s32.totalorder %v3737_v15, 0  ;;  %v3457_v62 = vsel %vm3451_vm12, %v3454_v56, %v3456_v22 }
 0x326   : > { %v4341_v50 = vadd.s32 4294967294, %v3589_v29  ;;  %v3739_v61 = vsel %vm3738_vm5, %v3737_v15, 0  ;;  %v7352_v10 = vadd.f32 %v6956_v44, %v6082_v34  ;;  %v7357_v27 = vsel %vm7324_vm2, %v6901_v55, %v3400_v26 }
 0x327   : > { %v3577_v21 = vadd.s32 %v7258_v49, %v7268_v31  ;;  %v3476_v52 = vadd.s32 1, %v7339_v13  ;;  %v3741_v54 = vand.u32 31, %v3739_v61  ;;  %v7364_v47 = vsel %vm8604_vm10, %v3296_v20, %v3295_v59 }
 0x328   : > { %vm4342_vm15 = vcmp.lt.s32.totalorder %v4341_v50, 0  ;;  %v7366_v29 = vshll.u32 %v3735_v60, 8  ;;  %v3473_v17 = vmul.u32 %v7290_v1, %v3457_v62  ;;  %vm3475_vm12 = vc.u32 %v7347_v4, %v7338_v45 }
 0x329   : > { %v3592_v44 = vsel %vm4342_vm15, 0, %v4341_v50  ;;  %v3742_v26 = vsub.s32 32, %v3741_v54  ;;  %v3477_v40 = vsel %vm3475_vm12, %v3476_v52, %v7339_v13  ;;  %v3740_v63 = vshrl.u32 %v3739_v61, 5 }
 0x32a   : > { %v3593_v49 = vsub.s32 32, %v3592_v44  ;;  %v3597_v31 = vsub.s32 4294967266, %v3592_v44  ;;  %v3594_v59 = vshll.u32 %v7330_v42, %v3592_v44  ;;  %v3478_v5 = vadd.s32 %v3477_v40, %v3473_v17 }
 0x32b   : > { %v3744_v37 = vshll.u32 %v8661_v35, %v3741_v54  ;;  %v3745_v15 = vshrl.u32 %v8664_v0, %v3742_v26  ;;  %v3747_v1 = vshll.u32 %v8664_v0, %v3741_v54  ;;  %v3748_v30 = vshrl.u32 %v8665_v51, %v3742_v26 }
 0x32c   : > { %v3595_v7 = vshrl.u32 %v3577_v21, %v3593_v49  ;;  %v3598_v56 = vadd.s32 127, %v3597_v31  ;;  %v3479_v19 = vadd.s32 536870912, %v3478_v5  ;;  %v3750_v22 = vshll.u32 %v8665_v51, %v3741_v54 }
 0x32d   : > { %v3751_v39 = vshrl.u32 %v8666_v14, %v3742_v26  ;;  %v3627_v13 = vand.u32 2139095040, %v7299_v43  ;;  %v3746_v60 = vor.u32 %v3745_v15, %v3744_v37  ;;  %v3749_v24 = vor.u32 %v3748_v30, %v3747_v1 }
 0x32e   : > { %v3596_v20 = vor.u32 %v3595_v7, %v3594_v59  ;;  %v3599_v42 = vshll.u32 %v3598_v56, 23  ;;  %v7381_v50 = vpop.eup %4770  ;;  %v8894_v62 = vand.u32 2147483647, %v7027_v12  ;;  %v8895_v61 = vmov 0 }
 0x32f   : > { %v7389_v21 = vshrl.u32 %v3479_v19, 30  ;;  %v3752_v52 = vor.u32 %v3751_v39, %v3750_v22  ;;  %v3753_v44 = vshll.u32 %v8666_v14, %v3741_v54  ;;  %v3754_v17 = vshrl.u32 %v8667_v46, %v3742_v26 }
 0x330   : > { %vm7385_vm4 = vcmp.le.f32.partialorder %v8894_v62, 0.7853982  ;;  %v3600_v49 = vor.u32 4788187, %v3599_v42  ;;  %v3743_v31 = vshrl.u32 %v8661_v35, %v3742_v26  ;;  %v3756_v40 = vshll.u32 %v8667_v46, %v3741_v54 }
 0x331   : > { %v8896_v61 = vsel %vm7385_vm4, 4294967295, %v8895_v61  ;;  %8897 = vst [vmem:[#allocation119_spill] sm:$0xff] %v7389_v21  ;;  %v3757_v59 = vshrl.u32 %v8669_v28, %v3742_v26  ;;  %v3603_v37 = vcvt.s32.f32 %v3596_v20  ;;  %v3481_v15 = vshll.u32 %v7389_v21, 30 }
 0x332   : > { %v3755_v7 = vor.u32 %v3754_v17, %v3753_v44  ;;  %vm3759_vm5 = vcmp.lt.s32.totalorder %v3740_v63, 1  ;;  %v3601_v56 = vand.u32 2147483647, %v3600_v49  ;;  %vm3761_vm15 = vcmp.lt.s32.totalorder %v3740_v63, 3 }
 0x333   : > { %v3758_v1 = vor.u32 %v3757_v59, %v3756_v40  ;;  %vm3762_vm12 = vcmp.lt.s32.totalorder %v3740_v63, 4  ;;  %v7397_v30 = vsub.s32 %v3478_v5, %v3481_v15  ;;  %v3767_v22 = vsel %vm3759_vm5, %v3746_v60, %v3749_v24 }
 0x334   : > { %v3764_v19 = vsel %vm3762_vm12, %v3752_v52, 2102212464  ;;  %v3768_v39 = vsel %vm3762_vm12, %v3755_v7, 920167782  ;;  %vm3760_vm7 = vcmp.lt.s32.totalorder %v3740_v63, 2  ;;  %v3763_v42 = vsel %vm3759_vm5, %v3743_v31, %v3746_v60 }
 0x335   : > { %v3769_v62 = vsel %vm3761_vm15, %v3752_v52, %v3768_v39  ;;  %v3771_v54 = vsel %vm3759_vm5, %v3749_v24, %v3752_v52  ;;  %v3604_v34 = vmul.f32 %v3603_v37, %v3601_v56  ;;  %v3484_v26 = vsub.s32 0, %v7397_v30 }
 0x336   : > { %v3770_v20 = vsel %vm3760_vm7, %v3767_v22, %v3769_v62  ;;  %v3772_v44 = vsel %vm3762_vm12, %v3758_v1, 1326507024  ;;  %v3765_v17 = vsel %vm3761_vm15, %v3749_v24, %v3764_v19  ;;  %4772 = vcosq.f32 %v7357_v27 }
 0x337   : > { %v3773_v49 = vsel %vm3761_vm15, %v3755_v7, %v3772_v44  ;;  %v7402_v40 = vmul.u32.u64.low %v7366_v29, %v3770_v20  ;;  %v7403_v59 = vmul.u32.u64.high %v7366_v29, %v3770_v20, %v7402_v40  ;;  %v4336_v5 = vmin.u32 %v3484_v26, %v7397_v30 }
 0x338   : > { %v3774_v60 = vsel %vm3760_vm7, %v3771_v54, %v3773_v49  ;;  %v3628_v52 = vshrl.u32 %v3627_v13, 23  ;;  %v7413_v31 = vsel %vm7385_vm4, %v7027_v12, %v7364_v47  ;;  %v8898_v15 = vand.u32 2147483647, %v7299_v43 }
 0x339   : > { %v7416_v24 = vmul.u32.u64.low %v7366_v29, %v3774_v60  ;;  %v7417_v37 = vmul.u32.u64.high %v7366_v29, %v3774_v60, %v7416_v24  ;;  %v3605_v56 = vxor.u32 2147483648, %v3604_v34  ;;  %v3486_v1 = vclz %v4336_v5 }
 0x33a   : > { %v3631_v7 = vand.u32 8388607, %v8898_v15  ;;  %v3766_v19 = vsel %vm3760_vm7, %v3763_v42, %v3765_v17  ;;  %v4343_v22 = vadd.s32 4294967169, %v3628_v52  ;;  %4774 = vsinq.f32 %v7357_v27 }
 0x33b   : > { %v8899_v13 = vand.u32 2147483647, %v7064_v36  ;;  %v8900_v39 = vmov 0  ;;  %vm8615_vm15 = vcmp.lt.s32.totalorder %v7064_v36, 0  ;;  %v3785_v47 = vadd.s32 1, %v7403_v59 }
 0x33c   : > { %4776 = vcosq.f32 %v7413_v31  ;;  %v4337_v62 = vadd.s32 4294967294, %v3486_v1  ;;  %v3634_v54 = vadd.s32 1, %v4343_v22  ;;  %v3936_v63 = vand.u32 2139095040, %v7352_v10 }
 0x33d   : > { %vm7425_vm5 = vcmp.le.f32.partialorder %v8899_v13, 0.7853982  ;;  %v3782_v42 = vmul.u32 %v7366_v29, %v3766_v19  ;;  %vm3784_vm7 = vc.u32 %v7417_v37, %v7402_v40  ;;  %v3632_v27 = vor.u32 8388608, %v3631_v7 }
 0x33e   : > { %v8901_v39 = vsel %vm7425_vm5, 4294967295, %v8900_v39  ;;  %v8605_v26 = vand.u32 2147483647, %v7352_v10  ;;  %v3606_v20 = vsel %vm8615_vm15, %v3605_v56, %v3604_v34  ;;  %vm4338_vm12 = vcmp.lt.s32.totalorder %v4337_v62, 0 }
 0x33f   : > { %8902 = vst [vmem:[#allocation120_spill] sm:$0xff] %v8901_v39  ;;  %v3786_v44 = vsel %vm3784_vm7, %v3785_v47, %v7403_v59  ;;  %vm3635_vm10 = vcmp.gt.s32.totalorder %v3634_v54, 0  ;;  %v3489_v17 = vsel %vm4338_vm12, 0, %v4337_v62  ;;  %v3937_v60 = vshrl.u32 %v3936_v63, 23 }
 0x340   : > { %v3787_v49 = vadd.s32 %v3786_v44, %v3782_v42  ;;  %v3636_v5 = vsel %vm3635_vm10, %v3634_v54, 0  ;;  %v3474_v29 = vadd.s32 %v7338_v45, %v7347_v4  ;;  %v3490_v52 = vsub.s32 32, %v3489_v17  ;;  %v7451_v1 = vpop.eup %4772 }
 0x341   : > { %v3494_v24 = vsub.s32 4294967266, %v3489_v17  ;;  %v7442_v15 = vshrl.u32 %v3636_v5, 5  ;;  %v7447_v7 = vsel %vm7425_vm5, %v7064_v36, %v3606_v20  ;;  %v3638_v56 = vand.u32 31, %v3636_v5  ;;  %8903 = vst [vmem:[#allocation121_spill] sm:$0xff] %v7451_v1 }
 0x342   : > { %v3788_v34 = vadd.s32 536870912, %v3787_v49  ;;  %v7449_v59 = vshll.u32 %v3632_v27, 8  ;;  %v3491_v19 = vshll.u32 %v7397_v30, %v3489_v17  ;;  %v7456_v45 = vand.u32 8388607, %v8605_v26 }
 0x343   : > { %v3495_v22 = vadd.s32 127, %v3494_v24  ;;  %v7460_v4 = vadd.f32 %v7011_v38, %v6206_v23  ;;  %v3492_v13 = vshrl.u32 %v3474_v29, %v3490_v52  ;;  %v3639_v62 = vsub.s32 32, %v3638_v56 }
 0x344   : > { %v7462_v47 = vshrl.u32 %v3788_v34, 30  ;;  %v4355_v54 = vadd.s32 4294967169, %v3937_v60  ;;  %v3641_v42 = vshll.u32 %v8661_v35, %v3638_v56  ;;  %v3644_v27 = vshll.u32 %v8664_v0, %v3638_v56  ;;  %v7467_v30 = vpop.eup %4774 }
 0x345   : > { %v3496_v63 = vshll.u32 %v3495_v22, 23  ;;  %vm3656_vm10 = vcmp.lt.s32.totalorder %v7442_v15, 1  ;;  %8905 = vst [vmem:[#allocation123_spill] sm:$0xff] %v7467_v30  ;;  %v3642_v44 = vshrl.u32 %v8664_v0, %v3639_v62  ;;  %v3645_v23 = vshrl.u32 %v8665_v51, %v3639_v62 }
 0x346   : > { %8904 = vst [vmem:[#allocation122_spill] sm:$0xff] %v7462_v47  ;;  %v3790_v20 = vshll.u32 %v7462_v47, 30  ;;  %v3647_v38 = vshll.u32 %v8665_v51, %v3638_v56  ;;  %v7473_v17 = vpop.eup %4776  ;;  %v3648_v60 = vshrl.u32 %v8666_v14, %v3639_v62  ;;  %v3650_v29 = vshll.u32 %v8666_v14, %v3638_v56 }
 0x347   : > { %8906 = vst [vmem:[#allocation124_spill] sm:$0xff] %v7473_v17  ;;  %v3497_v5 = vor.u32 4788187, %v3496_v63  ;;  %v3651_v52 = vshrl.u32 %v8667_v46, %v3639_v62  ;;  %v3493_v24 = vor.u32 %v3492_v13, %v3491_v19  ;;  %v3643_v22 = vor.u32 %v3642_v44, %v3641_v42 }
 0x348   : > { %v7478_v34 = vsub.s32 %v3787_v49, %v3790_v20  ;;  %v3646_v26 = vor.u32 %v3645_v23, %v3644_v27  ;;  %v3649_v47 = vor.u32 %v3648_v60, %v3647_v38  ;;  %v3653_v36 = vshll.u32 %v8667_v46, %v3638_v56 }
 0x349   : > { %v3652_v39 = vor.u32 %v3651_v52, %v3650_v29  ;;  %v3654_v21 = vshrl.u32 %v8669_v28, %v3639_v62  ;;  %v3640_v63 = vshrl.u32 %v8661_v35, %v3639_v62  ;;  %vm3657_vm7 = vcmp.lt.s32.totalorder %v7442_v15, 2 }
 0x34a   : > { %v3793_v1 = vsub.s32 0, %v7478_v34  ;;  %vm3659_vm12 = vcmp.lt.s32.totalorder %v7442_v15, 4  ;;  %v3498_v30 = vand.u32 2147483647, %v3497_v5  ;;  %v3664_v13 = vsel %vm3656_vm10, %v3643_v22, %v3646_v26 }
 0x34b   : > { %v3655_v19 = vor.u32 %v3654_v21, %v3653_v36  ;;  %v3661_v49 = vsel %vm3659_vm12, %v3649_v47, 2102212464  ;;  %vm3658_vm15 = vcmp.lt.s32.totalorder %v7442_v15, 3  ;;  %v3665_v56 = vsel %vm3659_vm12, %v3652_v39, 920167782 }
 0x34c   : > { %v4348_v42 = vmin.u32 %v3793_v1, %v7478_v34  ;;  %v3668_v27 = vsel %vm3656_vm10, %v3646_v26, %v3649_v47  ;;  %v3500_v20 = vcvt.s32.f32 %v3493_v24  ;;  %v3660_v62 = vsel %vm3656_vm10, %v3640_v63, %v3643_v22 }
 0x34d   : > { %v3666_v44 = vsel %vm3658_vm15, %v3649_v47, %v3665_v56  ;;  %v3669_v23 = vsel %vm3659_vm12, %v3655_v19, 1326507024  ;;  %v3662_v36 = vsel %vm3658_vm15, %v3646_v26, %v3661_v49  ;;  %4778 = vsinq.f32 %v7413_v31 }
 0x34e   : > { %v3795_v38 = vclz %v4348_v42  ;;  %v3667_v21 = vsel %vm3657_vm7, %v3664_v13, %v3666_v44  ;;  %v3670_v5 = vsel %vm3658_vm15, %v3652_v39, %v3669_v23  ;;  %v3501_v60 = vmul.f32 %v3500_v20, %v3498_v30 }
 0x34f   : > { %v3671_v1 = vsel %vm3657_vm7, %v3668_v27, %v3670_v5  ;;  %v7499_v29 = vmul.u32.u64.low %v7449_v59, %v3667_v21  ;;  %v7500_v52 = vmul.u32.u64.high %v7449_v59, %v3667_v21, %v7499_v29  ;;  %4780 = vcosq.f32 %v7447_v7 }
 0x350   : > { %v4349_v24 = vadd.s32 4294967294, %v3795_v38  ;;  %v7505_v47 = vmul.u32.u64.low %v7449_v59, %v3671_v1  ;;  %v7506_v22 = vmul.u32.u64.high %v7449_v59, %v3671_v1, %v7505_v47  ;;  %vm8618_vm15 = vcmp.lt.s32.totalorder %v7186_v8, 0 }
 0x351   : > { %v3663_v39 = vsel %vm3657_vm7, %v3660_v62, %v3662_v36  ;;  %v3943_v26 = vadd.s32 1, %v4355_v54  ;;  %v3783_v30 = vadd.s32 %v7402_v40, %v7417_v37  ;;  %v3941_v63 = vor.u32 8388608, %v7456_v45 }
 0x352   : > { %vm4350_vm10 = vcmp.lt.s32.totalorder %v4349_v24, 0  ;;  %v3833_v31 = vand.u32 2139095040, %v7460_v4  ;;  %v3502_v19 = vxor.u32 2147483648, %v3501_v60  ;;  %v3682_v13 = vadd.s32 1, %v7500_v52 }
 0x353   : > { %v3798_v49 = vsel %vm4350_vm10, 0, %v4349_v24  ;;  %vm3944_vm12 = vcmp.gt.s32.totalorder %v3943_v26, 0  ;;  %v3679_v27 = vmul.u32 %v7449_v59, %v3663_v39  ;;  %v8616_v15 = vand.u32 2147483647, %v7460_v4 }
 0x354   : > { %v3799_v42 = vsub.s32 32, %v3798_v49  ;;  %v3803_v56 = vsub.s32 4294967266, %v3798_v49  ;;  %v3800_v54 = vshll.u32 %v7478_v34, %v3798_v49  ;;  %vm3681_vm7 = vc.u32 %v7506_v22, %v7499_v29 }
 0x355   : > { %v3945_v40 = vsel %vm3944_vm12, %v3943_v26, 0  ;;  %v3834_v37 = vshrl.u32 %v3833_v31, 23  ;;  %v3683_v62 = vsel %vm3681_vm7, %v3682_v13, %v7500_v52  ;;  %v7525_v23 = vsel %vm8618_vm15, %v3502_v19, %v3501_v60 }
 0x356   : > { %v3801_v45 = vshrl.u32 %v3783_v30, %v3799_v42  ;;  %v3804_v20 = vadd.s32 127, %v3803_v56  ;;  %v3946_v44 = vshrl.u32 %v3945_v40, 5  ;;  %v3684_v38 = vadd.s32 %v3683_v62, %v3679_v27 }
 0x357   : > { %v3947_v59 = vand.u32 31, %v3945_v40  ;;  %v7527_v36 = vshll.u32 %v3941_v63, 8  ;;  %v4351_v5 = vadd.s32 4294967169, %v3834_v37  ;;  %v7531_v1 = vand.u32 8388607, %v8616_v15  ;;  %v7534_v39 = vpop.eup %4778 }
 0x358   : > { %v3802_v21 = vor.u32 %v3801_v45, %v3800_v54  ;;  %v3805_v34 = vshll.u32 %v3804_v20, 23  ;;  %v3685_v24 = vadd.s32 536870912, %v3684_v38  ;;  %vm3965_vm10 = vcmp.lt.s32.totalorder %v3946_v44, 1 }
 0x359   : > { %v3948_v47 = vsub.s32 32, %v3947_v59  ;;  %v3950_v52 = vshll.u32 %v8661_v35, %v3947_v59  ;;  %v3953_v30 = vshll.u32 %v8664_v0, %v3947_v59  ;;  %v3956_v63 = vshll.u32 %v8665_v51, %v3947_v59  ;;  %v7538_v31 = vpop.eup %4780 }
 0x35a   : > { %v3806_v60 = vor.u32 4788187, %v3805_v34  ;;  %v3809_v26 = vcvt.s32.f32 %v3802_v21  ;;  %8907 = vst [vmem:[#allocation125_spill] sm:$0xff] %v7538_v31  ;;  %v7541_v19 = vshrl.u32 %v3685_v24, 30  ;;  %v3959_v42 = vshll.u32 %v8666_v14, %v3947_v59 }
 0x35b   : > { %v3951_v49 = vshrl.u32 %v8664_v0, %v3948_v47  ;;  %v3954_v13 = vshrl.u32 %v8665_v51, %v3948_v47  ;;  %v3957_v27 = vshrl.u32 %v8666_v14, %v3948_v47  ;;  %v3960_v54 = vshrl.u32 %v8667_v46, %v3948_v47 }
 0x35c   : > { %8908 = vst [vmem:[#allocation126_spill] sm:$0xff] %v7541_v19  ;;  %v3807_v56 = vand.u32 2147483647, %v3806_v60  ;;  %v3962_v40 = vshll.u32 %v8667_v46, %v3947_v59  ;;  %v3687_v37 = vshll.u32 %v7541_v19, 30  ;;  %v3963_v62 = vshrl.u32 %v8669_v28, %v3948_v47 }
 0x35d   : > { %v3952_v45 = vor.u32 %v3951_v49, %v3950_v52  ;;  %v3955_v20 = vor.u32 %v3954_v13, %v3953_v30  ;;  %v3949_v34 = vshrl.u32 %v8661_v35, %v3948_v47  ;;  %v3958_v24 = vor.u32 %v3957_v27, %v3956_v63 }
 0x35e   : > { %v3810_v21 = vmul.f32 %v3809_v26, %v3807_v56  ;;  %v3961_v15 = vor.u32 %v3960_v54, %v3959_v42  ;;  %v7552_v31 = vsub.s32 %v3684_v38, %v3687_v37  ;;  %v3964_v60 = vor.u32 %v3963_v62, %v3962_v40 }
 0x35f   : > { %vm3967_vm7 = vcmp.lt.s32.totalorder %v3946_v44, 3  ;;  %vm3968_vm15 = vcmp.lt.s32.totalorder %v3946_v44, 4  ;;  %v3973_v59 = vsel %vm3965_vm10, %v3952_v45, %v3955_v20  ;;  %vm3966_vm12 = vcmp.lt.s32.totalorder %v3946_v44, 2 }
 0x360   : > { %v3811_v18 = vxor.u32 2147483648, %v3810_v21  ;;  %v3970_v55 = vsel %vm3968_vm15, %v3958_v24, 2102212464  ;;  %v3974_v17 = vsel %vm3968_vm15, %v3961_v15, 920167782  ;;  %v3690_v52 = vsub.s32 0, %v7552_v31 }
 0x361   : > { %v3975_v30 = vsel %vm3967_vm7, %v3958_v24, %v3974_v17  ;;  %v3977_v26 = vsel %vm3965_vm10, %v3955_v20, %v3958_v24  ;;  %v3969_v47 = vsel %vm3965_vm10, %v3949_v34, %v3952_v45  ;;  %v3971_v63 = vsel %vm3967_vm7, %v3955_v20, %v3970_v55 }
 0x362   : > { %v3976_v49 = vsel %vm3966_vm12, %v3973_v59, %v3975_v30  ;;  %v3978_v38 = vsel %vm3968_vm15, %v3964_v60, 1326507024  ;;  %v4344_v13 = vmin.u32 %v3690_v52, %v7552_v31  ;;  %v3838_v56 = vor.u32 8388608, %v7531_v1 }
 0x363   : > { %v3979_v42 = vsel %vm3967_vm7, %v3961_v15, %v3978_v38  ;;  %v8624_v27 = vand.u32 2147483647, %v6346_v6  ;;  %vm8909_vm5 = vcmp.lt.s32.totalorder %v7193_v3, 0  ;;  %v3972_v55 = vsel %vm3966_vm12, %v3969_v47, %v3971_v63 }
 0x364   : > { %v3812_v54 = vsel %vm8909_vm5, %v3811_v18, %v3810_v21  ;;  %v3980_v40 = vsel %vm3966_vm12, %v3977_v26, %v3979_v42  ;;  %v7564_v17 = vmul.u32.u64.low %v7527_v36, %v3976_v49  ;;  %v7565_v37 = vmul.u32.u64.high %v7527_v36, %v3976_v49, %v7564_v17 }
 0x365   : > { %v3692_v44 = vclz %v4344_v13  ;;  %v7569_v45 = vmul.u32.u64.low %v7527_v36, %v3980_v40  ;;  %v7570_v20 = vmul.u32.u64.high %v7527_v36, %v3980_v40, %v7569_v45  ;;  %4782 = vsinq.f32 %v7447_v7 }
 0x366   : > { %v8910_v15 = vand.u32 2147483647, %v7186_v8  ;;  %v8911_v1 = vmov 0  ;;  %v8913_v18 = vand.u32 2147483647, %v7193_v3  ;;  %v8914_v62 = vmov 0 }
 0x367   : > { %v3840_v21 = vadd.s32 1, %v4351_v5  ;;  %v3680_v24 = vadd.s32 %v7499_v29, %v7506_v22  ;;  %v4345_v60 = vadd.s32 4294967294, %v3692_v44  ;;  %v3988_v59 = vmul.u32 %v7527_v36, %v3972_v55 }
 0x368   : > { %vm7575_vm15 = vcmp.le.f32.partialorder %v8910_v15, 0.7853982  ;;  %vm7581_vm5 = vcmp.le.f32.partialorder %v8913_v18, 0.7853982  ;;  %v3991_v52 = vadd.s32 1, %v7565_v37  ;;  %v7600_v5 = vshll.u32 %v3838_v56, 8 }
 0x369   : > { %v8912_v1 = vsel %vm7575_vm15, 4294967295, %v8911_v1  ;;  %v8915_v62 = vsel %vm7581_vm5, 4294967295, %v8914_v62  ;;  %v7589_v34 = vsel %vm7575_vm15, %v7186_v8, %v7525_v23  ;;  %v7594_v7 = vsel %vm7581_vm5, %v7193_v3, %v3812_v54 }
 0x36a   : > { %8916 = vst [vmem:[#allocation127_spill] sm:$0xff] %v8915_v62  ;;  %vm3841_vm10 = vcmp.gt.s32.totalorder %v3840_v21, 0  ;;  %vm4346_vm12 = vcmp.lt.s32.totalorder %v4345_v60, 0  ;;  %vm3990_vm7 = vc.u32 %v7570_v20, %v7564_v17  ;;  %v7606_v30 = vand.u32 8388607, %v8624_v27 }
 0x36b   : > { %v3842_v23 = vsel %vm3841_vm10, %v3840_v21, 0  ;;  %v3695_v26 = vsel %vm4346_vm12, 0, %v4345_v60  ;;  %v3992_v29 = vsel %vm3990_vm7, %v3991_v52, %v7565_v37  ;;  %vm8633_vm5 = vcmp.lt.s32.totalorder %v7299_v43, 0 }
 0x36c   : > { %v3843_v22 = vshrl.u32 %v3842_v23, 5  ;;  %v3844_v47 = vand.u32 31, %v3842_v23  ;;  %v3696_v36 = vsub.s32 32, %v3695_v26  ;;  %v3697_v63 = vshll.u32 %v7552_v31, %v3695_v26 }
 0x36d   : > { %v3700_v49 = vsub.s32 4294967266, %v3695_v26  ;;  %v3993_v38 = vadd.s32 %v3992_v29, %v3988_v59  ;;  %vm2422_vm2 = vcmp.lt.s32.totalorder %v6619_v11, 3  ;;  %4784 = vcosq.f32 %v7589_v34 }
 0x36e   : > { %v3845_v13 = vsub.s32 32, %v3844_v47  ;;  %v3847_v42 = vshll.u32 %v8661_v35, %v3844_v47  ;;  %v3850_v56 = vshll.u32 %v8664_v0, %v3844_v47  ;;  %v3853_v54 = vshll.u32 %v8665_v51, %v3844_v47 }
 0x36f   : > { %v3698_v40 = vshrl.u32 %v3680_v24, %v3696_v36  ;;  %v3701_v44 = vadd.s32 127, %v3700_v49  ;;  %v3994_v55 = vadd.s32 536870912, %v3993_v38  ;;  %v3856_v45 = vshll.u32 %v8666_v14, %v3844_v47  ;;  %v7621_v23 = vpop.eup %4782 }
 0x370   : > { %v3846_v37 = vshrl.u32 %v8661_v35, %v3845_v13  ;;  %v3848_v15 = vshrl.u32 %v8664_v0, %v3845_v13  ;;  %v3851_v31 = vshrl.u32 %v8665_v51, %v3845_v13  ;;  %v3854_v18 = vshrl.u32 %v8666_v14, %v3845_v13 }
 0x371   : > { %v3699_v21 = vor.u32 %v3698_v40, %v3697_v63  ;;  %v3702_v60 = vshll.u32 %v3701_v44, 23  ;;  %v7618_v59 = vshrl.u32 %v3994_v55, 30  ;;  %v3857_v52 = vshrl.u32 %v8667_v46, %v3845_v13 }
 0x372   : > { %v3849_v24 = vor.u32 %v3848_v15, %v3847_v42  ;;  %v3852_v26 = vor.u32 %v3851_v31, %v3850_v56  ;;  %v3855_v29 = vor.u32 %v3854_v18, %v3853_v54  ;;  %v3859_v36 = vshll.u32 %v8667_v46, %v3844_v47 }
 0x373   : > { %v3703_v49 = vor.u32 4788187, %v3702_v60  ;;  %v3706_v27 = vcvt.s32.f32 %v3699_v21  ;;  %v3996_v62 = vshll.u32 %v7618_v59, 30  ;;  %v3858_v3 = vor.u32 %v3857_v52, %v3856_v45 }
 0x374   : > { %v3860_v19 = vshrl.u32 %v8669_v28, %v3845_v13  ;;  %vm3862_vm10 = vcmp.lt.s32.totalorder %v3843_v22, 1  ;;  %vm3863_vm12 = vcmp.lt.s32.totalorder %v3843_v22, 2  ;;  %vm3864_vm7 = vcmp.lt.s32.totalorder %v3843_v22, 3 }
 0x375   : > { %v3704_v63 = vand.u32 2147483647, %v3703_v49  ;;  %v7627_v40 = vsub.s32 %v3993_v38, %v3996_v62  ;;  %vm3865_vm15 = vcmp.lt.s32.totalorder %v3843_v22, 4  ;;  %v3866_v42 = vsel %vm3862_vm10, %v3846_v37, %v3849_v24 }
 0x376   : > { %v3861_v56 = vor.u32 %v3860_v19, %v3859_v36  ;;  %v3867_v46 = vsel %vm3865_vm15, %v3855_v29, 2102212464  ;;  %v3870_v47 = vsel %vm3862_vm10, %v3849_v24, %v3852_v26  ;;  %v3871_v54 = vsel %vm3865_vm15, %v3858_v3, 920167782 }
 0x377   : > { %v3707_v44 = vmul.f32 %v3706_v27, %v3704_v63  ;;  %v3999_v55 = vsub.s32 0, %v7627_v40  ;;  %v3868_v28 = vsel %vm3864_vm7, %v3852_v26, %v3867_v46  ;;  %v3872_v13 = vsel %vm3864_vm7, %v3855_v29, %v3871_v54 }
 0x378   : > { %v3873_v45 = vsel %vm3863_vm12, %v3870_v47, %v3872_v13  ;;  %v3874_v62 = vsel %vm3862_vm10, %v3852_v26, %v3855_v29  ;;  %v3875_v38 = vsel %vm3865_vm15, %v3861_v56, 1326507024  ;;  %v2404_v37 = vshrl.u32 %v8661_v35, %v6613_v41 }
 0x379   : > { %v4356_v19 = vmin.u32 %v3999_v55, %v7627_v40  ;;  %v3869_v15 = vsel %vm3863_vm12, %v3866_v42, %v3868_v28  ;;  %v3876_v27 = vsel %vm3864_vm7, %v3858_v3, %v3875_v38  ;;  %v2406_v31 = vshrl.u32 %v8664_v0, %v6613_v41 }
 0x37a   : > { %v3708_v18 = vxor.u32 2147483648, %v3707_v44  ;;  %v3877_v21 = vsel %vm3863_vm12, %v3874_v62, %v3876_v27  ;;  %v7645_v60 = vmul.u32.u64.low %v7600_v5, %v3873_v45  ;;  %v7646_v52 = vmul.u32.u64.high %v7600_v5, %v3873_v45, %v7645_v60 }
 0x37b   : > { %v4001_v24 = vclz %v4356_v19  ;;  %v7650_v26 = vmul.u32.u64.low %v7600_v5, %v3877_v21  ;;  %v7651_v29 = vmul.u32.u64.high %v7600_v5, %v3877_v21, %v7650_v26  ;;  %v2405_v36 = vshll.u32 %v8661_v35, %v6549_v48 }
 0x37c   : > { %v3989_v3 = vadd.s32 %v7564_v17, %v7570_v20  ;;  %v3885_v49 = vmul.u32 %v7600_v5, %v3869_v15  ;;  %v2408_v22 = vshll.u32 %v8664_v0, %v6549_v48  ;;  %v2409_v63 = vshrl.u32 %v8665_v51, %v6613_v41 }
 0x37d   : > { %v4357_v42 = vadd.s32 4294967294, %v4001_v24  ;;  %v2407_v56 = vor.u32 %v2406_v31, %v2405_v36  ;;  %v2411_v46 = vshll.u32 %v8665_v51, %v6549_v48  ;;  %v2412_v47 = vshrl.u32 %v8666_v14, %v6613_v41  ;;  %v8918_v24 = vld [vmem:[#allocation95_spill] sm:$0xff] }
 0x37e   : > { %v3709_v54 = vsel %vm8633_vm5, %v3708_v18, %v3707_v44  ;;  %v3888_v17 = vadd.s32 1, %v7646_v52  ;;  %v2396_v20 = vor.u32 8388608, %v7606_v30  ;;  %v2410_v5 = vor.u32 %v2409_v63, %v2408_v22 }
 0x37f   : > { %vm4358_vm15 = vcmp.lt.s32.totalorder %v4357_v42, 0  ;;  %vm3887_vm10 = vc.u32 %v7651_v29, %v7645_v60  ;;  %v2413_v55 = vor.u32 %v2412_v47, %v2411_v46  ;;  %vm2420_vm12 = vcmp.lt.s32.totalorder %v6619_v11, 1 }
 0x380   : > { %v4004_v28 = vsel %vm4358_vm15, 0, %v4357_v42  ;;  %v3889_v48 = vsel %vm3887_vm10, %v3888_v17, %v7646_v52  ;;  %vm2421_vm7 = vcmp.lt.s32.totalorder %v6619_v11, 2  ;;  %v2424_v45 = vsel %vm2420_vm12, %v2404_v37, %v2407_v56  ;;  %v8922_v17 = vld [vmem:[#allocation86_spill] sm:$0xff] }
 0x381   : > { %v4005_v41 = vsub.s32 32, %v4004_v28  ;;  %v4009_v44 = vsub.s32 4294967266, %v4004_v28  ;;  %v3890_v13 = vadd.s32 %v3889_v48, %v3885_v49  ;;  %vm8917_vm5 = vcmp.lt.s32.totalorder %v6619_v11, 4 }
 0x382   : > { %v2425_v30 = vsel %vm8917_vm5, %v2413_v55, 2102212464  ;;  %v2428_v62 = vsel %vm2420_vm12, %v2407_v56, %v2410_v5  ;;  %v2430_v38 = vsel %vm2422_vm2, %v2413_v55, %v6870_v32  ;;  %v2432_v19 = vsel %vm2420_vm12, %v2410_v5, %v2413_v55  ;;  %v8925_v55 = vld [vmem:[#allocation82_spill] sm:$0xff] }
 0x383   : > { %v4006_v15 = vshll.u32 %v7627_v40, %v4004_v28  ;;  %v4007_v27 = vshrl.u32 %v3989_v3, %v4005_v41  ;;  %v4010_v31 = vadd.s32 127, %v4009_v44  ;;  %v3891_v18 = vadd.s32 536870912, %v3890_v13 }
 0x384   : > { %v2426_v21 = vsel %vm2422_vm2, %v2410_v5, %v2425_v30  ;;  %v2431_v52 = vsel %vm2421_vm7, %v2428_v62, %v2430_v38  ;;  %v2434_v26 = vsel %vm2422_vm2, %v8918_v24, %v6877_v2  ;;  %v2436_v37 = vshll.u32 %v2396_v20, 8  ;;  %v8923_v20 = vld [vmem:[#allocation83_spill] sm:$0xff] }
 0x385   : > { %v4008_v36 = vor.u32 %v4007_v27, %v4006_v15  ;;  %v4011_v49 = vshll.u32 %v4010_v31, 23  ;;  %v7684_v22 = vshrl.u32 %v3891_v18, 30  ;;  %v2435_v32 = vsel %vm2421_vm7, %v2432_v19, %v2434_v26  ;;  %v8927_v38 = vld [vmem:[#allocation67_spill] sm:$0xff]  ;;  %v8931_v27 = vld [vmem:[#allocation76_spill] sm:$0xff]  ;;  %v8932_v18 = vld [vmem:[#allocation74_spill] sm:$0xff] }
 0x386   : > { %v7688_v63 = vmul.u32.u64.low %v2436_v37, %v2435_v32  ;;  %v7689_v40 = vmul.u32.u64.high %v2436_v37, %v2435_v32, %v7688_v63  ;;  %v7691_v3 = vmul.u32.u64.low %v2436_v37, %v2431_v52  ;;  %v7692_v42 = vmul.u32.u64.high %v2436_v37, %v2431_v52, %v7691_v3 }
 0x387   : > { %v8919_v56 = vand.u32 2147483647, %v7299_v43  ;;  %v8920_v2 = vmov 0  ;;  %v4012_v46 = vor.u32 4788187, %v4011_v49  ;;  %v3893_v47 = vshll.u32 %v7684_v22, 30 }
 0x388   : > { %v8924_v5 = vor.u32 %v8922_v17, %v8923_v20  ;;  %vm8926_vm5 = vcmp.lt.s32.totalorder %v8925_v55, 4  ;;  %4786 = vsinq.f32 %v7589_v34  ;;  %v2427_v41 = vsel %vm2421_vm7, %v2424_v45, %v2426_v21  ;;  %v7749_v20 = vpop.eup %4784 }
 0x389   : > { %vm7698_vm2 = vcmp.le.f32.partialorder %v8919_v56, 0.7853982  ;;  %4788 = vcosq.f32 %v7594_v7  ;;  %v4013_v44 = vand.u32 2147483647, %v4012_v46  ;;  %v4015_v30 = vcvt.s32.f32 %v4008_v36 }
 0x38a   : > { %v8921_v2 = vsel %vm7698_vm2, 4294967295, %v8920_v2  ;;  %v2536_v28 = vsel %vm8926_vm5, %v8924_v5, 1326507024  ;;  %v3712_v48 = vsel %vm7698_vm2, %v7299_v43, %v3709_v54  ;;  %v7715_v62 = vsub.s32 %v3890_v13, %v3893_v47 }
 0x38b   : > { %4790 = vsinq.f32 %v7594_v7  ;;  %vm2445_vm15 = vc.u32 %v7689_v40, %v7691_v3  ;;  %v2446_v34 = vadd.s32 1, %v7692_v42  ;;  %v2491_v19 = vand.u32 2147483647, %v8927_v38 }
 0x38c   : > { %4792 = vcosq.f32 %v3712_v48  ;;  %v8928_v54 = vand.u32 2147483647, %v7352_v10  ;;  %v8929_v11 = vmov 0  ;;  %v4016_v45 = vmul.f32 %v4015_v30, %v4013_v44 }
 0x38d   : > { %v3896_v13 = vsub.s32 0, %v7715_v62  ;;  %v2443_v15 = vmul.u32 %v2436_v37, %v2427_v41  ;;  %v2447_v7 = vsel %vm2445_vm15, %v2446_v34, %v7692_v42  ;;  %v2509_v31 = vshrl.u32 %v8664_v0, %v8931_v27 }
 0x38e   : > { %vm7724_vm10 = vcmp.le.f32.partialorder %v8928_v54, 0.7853982  ;;  %v2511_v21 = vshll.u32 %v8664_v0, %v8932_v18  ;;  %v2512_v52 = vshrl.u32 %v8665_v51, %v8931_v27  ;;  %v4017_v24 = vxor.u32 2147483648, %v4016_v45 }
 0x38f   : > { %v8930_v11 = vsel %vm7724_vm10, 4294967295, %v8929_v11  ;;  %v4352_v26 = vmin.u32 %v3896_v13, %v7715_v62  ;;  %v2448_v36 = vadd.s32 %v2447_v7, %v2443_v15  ;;  %v2508_v49 = vshll.u32 %v8661_v35, %v8932_v18 }
 0x390   : > { %v2498_v37 = vand.u32 8388607, %v2491_v19  ;;  %v2513_v32 = vor.u32 %v2512_v52, %v2511_v21  ;;  %v2514_v63 = vshll.u32 %v8665_v51, %v8932_v18  ;;  %v2515_v0 = vshrl.u32 %v8666_v14, %v8931_v27 }
 0x391   : > { %4794 = vsinq.f32 %v3712_v48  ;;  %vm8634_vm12 = vcmp.lt.s32.totalorder %v7352_v10, 0  ;;  %v3898_v42 = vclz %v4352_v26  ;;  %v2449_v56 = vadd.s32 536870912, %v2448_v36 }
 0x392   : > { %v3886_v46 = vadd.s32 %v7645_v60, %v7651_v29  ;;  %v2510_v47 = vor.u32 %v2509_v31, %v2508_v49  ;;  %v2516_v17 = vor.u32 %v2515_v0, %v2514_v63  ;;  %vm2523_vm7 = vcmp.lt.s32.totalorder %v8925_v55, 1  ;;  %v7754_v14 = vpop.eup %4786  ;;  %v8933_v29 = vld [vmem:[#allocation85_spill] sm:$0xff] }
 0x393   : > { %v4018_v51 = vsel %vm8634_vm12, %v4017_v24, %v4016_v45  ;;  %v4353_v5 = vadd.s32 4294967294, %v3898_v42  ;;  %v2450_v41 = vshrl.u32 %v2449_v56, 30  ;;  %vm2525_vm5 = vcmp.lt.s32.totalorder %v8925_v55, 3  ;;  %v7763_v34 = vpop.eup %4788 }
 0x394   : > { %v2499_v48 = vor.u32 8388608, %v2498_v37  ;;  %v2507_v44 = vshrl.u32 %v8661_v35, %v8931_v27  ;;  %v2535_v60 = vsel %vm2523_vm7, %v2513_v32, %v2516_v17  ;;  %v2537_v30 = vsel %vm2525_vm5, %v8933_v29, %v2536_v28  ;;  %v8935_v28 = vld [vmem:[#allocation92_spill] sm:$0xff] }
 0x395   : > { %vm4354_vm15 = vcmp.lt.s32.totalorder %v4353_v5, 0  ;;  %v2451_v54 = vshll.u32 %v2450_v41, 30  ;;  %vm2524_vm12 = vcmp.lt.s32.totalorder %v8925_v55, 2  ;;  %vm8934_vm2 = vcmp.lt.s32.totalorder %v8925_v55, 4  ;;  %v7768_v13 = vpop.eup %4790 }
 0x396   : > { %v2528_v45 = vsel %vm8934_vm2, %v2516_v17, 2102212464  ;;  %v4021_v35 = vsel %vm7724_vm10, %v7352_v10, %v4018_v51  ;;  %v3901_v15 = vsel %vm4354_vm15, 0, %v4353_v5  ;;  %v2531_v7 = vsel %vm2523_vm7, %v2510_v47, %v2513_v32  ;;  %v7778_v31 = vpop.eup %4792 }
 0x397   : > { %v2533_v27 = vsel %vm2525_vm5, %v2516_v17, %v8935_v28  ;;  %v3902_v18 = vsub.s32 32, %v3901_v15  ;;  %v3906_v21 = vsub.s32 4294967266, %v3901_v15  ;;  %v7780_v52 = vsub.s32 %v2448_v36, %v2451_v54  ;;  %v8943_v54 = vld [vmem:[#allocation15_spill] sm:$0xff] }
 0x398   : > { %v2538_v24 = vsel %vm2524_vm12, %v2535_v60, %v2537_v30  ;;  %v2474_v26 = vsub.s32 4, %v2450_v41  ;;  %v2527_v49 = vsel %vm2523_vm7, %v2507_v44, %v2510_v47  ;;  %v2529_v37 = vsel %vm2525_vm5, %v2513_v32, %v2528_v45  ;;  %v8939_v32 = vld [vmem:[#allocation8_spill] sm:$0xff] }
 0x399   : > { %v2539_v63 = vshll.u32 %v2499_v48, 8  ;;  %v3903_v0 = vshll.u32 %v7715_v62, %v3901_v15  ;;  %v3904_v42 = vshrl.u32 %v3886_v46, %v3902_v18  ;;  %v3907_v56 = vadd.s32 127, %v3906_v21 }
 0x39a   : > { %v8936_v17 = vand.u32 2147483647, %v6346_v6  ;;  %v2454_v51 = vsub.s32 0, %v7780_v52  ;;  %v2534_v5 = vsel %vm2524_vm12, %v2531_v7, %v2533_v27  ;;  %v8940_v48 = vand.u32 2147483647, %v8939_v32  ;;  %v8944_v7 = vld [vmem:[#allocation79_spill] sm:$0xff] }
 0x39b   : > { %v7798_v47 = vmul.u32.u64.low %v2539_v63, %v2538_v24  ;;  %v7799_v44 = vmul.u32.u64.high %v2539_v63, %v2538_v24, %v7798_v47  ;;  %v7807_v46 = vpop.eup %4794  ;;  %v3905_v60 = vor.u32 %v3904_v42, %v3903_v0  ;;  %v3908_v29 = vshll.u32 %v3907_v56, 23 }
 0x39c   : > { %vm7791_vm2 = vcmp.le.f32.partialorder %v8936_v17, 0.7853982  ;;  %vm7803_vm7 = vcmp.le.f32.partialorder %v8940_v48, 0.7853982  ;;  %v4296_v30 = vmin.u32 %v2454_v51, %v7780_v52  ;;  %v826_v45 = vsub.s32 4, %v8943_v54  ;;  %v8949_v51 = vld [vmem:[#allocation7_spill] sm:$0xff] }
 0x39d   : > { %4796 = vcosq.f32 %v4021_v35  ;;  %vm8637_vm15 = vcmp.lt.s32.totalorder %v6346_v6, 0  ;;  %v2444_v15 = vadd.s32 %v7691_v3, %v7689_v40  ;;  %v828_v28 = vsel %vm7803_vm7, %v8939_v32, %v8944_v7  ;;  %v8959_v48 = vld [vmem:[#allocation23_spill] sm:$0xff] }
 0x39e   : > { %v3909_v27 = vor.u32 4788187, %v3908_v29  ;;  %v2456_v18 = vclz %v4296_v30  ;;  %v2530_v21 = vsel %vm2524_vm12, %v2527_v49, %v2529_v37  ;;  %vm8945_vm10 = vcmp.lt.s32.totalorder %v8939_v32, 0  ;;  %v8954_v29 = vld [vmem:[#allocation28_spill] sm:$0xff] }
 0x39f   : > { %v827_v24 = vsel %vm8945_vm10, %v826_v45, %v8943_v54  ;;  %v8946_v0 = vand.u32 2147483647, %v7460_v4  ;;  %v8947_v42 = vmov 0  ;;  %v2475_v40 = vsel %vm8637_vm15, %v2474_v26, %v2450_v41  ;;  %v8953_v26 = vld [vmem:[#allocation12_spill] sm:$0xff] }
 0x3a0   : > { %v7832_v3 = vmul.u32.u64.low %v2539_v63, %v2534_v5  ;;  %v7833_v56 = vmul.u32.u64.high %v2539_v63, %v2534_v5, %v7832_v3  ;;  %4798 = vcosq.f32 %v828_v28  ;;  %v3910_v17 = vand.u32 2147483647, %v3909_v27 }
 0x3a1   : > { %vm7826_vm5 = vcmp.le.f32.partialorder %v8946_v0, 0.7853982  ;;  %v3912_v55 = vcvt.s32.f32 %v3905_v60  ;;  %v4297_v49 = vadd.s32 4294967294, %v2456_v18  ;;  %4800 = vsinq.f32 %v828_v28 }
 0x3a2   : > { %v8948_v42 = vsel %vm7826_vm5, 4294967295, %v8947_v42  ;;  %4802 = vsinq.f32 %v4021_v35  ;;  %vm2548_vm10 = vc.u32 %v7799_v44, %v7832_v3  ;;  %v829_v37 = vsel %vm7803_vm7, 0, %v827_v24 }
 0x3a3   : > { %v8950_v47 = vand.u32 2147483647, %v8949_v51  ;;  %v3913_v41 = vmul.f32 %v3912_v55, %v3910_v17  ;;  %vm4298_vm15 = vcmp.lt.s32.totalorder %v4297_v49, 0  ;;  %v929_v5 = vsub.s32 4, %v8953_v26 }
 0x3a4   : > { %v2459_v60 = vsel %vm4298_vm15, 0, %v4297_v49  ;;  %v2477_v62 = vsel %vm7791_vm2, 0, %v2475_v40  ;;  %v2546_v30 = vmul.u32 %v2539_v63, %v2530_v21  ;;  %v2549_v54 = vadd.s32 1, %v7833_v56 }
 0x3a5   : > { %vm7840_vm12 = vcmp.le.f32.partialorder %v8950_v47, 0.7853982  ;;  %v3914_v45 = vxor.u32 2147483648, %v3913_v41  ;;  %v2460_v7 = vsub.s32 32, %v2459_v60  ;;  %v2464_v28 = vsub.s32 4294967266, %v2459_v60 }
 0x3a6   : > { %v931_v35 = vsel %vm7840_vm12, %v8949_v51, %v8954_v29  ;;  %v833_v27 = vand.u32 3, %v829_v37  ;;  %v2461_v18 = vshll.u32 %v7780_v52, %v2459_v60  ;;  %v2550_v24 = vsel %vm2548_vm10, %v2549_v54, %v7833_v56 }
 0x3a7   : > { %vm8955_vm15 = vcmp.lt.s32.totalorder %v8949_v51, 0  ;;  %4804 = vcosq.f32 %v931_v35  ;;  %vm8956_vm4 = vcmp.lt.s32.totalorder %v7460_v4, 0  ;;  %v2462_v21 = vshrl.u32 %v2444_v15, %v2460_v7  ;;  %v7862_v55 = vpop.eup %4796  ;;  %v4037_v15 = vld [vmem:[%s8385_s3 + $0x8] sm:$0xff] }
 0x3a8   : > { %v930_v0 = vsel %vm8955_vm15, %v929_v5, %v8953_v26  ;;  %v3915_v63 = vsel %vm8956_vm4, %v3914_v45, %v3913_v41  ;;  %v2465_v40 = vadd.s32 127, %v2464_v28  ;;  %v2551_v17 = vadd.s32 %v2550_v24, %v2546_v30  ;;  %4104 = vmatprep.mubr.f32.mxu1 %v4037_v15 }
 0x3a9   : > { %v7864_v52 = vand.u32 3, %v2477_v62  ;;  %vm7868_vm7 = vcmp.le.f32.partialorder %v2491_v19, 0.7853982  ;;  %v932_v56 = vsel %vm7840_vm12, 0, %v930_v0  ;;  %4806 = vsinq.f32 %v931_v35 }
 0x3aa   : > { %v3918_v37 = vsel %vm7826_vm5, %v7460_v4, %v3915_v63  ;;  %v2463_v47 = vor.u32 %v2462_v21, %v2461_v18  ;;  %v2466_v41 = vshll.u32 %v2465_v40, 23  ;;  %v2552_v26 = vadd.s32 536870912, %v2551_v17  ;;  %v4799_v19 = vpop.eup %4798 }
 0x3ab   : > { %v7881_v5 = vadd.s32 %v7832_v3, %v7799_v44  ;;  %vm835_vm10 = vcmp.eq.s32.totalorder %v833_v27, 0  ;;  %v2680_v29 = vsub.s32 4, %v8959_v48  ;;  %v4801_v35 = vpop.eup %4800  ;;  %v839_v30 = vxor.u32 2147483648, %v4799_v19 }
 0x3ac   : > { %v2467_v60 = vor.u32 4788187, %v2466_v41  ;;  %v2553_v62 = vshrl.u32 %v2552_v26, 30  ;;  %v936_v54 = vand.u32 3, %v932_v56  ;;  %v7885_v45 = vpop.eup %4802  ;;  %4808 = vcosq.f32 %v3918_v37  ;;  %v8962_v41 = vld [vmem:[#allocation93_spill] sm:$0xff] }
 0x3ad   : > { %v2470_v7 = vcvt.s32.f32 %v2463_v47  ;;  %v836_v28 = vxor.u32 2147483648, %v4801_v35  ;;  %vm838_vm12 = vcmp.eq.s32.totalorder %v833_v27, 2  ;;  %4810 = vsinq.f32 %v3918_v37 }
 0x3ae   : > { %v2468_v18 = vand.u32 2147483647, %v2467_v60  ;;  %v2554_v24 = vshll.u32 %v2553_v62, 30  ;;  %v2577_v44 = vsub.s32 4, %v2553_v62  ;;  %v840_v3 = vsel %vm838_vm12, %v839_v30, %v4801_v35 }
 0x3af   : > { %vm834_vm15 = vcmp.lt.s32.totalorder %v833_v27, 2  ;;  %v837_v0 = vsel %vm835_vm10, %v4799_v19, %v836_v28  ;;  %vm8960_vm4 = vcmp.lt.s32.totalorder %v6520_v53, 0  ;;  %vm8961_vm5 = vcmp.lt.s32.totalorder %v8927_v38, 0 }
 0x3b0   : > { %v2681_v63 = vsel %vm8960_vm4, %v2680_v29, %v8959_v48  ;;  %v2471_v21 = vmul.f32 %v2470_v7, %v2468_v18  ;;  %v7891_v40 = vsub.s32 %v2551_v17, %v2554_v24  ;;  %v2578_v56 = vsel %vm8961_vm5, %v2577_v44, %v2553_v62  ;;  %v8963_v62 = vld [vmem:[#allocation109_spill] sm:$0xff] }
 0x3b1   : > { %vm935_vm14 = vweird.f32 %v8949_v51  ;;  %vm937_vm13 = vcmp.lt.s32.totalorder %v936_v54, 2  ;;  %v4805_v15 = vpop.eup %4804  ;;  %v2580_v37 = vsel %vm7868_vm7, 0, %v2578_v56  ;;  %v841_v47 = vsel %vm834_vm15, %v837_v0, %v840_v3  ;;  %v8966_v0 = vld [vmem:[#allocation6_spill] sm:$0xff]  ;;  %v8968_v56 = vld [vmem:[#allocation108_spill] sm:$0xff] }
 0x3b2   : > { %v2683_v27 = vsel %vm6983_vm11, 0, %v2681_v63  ;;  %v2783_v26 = vsub.s32 4, %v8962_v41  ;;  %v2472_v19 = vxor.u32 2147483648, %v2471_v21  ;;  %v2557_v17 = vsub.s32 0, %v7891_v40 }
 0x3b3   : > { %vm938_vm4 = vcmp.eq.s32.totalorder %v936_v54, 0  ;;  %v942_v48 = vxor.u32 2147483648, %v4805_v15  ;;  %v4807_v29 = vpop.eup %4806  ;;  %vm941_vm5 = vcmp.eq.s32.totalorder %v936_v54, 2  ;;  %v2687_v35 = vand.u32 3, %v2683_v27 }
 0x3b4   : > { %v2690_v60 = vxor.u32 2147483648, %v7094_v33  ;;  %v2693_v30 = vxor.u32 2147483648, %v8963_v62  ;;  %vm8964_vm10 = vcmp.lt.s32.totalorder %v6346_v6, 0  ;;  %v4300_v57 = vmin.u32 %v2557_v17, %v7891_v40 }
 0x3b5   : > { %v2473_v7 = vsel %vm8964_vm10, %v2472_v19, %v2471_v21  ;;  %v7907_v28 = vand.u32 3, %v2580_v37  ;;  %vm8965_vm11 = vweird.f32 %v8939_v32  ;;  %v939_v44 = vxor.u32 2147483648, %v4807_v29 }
 0x3b6   : > { %v7911_v18 = vsel %vm8965_vm11, nan, %v841_v47  ;;  %v2476_v24 = vsel %vm7791_vm2, %v6346_v6, %v2473_v7  ;;  %v943_v3 = vsel %vm941_vm5, %v942_v48, %v4807_v29  ;;  %vm8967_vm12 = vcmp.lt.s32.totalorder %v8966_v0, 0  ;;  %v7921_v32 = vpop.eup %4808 }
 0x3b7   : > { %v2784_v63 = vsel %vm8967_vm12, %v2783_v26, %v8962_v41  ;;  %4812 = vcosq.f32 %v2476_v24  ;;  %v2559_v21 = vclz %v4300_v57  ;;  %vm2686_vm15 = vweird.f32 %v6520_v53  ;;  %v7929_v48 = vpop.eup %4810 }
 0x3b8   : > { %vm2689_vm10 = vcmp.eq.s32.totalorder %v2687_v35, 0  ;;  %v2793_v37 = vxor.u32 2147483648, %v8968_v56  ;;  %4814 = vsinq.f32 %v2476_v24  ;;  %v940_v47 = vsel %vm938_vm4, %v4805_v15, %v939_v44  ;;  %v8970_v15 = vld [vmem:[#allocation107_spill] sm:$0xff] }
 0x3b9   : > { %v2691_v36 = vsel %vm2689_vm10, %v8963_v62, %v2690_v60  ;;  %vm2692_vm2 = vcmp.eq.s32.totalorder %v2687_v35, 2  ;;  %v4301_v27 = vadd.s32 4294967294, %v2559_v21  ;;  %v944_v19 = vsel %vm937_vm13, %v940_v47, %v943_v3  ;;  %v8974_v47 = vld [vmem:[#allocation42_spill] sm:$0xff] }
 0x3ba   : > { %v2694_v41 = vsel %vm2692_vm2, %v2693_v30, %v7094_v33  ;;  %v2786_v17 = vsel %vm6838_vm3, 0, %v2784_v63  ;;  %v7933_v29 = vsel %vm935_vm14, nan, %v944_v19  ;;  %vm2688_vm5 = vcmp.lt.s32.totalorder %v2687_v35, 2  ;;  %v8971_v33 = vld [vmem:[#allocation21_spill] sm:$0xff]  ;;  %v8972_v63 = vld [vmem:[#allocation11_spill] sm:$0xff] }
 0x3bb   : > { %v2790_v7 = vand.u32 3, %v2786_v17  ;;  %v2796_v57 = vxor.u32 2147483648, %v8970_v15  ;;  %vm2486_vm4 = vcmp.eq.s32.totalorder %v7864_v52, 2  ;;  %vm4302_vm11 = vcmp.lt.s32.totalorder %v4301_v27, 0 }
 0x3bc   : > { %v2695_v54 = vsel %vm2688_vm5, %v2691_v36, %v2694_v41  ;;  %vm2789_vm13 = vweird.f32 %v8966_v0  ;;  %v1032_v60 = vsub.s32 4, %v8971_v33  ;;  %vm2483_vm3 = vcmp.eq.s32.totalorder %v7864_v52, 0 }
 0x3bd   : > { %v2562_v62 = vsel %vm4302_vm11, 0, %v4301_v27  ;;  %v4486_v51 = vpack.c.bf16 %v7933_v29, %v7911_v18  ;;  %vm2791_vm14 = vcmp.lt.s32.totalorder %v2790_v7, 2  ;;  %vm2792_vm12 = vcmp.eq.s32.totalorder %v2790_v7, 0  ;;  %v9027_v18 = vld [vmem:[#allocation60_spill] sm:$0xff] }
 0x3be   : > { %v2563_v35 = vsub.s32 32, %v2562_v62  ;;  %v2567_v30 = vsub.s32 4294967266, %v2562_v62  ;;  %v2794_v24 = vsel %vm2792_vm12, %v8970_v15, %v2793_v37  ;;  %vm2795_vm10 = vcmp.eq.s32.totalorder %v2790_v7, 2  ;;  %v8976_v7 = vld [vmem:[#allocation40_spill] sm:$0xff] }
 0x3bf   : > { %vm2482_vm2 = vcmp.lt.s32.totalorder %v7864_v52, 2  ;;  %v2564_v44 = vshll.u32 %v7891_v40, %v2562_v62  ;;  %v2797_v3 = vsel %vm2795_vm10, %v2796_v57, %v8968_v56  ;;  %vm8973_vm5 = vcmp.lt.s32.totalorder %v8972_v63, 0  ;;  %v8977_v15 = vld [vmem:[#allocation16_spill] sm:$0xff]  ;;  %v8984_v52 = vld [vmem:[#allocation13_spill] sm:$0xff] }
 0x3c0   : > { %v1033_v21 = vsel %vm8973_vm5, %v1032_v60, %v8971_v33  ;;  %v1042_v36 = vxor.u32 2147483648, %v8974_v47  ;;  %v2565_v27 = vshrl.u32 %v7881_v5, %v2563_v35  ;;  %v2568_v19 = vadd.s32 127, %v2567_v30 }
 0x3c1   : > { %v2798_v41 = vsel %vm2791_vm14, %v2794_v24, %v2797_v3  ;;  %v1035_v37 = vsel %vm5704_vm8, 0, %v1033_v21  ;;  %v7955_v17 = vsel %vm2686_vm15, nan, %v2695_v54  ;;  %v1045_v56 = vxor.u32 2147483648, %v8976_v7  ;;  %v4813_v62 = vpop.eup %4812  ;;  %v8978_v21 = vld [vmem:[#allocation9_spill] sm:$0xff] }
 0x3c2   : > { %v1039_v40 = vand.u32 3, %v1035_v37  ;;  %v1135_v57 = vsub.s32 4, %v8977_v15  ;;  %v2566_v33 = vor.u32 %v2565_v27, %v2564_v44  ;;  %v2569_v60 = vshll.u32 %v2568_v19, 23  ;;  %v4815_v35 = vpop.eup %4814  ;;  %v8980_v19 = vld [vmem:[#allocation39_spill] sm:$0xff] }
 0x3c3   : > { %v7961_v5 = vsel %vm2789_vm13, nan, %v2798_v41  ;;  %vm1038_vm11 = vweird.f32 %v8972_v63  ;;  %vm2480_vm8 = vweird.f32 %v6346_v6  ;;  %v2487_v53 = vxor.u32 2147483648, %v4813_v62 }
 0x3c4   : > { %vm1040_vm15 = vcmp.lt.s32.totalorder %v1039_v40, 2  ;;  %vm1041_vm14 = vcmp.eq.s32.totalorder %v1039_v40, 0  ;;  %vm1044_vm12 = vcmp.eq.s32.totalorder %v1039_v40, 2  ;;  %v2484_v54 = vxor.u32 2147483648, %v4815_v35 }
 0x3c5   : > { %v2570_v30 = vor.u32 4788187, %v2569_v60  ;;  %v2573_v24 = vcvt.s32.f32 %v2566_v33  ;;  %v1043_v3 = vsel %vm1041_vm14, %v8976_v7, %v1042_v36  ;;  %v2488_v44 = vsel %vm2486_vm4, %v2487_v53, %v4815_v35  ;;  %v8982_v7 = vld [vmem:[#allocation34_spill] sm:$0xff]  ;;  %v8983_v35 = vld [vmem:[#allocation99_spill] sm:$0xff] }
 0x3c6   : > { %v1046_v0 = vsel %vm1044_vm12, %v1045_v56, %v8974_v47  ;;  %vm8979_vm13 = vcmp.lt.s32.totalorder %v8978_v21, 0  ;;  %v1145_v41 = vxor.u32 2147483648, %v8980_v19  ;;  %v2485_v26 = vsel %vm2483_vm3, %v4813_v62, %v2484_v54 }
 0x3c7   : > { %v1136_v27 = vsel %vm8979_vm13, %v1135_v57, %v8977_v15  ;;  %v2571_v37 = vand.u32 2147483647, %v2570_v30  ;;  %v1047_v40 = vsel %vm1040_vm15, %v1043_v3, %v1046_v0  ;;  %v4488_v36 = vpack.c.bf16 %v7961_v5, %v7955_v17  ;;  %v9029_v17 = vld [vmem:[#allocation20_spill] sm:$0xff] }
 0x3c8   : > { %v1138_v33 = vsel %vm5615_vm0, 0, %v1136_v27  ;;  %vm1141_vm4 = vweird.f32 %v8978_v21  ;;  %v1148_v56 = vxor.u32 2147483648, %v8982_v7  ;;  %v2489_v15 = vsel %vm2482_vm2, %v2485_v26, %v2488_v44 }
 0x3c9   : > { %v1142_v47 = vand.u32 3, %v1138_v33  ;;  %v2574_v57 = vmul.f32 %v2573_v24, %v2571_v37  ;;  %v7985_v62 = vsel %vm1038_vm11, nan, %v1047_v40  ;;  %v2886_v53 = vsub.s32 4, %v8983_v35  ;;  %v8987_v37 = vld [vmem:[#allocation96_spill] sm:$0xff] }
 0x3ca   : > { %v2896_v54 = vxor.u32 2147483648, %v7301_v25  ;;  %vm8985_vm2 = vcmp.lt.s32.totalorder %v8984_v52, 0  ;;  %v2899_v26 = vxor.u32 2147483648, %v7224_v16  ;;  %v2989_v40 = vsub.s32 4, %v8987_v37 }
 0x3cb   : > { %vm1143_vm3 = vcmp.lt.s32.totalorder %v1142_v47, 2  ;;  %vm1144_vm0 = vcmp.eq.s32.totalorder %v1142_v47, 0  ;;  %vm1147_vm10 = vcmp.eq.s32.totalorder %v1142_v47, 2  ;;  %v2575_v30 = vxor.u32 2147483648, %v2574_v57 }
 0x3cc   : > { %v1146_v3 = vsel %vm1144_vm0, %v8982_v7, %v1145_v41  ;;  %v1149_v0 = vsel %vm1147_vm10, %v1148_v56, %v8980_v19  ;;  %v2887_v24 = vsel %vm8985_vm2, %v2886_v53, %v8983_v35  ;;  %v8000_v60 = vsel %vm2480_vm8, nan, %v2489_v15  ;;  %v8989_v7 = vld [vmem:[#allocation14_spill] sm:$0xff]  ;;  %v8991_v56 = vld [vmem:[#allocation111_spill] sm:$0xff] }
 0x3cd   : > { %v1150_v44 = vsel %vm1143_vm3, %v1146_v3, %v1149_v0  ;;  %v2889_v27 = vsel %vm7043_vm9, 0, %v2887_v24  ;;  %vm8988_vm5 = vcmp.lt.s32.totalorder %v8927_v38, 0  ;;  %vm2892_vm11 = vweird.f32 %v8984_v52  ;;  %v8994_v0 = vld [vmem:[#allocation25_spill] sm:$0xff] }
 0x3ce   : > { %v2576_v41 = vsel %vm8988_vm5, %v2575_v30, %v2574_v57  ;;  %v2893_v19 = vand.u32 3, %v2889_v27  ;;  %v8010_v47 = vsel %vm1141_vm4, nan, %v1150_v44  ;;  %vm8990_vm9 = vcmp.lt.s32.totalorder %v8989_v7, 0  ;;  %v8993_v30 = vld [vmem:[#allocation110_spill] sm:$0xff] }
 0x3cf   : > { %v2579_v33 = vsel %vm7868_vm7, %v8927_v38, %v2576_v41  ;;  %v2990_v6 = vsel %vm8990_vm9, %v2989_v40, %v8987_v37  ;;  %vm2995_vm8 = vweird.f32 %v8989_v7  ;;  %v2999_v15 = vxor.u32 2147483648, %v8991_v56  ;;  %v8995_v27 = vld [vmem:[#allocation58_spill] sm:$0xff]  ;;  %v8996_v40 = vld [vmem:[#allocation57_spill] sm:$0xff] }
 0x3d0   : > { %4816 = vcosq.f32 %v2579_v33  ;;  %vm2895_vm15 = vcmp.eq.s32.totalorder %v2893_v19, 0  ;;  %vm2898_vm14 = vcmp.eq.s32.totalorder %v2893_v19, 2  ;;  %v2992_v21 = vsel %vm7004_vm6, 0, %v2990_v6  ;;  %v9000_v6 = vld [vmem:[#allocation22_spill] sm:$0xff] }
 0x3d1   : > { %4818 = vsinq.f32 %v2579_v33  ;;  %v2897_v57 = vsel %vm2895_vm15, %v7224_v16, %v2896_v54  ;;  %v2900_v49 = vsel %vm2898_vm14, %v2899_v26, %v7301_v25  ;;  %vm2894_vm7 = vcmp.lt.s32.totalorder %v2893_v19, 2  ;;  %v8997_v16 = vld [vmem:[#allocation18_spill] sm:$0xff] }
 0x3d2   : > { %v2996_v53 = vand.u32 3, %v2992_v21  ;;  %v3002_v3 = vxor.u32 2147483648, %v8993_v30  ;;  %v1238_v24 = vsub.s32 4, %v8994_v0  ;;  %v2901_v63 = vsel %vm2894_vm7, %v2897_v57, %v2900_v49 }
 0x3d3   : > { %v1248_v37 = vxor.u32 2147483648, %v8995_v27  ;;  %v1251_v41 = vxor.u32 2147483648, %v8996_v40  ;;  %vm2589_vm12 = vcmp.eq.s32.totalorder %v7907_v28, 2  ;;  %vm8998_vm6 = vcmp.lt.s32.totalorder %v8997_v16, 0 }
 0x3d4   : > { %vm2997_vm13 = vcmp.lt.s32.totalorder %v2996_v53, 2  ;;  %vm2998_vm4 = vcmp.eq.s32.totalorder %v2996_v53, 0  ;;  %vm3001_vm3 = vcmp.eq.s32.totalorder %v2996_v53, 2  ;;  %v1239_v25 = vsel %vm8998_vm6, %v1238_v24, %v8994_v0  ;;  %v9005_v24 = vld [vmem:[#allocation48_spill] sm:$0xff] }
 0x3d5   : > { %vm2586_vm0 = vcmp.eq.s32.totalorder %v7907_v28, 0  ;;  %v3000_v54 = vsel %vm2998_vm4, %v8993_v30, %v2999_v15  ;;  %v3003_v26 = vsel %vm3001_vm3, %v3002_v3, %v8991_v56  ;;  %v1241_v33 = vsel %vm5897_vm1, 0, %v1239_v25  ;;  %v9001_v15 = vld [vmem:[#allocation17_spill] sm:$0xff] }
 0x3d6   : > { %v1341_v57 = vsub.s32 4, %v9000_v6  ;;  %vm2585_vm10 = vcmp.lt.s32.totalorder %v7907_v28, 2  ;;  %v8040_v49 = vsel %vm2892_vm11, nan, %v2901_v63  ;;  %v3004_v35 = vsel %vm2997_vm13, %v3000_v54, %v3003_v26  ;;  %v9003_v30 = vld [vmem:[#allocation105_spill] sm:$0xff]  ;;  %v9006_v54 = vld [vmem:[#allocation43_spill] sm:$0xff] }
 0x3d7   : > { %vm1244_vm2 = vweird.f32 %v8997_v16  ;;  %v1245_v21 = vand.u32 3, %v1241_v33  ;;  %vm2583_vm5 = vweird.f32 %v8927_v38  ;;  %v8046_v56 = vsel %vm2995_vm8, nan, %v3004_v35  ;;  %v9004_v3 = vld [vmem:[#allocation49_spill] sm:$0xff]  ;;  %v9015_v38 = vld [vmem:[#allocation35_spill] sm:$0xff] }
 0x3d8   : > { %vm9002_vm1 = vcmp.lt.s32.totalorder %v9001_v15, 0  ;;  %vm1347_vm9 = vweird.f32 %v9001_v15  ;;  %v3092_v52 = vsub.s32 4, %v9003_v30  ;;  %v1351_v0 = vxor.u32 2147483648, %v9004_v3 }
 0x3d9   : > { %v1342_v53 = vsel %vm9002_vm1, %v1341_v57, %v9000_v6  ;;  %vm1247_vm11 = vcmp.eq.s32.totalorder %v1245_v21, 0  ;;  %vm1250_vm15 = vcmp.eq.s32.totalorder %v1245_v21, 2  ;;  %v1354_v63 = vxor.u32 2147483648, %v9005_v24 }
 0x3da   : > { %v1249_v25 = vsel %vm1247_vm11, %v8996_v40, %v1248_v37  ;;  %v1252_v7 = vsel %vm1250_vm15, %v1251_v41, %v8995_v27  ;;  %vm9007_vm8 = vnez %v9006_v54  ;;  %vm9008_vm14 = vcmp.lt.s32.totalorder %v6736_v58, 0  ;;  %v4817_v33 = vpop.eup %4816 }
 0x3db   : > { %v1344_v26 = vsel %vm9007_vm8, 0, %v1342_v53  ;;  %v3093_v19 = vsel %vm9008_vm14, %v3092_v52, %v9003_v30  ;;  %v4492_v6 = vpack.c.bf16 %v8046_v56, %v8040_v49  ;;  %vm1246_vm7 = vcmp.lt.s32.totalorder %v1245_v21, 2  ;;  %v4819_v44 = vpop.eup %4818 }
 0x3dc   : > { %v1348_v57 = vand.u32 3, %v1344_v26  ;;  %vm9009_vm13 = vnez %v8883_v9  ;;  %v2590_v37 = vxor.u32 2147483648, %v4817_v33  ;;  %v1253_v40 = vsel %vm1246_vm7, %v1249_v25, %v1252_v7 }
 0x3dd   : > { %v3095_v35 = vsel %vm9009_vm13, 0, %v3093_v19  ;;  %v3102_v41 = vxor.u32 2147483648, %v7381_v50  ;;  %v2587_v53 = vxor.u32 2147483648, %v4819_v44  ;;  %vm3098_vm6 = vweird.f32 %v6736_v58  ;;  %v9023_v58 = vld [vmem:[#allocation30_spill] sm:$0xff] }
 0x3de   : > { %v3099_v27 = vand.u32 3, %v3095_v35  ;;  %vm1350_vm4 = vcmp.eq.s32.totalorder %v1348_v57, 0  ;;  %vm1353_vm3 = vcmp.eq.s32.totalorder %v1348_v57, 2  ;;  %v2591_v30 = vsel %vm2589_vm12, %v2590_v37, %v4819_v44  ;;  %v9010_v44 = vld [vmem:[#allocation117_spill] sm:$0xff]  ;;  %v9014_v37 = vld [vmem:[#allocation116_spill] sm:$0xff] }
 0x3df   : > { %vm1349_vm1 = vcmp.lt.s32.totalorder %v1348_v57, 2  ;;  %v1352_v21 = vsel %vm1350_vm4, %v9005_v24, %v1351_v0  ;;  %v1355_v9 = vsel %vm1353_vm3, %v1354_v63, %v9004_v3  ;;  %v2588_v52 = vsel %vm2586_vm0, %v4817_v33, %v2587_v53  ;;  %v9011_v24 = vld [vmem:[#allocation103_spill] sm:$0xff]  ;;  %v9016_v53 = vld [vmem:[#allocation112_spill] sm:$0xff] }
 0x3e0   : > { %v1254_v25 = vsel %vm1244_vm2, nan, %v1253_v40  ;;  %v1356_v7 = vsel %vm1349_vm1, %v1352_v21, %v1355_v9  ;;  %vm3101_vm11 = vcmp.eq.s32.totalorder %v3099_v27, 0  ;;  %v2592_v54 = vsel %vm2585_vm10, %v2588_v52, %v2591_v30  ;;  %v9012_v57 = vld [vmem:[#allocation19_spill] sm:$0xff] }
 0x3e1   : > { %v1357_v26 = vsel %vm1347_vm9, nan, %v1356_v7  ;;  %v3103_v19 = vsel %vm3101_vm11, %v9010_v44, %v3102_v41  ;;  %v3105_v0 = vxor.u32 2147483648, %v9010_v44  ;;  %v2593_v3 = vsel %vm2583_vm5, nan, %v2592_v54  ;;  %v9018_v30 = vld [vmem:[#allocation51_spill] sm:$0xff]  ;;  %v9022_v54 = vld [vmem:[#allocation62_spill] sm:$0xff] }
 0x3e2   : > { %vm3100_vm12 = vcmp.lt.s32.totalorder %v3099_v27, 2  ;;  %vm3104_vm0 = vcmp.eq.s32.totalorder %v3099_v27, 2  ;;  %v3195_v16 = vsub.s32 4, %v9011_v24  ;;  %v4484_v63 = vpack.c.bf16 %v2593_v3, %v8000_v60  ;;  %v9019_v21 = vld [vmem:[#allocation63_spill] sm:$0xff]  ;;  %v9026_v3 = vld [vmem:[#allocation61_spill] sm:$0xff] }
 0x3e3   : > { %v4494_v33 = vpack.c.bf16 %v1357_v26, %v1254_v25  ;;  %v3106_v28 = vsel %vm3104_vm0, %v3105_v0, %v7381_v50  ;;  %vm3201_vm10 = vweird.f32 %v9012_v57  ;;  %vm9013_vm2 = vcmp.lt.s32.totalorder %v9012_v57, 0  ;;  %v9020_v25 = vld [vmem:[#allocation24_spill] sm:$0xff] }
 0x3e4   : > { %v3107_v15 = vsel %vm3100_vm12, %v3103_v19, %v3106_v28  ;;  %v3196_v35 = vsel %vm9013_vm2, %v3195_v16, %v9011_v24  ;;  %v3205_v40 = vxor.u32 2147483648, %v9014_v37  ;;  %v1444_v41 = vsub.s32 4, %v9015_v38  ;;  %4485 = vmatprep.subr.bf16.mxu1 %v4484_v63  ;;  %v9024_v19 = vld [vmem:[#allocation53_spill] sm:$0xff]  ;;  %v9036_v57 = vld [vmem:[#allocation124_spill] sm:$0xff] }
 0x3e5   : > { %v3108_v27 = vsel %vm3098_vm6, nan, %v3107_v15  ;;  %vm9017_vm5 = vnez %v9016_v53  ;;  %v3208_v50 = vxor.u32 2147483648, %v9018_v30  ;;  %v1454_v9 = vxor.u32 2147483648, %v9019_v21  ;;  %4487 = vmatpush3.bf16.msra.mxu1 %v4486_v51  ;;  %v9028_v51 = vld [vmem:[#allocation114_spill] sm:$0xff]  ;;  %v9033_v53 = vld [vmem:[#allocation52_spill] sm:$0xff] }
 0x3e6   : > { %v3198_v60 = vsel %vm9017_vm5, 0, %v3196_v35  ;;  %vm9021_vm9 = vcmp.lt.s32.totalorder %v9020_v25, 0  ;;  %v1457_v26 = vxor.u32 2147483648, %v9022_v54  ;;  %v1547_v44 = vsub.s32 4, %v9023_v58  ;;  %4489 = vmatprep.subr.bf16.mxu1 %v4488_v36 }
 0x3e7   : > { %v3202_v52 = vand.u32 3, %v3198_v60  ;;  %v1445_v7 = vsel %vm9021_vm9, %v1444_v41, %v9015_v38  ;;  %vm9025_vm15 = vnez %v9024_v19  ;;  %v1557_v24 = vxor.u32 2147483648, %v9026_v3 }
 0x3e8   : > { %v1447_v0 = vsel %vm9025_vm15, 0, %v1445_v7  ;;  %v1560_v29 = vxor.u32 2147483648, %v9027_v18  ;;  %v3298_v16 = vsub.s32 4, %v9028_v51  ;;  %vm9030_vm13 = vcmp.lt.s32.totalorder %v9029_v17, 0 }
 0x3e9   : > { %vm3203_vm8 = vcmp.lt.s32.totalorder %v3202_v52, 2  ;;  %vm3204_vm14 = vcmp.eq.s32.totalorder %v3202_v52, 0  ;;  %vm3207_vm7 = vcmp.eq.s32.totalorder %v3202_v52, 2  ;;  %v1451_v63 = vand.u32 3, %v1447_v0  ;;  %v9040_v0 = vld [vmem:[#allocation118_spill] sm:$0xff] }
 0x3ea   : > { %v3206_v28 = vsel %vm3204_vm14, %v9018_v30, %v3205_v40  ;;  %v3209_v15 = vsel %vm3207_vm7, %v3208_v50, %v9014_v37  ;;  %v1548_v5 = vsel %vm9030_vm13, %v1547_v44, %v9023_v58  ;;  %vm9031_vm4 = vcmp.lt.s32.totalorder %v7027_v12, 0  ;;  %v9038_v44 = vld [vmem:[#allocation26_spill] sm:$0xff] }
 0x3eb   : > { %v3299_v36 = vsel %vm9031_vm4, %v3298_v16, %v9028_v51  ;;  %v9032_v35 = vpack.c.bf16 %v8010_v47, %v7985_v62  ;;  %v3210_v38 = vsel %vm3203_vm8, %v3206_v28, %v3209_v15  ;;  %vm1452_vm3 = vcmp.lt.s32.totalorder %v1451_v63, 2  ;;  %v9044_v16 = vld [vmem:[#allocation47_spill] sm:$0xff]  ;;  %v9045_v28 = vld [vmem:[#allocation33_spill] sm:$0xff]  ;;  %v9046_v15 = vld [vmem:[#allocation38_spill] sm:$0xff] }
 0x3ec   : > { %vm1453_vm6 = vcmp.eq.s32.totalorder %v1451_v63, 0  ;;  %vm1456_vm1 = vcmp.eq.s32.totalorder %v1451_v63, 2  ;;  %v3211_v37 = vsel %vm3201_vm10, nan, %v3210_v38  ;;  %vm9034_vm11 = vnez %v9033_v53  ;;  %v9049_v38 = vld [vmem:[#allocation78_spill] sm:$0xff]  ;;  %v9051_v53 = vld [vmem:[#allocation65_spill] sm:$0xff] }
 0x3ed   : > { %4491 = vmatpush3.bf16.msra.mxu1 %v9032_v35  ;;  %v1455_v40 = vsel %vm1453_vm6, %v9022_v54, %v1454_v9  ;;  %v1458_v41 = vsel %vm1456_vm1, %v1457_v26, %v9019_v21  ;;  %v1550_v60 = vsel %vm9034_vm11, 0, %v1548_v5  ;;  %v4496_v62 = vpack.c.bf16 %v3211_v37, %v3108_v27 }
 0x3ee   : > { %4493 = vmatprep.subr.bf16.mxu1 %v4492_v6  ;;  %v1459_v47 = vsel %vm1452_vm3, %v1455_v40, %v1458_v41  ;;  %v1554_v30 = vand.u32 3, %v1550_v60  ;;  %vm9035_vm12 = vnez %v8896_v61  ;;  %vm1450_vm0 = vweird.f32 %v9020_v25  ;;  %v9037_v25 = vld [vmem:[#allocation113_spill] sm:$0xff]  ;;  %v9050_v40 = vld [vmem:[#allocation70_spill] sm:$0xff] }
 0x3ef   : > { %v3301_v50 = vsel %vm9035_vm12, 0, %v3299_v36  ;;  %vm1553_vm2 = vweird.f32 %v9029_v17  ;;  %v3308_v56 = vxor.u32 2147483648, %v7534_v39  ;;  %v1460_v6 = vsel %vm1450_vm0, nan, %v1459_v47  ;;  %v9048_v36 = vld [vmem:[#allocation80_spill] sm:$0xff] }
 0x3f0   : > { %v3305_v49 = vand.u32 3, %v3301_v50  ;;  %vm1556_vm10 = vcmp.eq.s32.totalorder %v1554_v30, 0  ;;  %vm1559_vm5 = vcmp.eq.s32.totalorder %v1554_v30, 2  ;;  %v3311_v21 = vxor.u32 2147483648, %v9036_v57  ;;  %v9053_v50 = vld [vmem:[#allocation29_spill] sm:$0xff] }
 0x3f1   : > { %4495 = vmatpush3.bf16.msra.mxu1 %v4494_v33  ;;  %vm1555_vm9 = vcmp.lt.s32.totalorder %v1554_v30, 2  ;;  %v1558_v27 = vsel %vm1556_vm10, %v9027_v18, %v1557_v24  ;;  %v1561_v61 = vsel %vm1559_vm5, %v1560_v29, %v9026_v3  ;;  %v3401_v7 = vsub.s32 4, %v9037_v25  ;;  %v9042_v24 = vld [vmem:[#allocation123_spill] sm:$0xff]  ;;  %v9043_v29 = vld [vmem:[#allocation121_spill] sm:$0xff] }
 0x3f2   : > { %4497 = vmatprep.subr.bf16.mxu1 %v4496_v62  ;;  %vm3307_vm15 = vcmp.eq.s32.totalorder %v3305_v49, 0  ;;  %v1562_v9 = vsel %vm1555_vm9, %v1558_v27, %v1561_v61  ;;  %vm3310_vm8 = vcmp.eq.s32.totalorder %v3305_v49, 2  ;;  %vm3304_vm14 = vweird.f32 %v7027_v12  ;;  %v9058_v61 = vld [vmem:[#allocation119_spill] sm:$0xff] }
 0x3f3   : > { %v3309_v52 = vsel %vm3307_vm15, %v9036_v57, %v3308_v56  ;;  %v1563_v33 = vsel %vm1553_vm2, nan, %v1562_v9  ;;  %vm3306_vm7 = vcmp.lt.s32.totalorder %v3305_v49, 2  ;;  %v3312_v54 = vsel %vm3310_vm8, %v3311_v21, %v7534_v39  ;;  %v9057_v21 = vld [vmem:[#allocation69_spill] sm:$0xff] }
 0x3f4   : > { %v4498_v26 = vpack.c.bf16 %v1563_v33, %v1460_v6  ;;  %v3313_v58 = vsel %vm3306_vm7, %v3309_v52, %v3312_v54  ;;  %vm9039_vm13 = vcmp.lt.s32.totalorder %v9038_v44, 0  ;;  %vm3407_vm4 = vweird.f32 %v9038_v44  ;;  %v9055_v6 = vld [vmem:[#allocation59_spill] sm:$0xff] }
 0x3f5   : > { %v3402_v19 = vsel %vm9039_vm13, %v3401_v7, %v9037_v25  ;;  %vm9041_vm3 = vnez %v9040_v0  ;;  %v3411_v18 = vxor.u32 2147483648, %v9042_v24  ;;  %v3414_v51 = vxor.u32 2147483648, %v9043_v29 }
 0x3f6   : > { %v3404_v3 = vsel %vm9041_vm3, 0, %v3402_v19  ;;  %v1650_v12 = vsub.s32 4, %v9044_v16  ;;  %4499 = vmatpush3.bf16.msra.mxu1 %v4498_v26  ;;  %v3314_v63 = vsel %vm3304_vm14, nan, %v3313_v58  ;;  %vm1656_vm6 = vweird.f32 %v9045_v28 }
 0x3f7   : > { %v3408_v39 = vand.u32 3, %v3404_v3  ;;  %v1753_v17 = vsub.s32 4, %v9046_v15  ;;  %vm9047_vm1 = vcmp.lt.s32.totalorder %v9045_v28, 0  ;;  %v1660_v35 = vxor.u32 2147483648, %v9048_v36  ;;  %v9062_v28 = vld [vmem:[#allocation36_spill] sm:$0xff] }
 0x3f8   : > { %v1651_v5 = vsel %vm9047_vm1, %v1650_v12, %v9044_v16  ;;  %v1663_v37 = vxor.u32 2147483648, %v9049_v38  ;;  %v1763_v41 = vxor.u32 2147483648, %v9050_v40  ;;  %vm9052_vm2 = vnez %v9051_v53  ;;  %v9068_v53 = vld [vmem:[#allocation45_spill] sm:$0xff] }
 0x3f9   : > { %vm3409_vm11 = vcmp.lt.s32.totalorder %v3408_v39, 2  ;;  %vm3410_vm12 = vcmp.eq.s32.totalorder %v3408_v39, 0  ;;  %vm3413_vm0 = vcmp.eq.s32.totalorder %v3408_v39, 2  ;;  %v1653_v60 = vsel %vm9052_vm2, 0, %v1651_v5 }
 0x3fa   : > { %v3412_v62 = vsel %vm3410_vm12, %v9043_v29, %v3411_v18  ;;  %v3415_v47 = vsel %vm3413_vm0, %v3414_v51, %v9042_v24  ;;  %v1657_v30 = vand.u32 3, %v1653_v60  ;;  %vm9054_vm10 = vcmp.lt.s32.totalorder %v9053_v50, 0  ;;  %v9061_v29 = vld [vmem:[#allocation115_spill] sm:$0xff] }
 0x3fb   : > { %v1754_v49 = vsel %vm9054_vm10, %v1753_v17, %v9046_v15  ;;  %v3416_v56 = vsel %vm3409_vm11, %v3412_v62, %v3415_v47  ;;  %vm9056_vm5 = vnez %v9055_v6  ;;  %v1766_v27 = vxor.u32 2147483648, %v9057_v21  ;;  %v9064_v17 = vld [vmem:[#allocation125_spill] sm:$0xff] }
 0x3fc   : > { %v1756_v57 = vsel %vm9056_vm5, 0, %v1754_v49  ;;  %v3504_v9 = vsub.s32 4, %v9058_v61  ;;  %v3417_v52 = vsel %vm3407_vm4, nan, %v3416_v56  ;;  %vm1658_vm9 = vcmp.lt.s32.totalorder %v1657_v30, 2  ;;  %v9072_v49 = vld [vmem:[#allocation87_spill] sm:$0xff]  ;;  %v9073_v56 = vld [vmem:[#allocation84_spill] sm:$0xff] }
 0x3fd   : > { %vm1659_vm15 = vcmp.eq.s32.totalorder %v1657_v30, 0  ;;  %vm1662_vm8 = vcmp.eq.s32.totalorder %v1657_v30, 2  ;;  %v4500_v25 = vpack.c.bf16 %v3417_v52, %v3314_v63  ;;  %v1760_v54 = vand.u32 3, %v1756_v57  ;;  %v9070_v30 = vld [vmem:[#allocation72_spill] sm:$0xff] }
 0x3fe   : > { %v1661_v7 = vsel %vm1659_vm15, %v9049_v38, %v1660_v35  ;;  %v1664_v33 = vsel %vm1662_vm8, %v1663_v37, %v9048_v36  ;;  %vm9059_vm14 = vcmp.lt.s32.totalorder %v7186_v8, 0  ;;  %v3514_v19 = vxor.u32 2147483648, %v7754_v14  ;;  %v9065_v36 = vld [vmem:[#allocation55_spill] sm:$0xff] }
 0x3ff   : > { %v1665_v26 = vsel %vm1658_vm9, %v1661_v7, %v1664_v33  ;;  %v3505_v58 = vsel %vm9059_vm14, %v3504_v9, %v9058_v61  ;;  %v3517_v0 = vxor.u32 2147483648, %v7749_v20  ;;  %4501 = vmatprep.subr.bf16.mxu1 %v4500_v25  ;;  %vm1761_vm7 = vcmp.lt.s32.totalorder %v1760_v54, 2  ;;  %v9075_v25 = vld [vmem:[#allocation37_spill] sm:$0xff] }
 0x400   : > { %v1666_v44 = vsel %vm1656_vm6, nan, %v1665_v26  ;;  %vm1762_vm13 = vcmp.eq.s32.totalorder %v1760_v54, 0  ;;  %vm1765_vm4 = vcmp.eq.s32.totalorder %v1760_v54, 2  ;;  %vm9060_vm3 = vnez %v8912_v1  ;;  %v9077_v26 = vld [vmem:[#allocation71_spill] sm:$0xff] }
 0x401   : > { %v1764_v3 = vsel %vm1762_vm13, %v9057_v21, %v1763_v41  ;;  %v1767_v24 = vsel %vm1765_vm4, %v1766_v27, %v9050_v40  ;;  %v3507_v18 = vsel %vm9060_vm3, 0, %v3505_v58  ;;  %v3607_v51 = vsub.s32 4, %v9061_v29  ;;  %v9066_v40 = vld [vmem:[#allocation120_spill] sm:$0xff]  ;;  %v9074_v21 = vld [vmem:[#allocation50_spill] sm:$0xff] }
 0x402   : > { %vm1759_vm1 = vweird.f32 %v9053_v50  ;;  %v1768_v16 = vsel %vm1761_vm7, %v1764_v3, %v1767_v24  ;;  %v3511_v12 = vand.u32 3, %v3507_v18  ;;  %v3617_v63 = vxor.u32 2147483648, %v7621_v23  ;;  %v9080_v24 = vld [vmem:[#allocation81_spill] sm:$0xff] }
 0x403   : > { %v1769_v39 = vsel %vm1759_vm1, nan, %v1768_v16  ;;  %vm9063_vm6 = vcmp.lt.s32.totalorder %v9062_v28, 0  ;;  %v3620_v5 = vxor.u32 2147483648, %v9064_v17  ;;  %v1856_v35 = vsub.s32 4, %v9065_v36 }
 0x404   : > { %v3608_v15 = vsel %vm9063_vm6, %v3607_v51, %v9061_v29  ;;  %v4502_v38 = vpack.c.bf16 %v1769_v39, %v1666_v44  ;;  %vm3512_vm11 = vcmp.lt.s32.totalorder %v3511_v12, 2  ;;  %vm3513_vm12 = vcmp.eq.s32.totalorder %v3511_v12, 0  ;;  %v9079_v44 = vld [vmem:[#allocation10_spill] sm:$0xff] }
 0x405   : > { %vm3516_vm0 = vcmp.eq.s32.totalorder %v3511_v12, 2  ;;  %v3515_v1 = vsel %vm3513_vm12, %v7749_v20, %v3514_v19  ;;  %vm9067_vm2 = vnez %v9066_v40  ;;  %vm9069_vm10 = vcmp.lt.s32.totalorder %v9068_v53, 0  ;;  %v9081_v29 = vld [vmem:[#allocation126_spill] sm:$0xff] }
 0x406   : > { %v3518_v37 = vsel %vm3516_vm0, %v3517_v0, %v7754_v14  ;;  %v3610_v41 = vsel %vm9067_vm2, 0, %v3608_v15  ;;  %v1857_v60 = vsel %vm9069_vm10, %v1856_v35, %v9065_v36  ;;  %4503 = vmatpush3.bf16.msra.mxu1 %v4502_v38  ;;  %vm3510_vm5 = vweird.f32 %v7186_v8  ;;  %v9084_v36 = vld [vmem:[#allocation122_spill] sm:$0xff] }
 0x407   : > { %v3519_v62 = vsel %vm3512_vm11, %v3515_v1, %v3518_v37  ;;  %v3614_v47 = vand.u32 3, %v3610_v41  ;;  %vm9071_vm9 = vnez %v9070_v30  ;;  %vm3613_vm15 = vweird.f32 %v9062_v28  ;;  %v9085_v41 = vld [vmem:[#allocation41_spill] sm:$0xff] }
 0x408   : > { %v1859_v50 = vsel %vm9071_vm9, 0, %v1857_v60  ;;  %v1866_v14 = vxor.u32 2147483648, %v9072_v49  ;;  %v1869_v6 = vxor.u32 2147483648, %v9073_v56  ;;  %v3520_v57 = vsel %vm3510_vm5, nan, %v3519_v62  ;;  %v9087_v60 = vld [vmem:[#allocation68_spill] sm:$0xff] }
 0x409   : > { %v1863_v20 = vand.u32 3, %v1859_v50  ;;  %vm3616_vm8 = vcmp.eq.s32.totalorder %v3614_v47, 0  ;;  %vm3619_vm14 = vcmp.eq.s32.totalorder %v3614_v47, 2  ;;  %v1959_v27 = vsub.s32 4, %v9074_v21 }
 0x40a   : > { %vm3615_vm7 = vcmp.lt.s32.totalorder %v3614_v47, 2  ;;  %v3618_v8 = vsel %vm3616_vm8, %v9064_v17, %v3617_v63  ;;  %v3621_v61 = vsel %vm3619_vm14, %v3620_v5, %v7621_v23  ;;  %vm9076_vm3 = vcmp.lt.s32.totalorder %v9075_v25, 0  ;;  %v9088_v47 = vld [vmem:[#allocation127_spill] sm:$0xff] }
 0x40b   : > { %vm1865_vm13 = vcmp.eq.s32.totalorder %v1863_v20, 0  ;;  %v3622_v9 = vsel %vm3615_vm7, %v3618_v8, %v3621_v61  ;;  %vm1868_vm4 = vcmp.eq.s32.totalorder %v1863_v20, 2  ;;  %v1960_v7 = vsel %vm9076_vm3, %v1959_v27, %v9074_v21  ;;  %v9094_v27 = vld [vmem:[#allocation91_spill] sm:$0xff]  ;;  %v9095_v61 = vld [vmem:[#allocation90_spill] sm:$0xff] }
 0x40c   : > { %v1867_v52 = vsel %vm1865_vm13, %v9073_v56, %v1866_v14  ;;  %v3623_v33 = vsel %vm3613_vm15, nan, %v3622_v9  ;;  %vm1864_vm1 = vcmp.lt.s32.totalorder %v1863_v20, 2  ;;  %v1870_v54 = vsel %vm1868_vm4, %v1869_v6, %v9072_v49  ;;  %v9090_v14 = vld [vmem:[#allocation54_spill] sm:$0xff] }
 0x40d   : > { %vm9078_vm6 = vnez %v9077_v26  ;;  %v4504_v19 = vpack.c.bf16 %v3623_v33, %v3520_v57  ;;  %v1871_v23 = vsel %vm1864_vm1, %v1867_v52, %v1870_v54  ;;  %v1969_v3 = vxor.u32 2147483648, %v9079_v44  ;;  %v9092_v57 = vld [vmem:[#allocation75_spill] sm:$0xff]  ;;  %v9097_v26 = vld [vmem:[#allocation89_spill] sm:$0xff] }
 0x40e   : > { %v1962_v58 = vsel %vm9078_vm6, 0, %v1960_v7  ;;  %vm1862_vm11 = vweird.f32 %v9068_v53  ;;  %vm1965_vm12 = vweird.f32 %v9075_v25  ;;  %v1972_v18 = vxor.u32 2147483648, %v9080_v24  ;;  %v9096_v7 = vld [vmem:[#allocation64_spill] sm:$0xff] }
 0x40f   : > { %v1966_v0 = vand.u32 3, %v1962_v58  ;;  %v3710_v51 = vsub.s32 4, %v9081_v29  ;;  %4505 = vmatprep.subr.bf16.mxu1 %v4504_v19  ;;  %v1872_v16 = vsel %vm1862_vm11, nan, %v1871_v23  ;;  %vm9082_vm5 = vcmp.lt.s32.totalorder %v7299_v43, 0 }
 0x410   : > { %v3720_v28 = vxor.u32 2147483648, %v7807_v46  ;;  %vm9083_vm9 = vnez %v8921_v2  ;;  %v3723_v5 = vxor.u32 2147483648, %v7778_v31  ;;  %v3813_v35 = vsub.s32 4, %v9084_v36 }
 0x411   : > { %vm1967_vm0 = vcmp.lt.s32.totalorder %v1966_v0, 2  ;;  %vm1968_vm2 = vcmp.eq.s32.totalorder %v1966_v0, 0  ;;  %vm1971_vm10 = vcmp.eq.s32.totalorder %v1966_v0, 2  ;;  %v3711_v39 = vsel %vm9082_vm5, %v3710_v51, %v9081_v29 }
 0x412   : > { %v1970_v12 = vsel %vm1968_vm2, %v9080_v24, %v1969_v3  ;;  %v1973_v63 = vsel %vm1971_vm10, %v1972_v18, %v9079_v44  ;;  %v3713_v17 = vsel %vm9083_vm9, 0, %v3711_v39  ;;  %vm3716_vm15 = vweird.f32 %v7299_v43  ;;  %v9100_v3 = vld [vmem:[#allocation73_spill] sm:$0xff]  ;;  %v9102_v18 = vld [vmem:[#allocation88_spill] sm:$0xff] }
 0x413   : > { %v1974_v15 = vsel %vm1967_vm0, %v1970_v12, %v1973_v63  ;;  %v3717_v1 = vand.u32 3, %v3713_v17  ;;  %v3823_v37 = vxor.u32 2147483648, %v7768_v13  ;;  %vm9086_vm8 = vcmp.lt.s32.totalorder %v9085_v41, 0 }
 0x414   : > { %v1975_v38 = vsel %vm1965_vm12, nan, %v1974_v15  ;;  %v3814_v53 = vsel %vm9086_vm8, %v3813_v35, %v9084_v36  ;;  %v3826_v2 = vxor.u32 2147483648, %v7763_v34  ;;  %v2062_v62 = vsub.s32 4, %v9087_v60 }
 0x415   : > { %v4506_v40 = vpack.c.bf16 %v1975_v38, %v1872_v16  ;;  %vm3718_vm14 = vcmp.lt.s32.totalorder %v3717_v1, 2  ;;  %vm3719_vm7 = vcmp.eq.s32.totalorder %v3717_v1, 0  ;;  %vm3722_vm13 = vcmp.eq.s32.totalorder %v3717_v1, 2 }
 0x416   : > { %vm9089_vm4 = vnez %v9088_v47  ;;  %v3721_v50 = vsel %vm3719_vm7, %v7778_v31, %v3720_v28  ;;  %v3724_v20 = vsel %vm3722_vm13, %v3723_v5, %v7807_v46  ;;  %vm9091_vm3 = vcmp.lt.s32.totalorder %v9090_v14, 0  ;;  %v9108_v47 = vld [vmem:[#allocation66_spill] sm:$0xff] }
 0x417   : > { %v3816_v30 = vsel %vm9089_vm4, 0, %v3814_v53  ;;  %4507 = vmatpush3.bf16.msra.mxu1 %v4506_v40  ;;  %v2063_v56 = vsel %vm9091_vm3, %v2062_v62, %v9087_v60  ;;  %v3725_v6 = vsel %vm3718_vm14, %v3721_v50, %v3724_v20  ;;  %vm9093_vm1 = vnez %v9092_v57  ;;  %v9110_v50 = vld [vmem:[#allocation106_spill] sm:$0xff] }
 0x418   : > { %v3820_v49 = vand.u32 3, %v3816_v30  ;;  %v2065_v21 = vsel %vm9093_vm1, 0, %v2063_v56  ;;  %v2072_v8 = vxor.u32 2147483648, %v9094_v27  ;;  %v2075_v9 = vxor.u32 2147483648, %v9095_v61 }
 0x419   : > { %v3726_v52 = vsel %vm3716_vm15, nan, %v3725_v6  ;;  %v2069_v25 = vand.u32 3, %v2065_v21  ;;  %v2165_v33 = vsub.s32 4, %v9096_v7  ;;  %vm3819_vm0 = vweird.f32 %v9085_v41  ;;  %v9107_v41 = vld [vmem:[#allocation77_spill] sm:$0xff] }
 0x41a   : > { %vm3821_vm6 = vcmp.lt.s32.totalorder %v3820_v49, 2  ;;  %vm3822_vm11 = vcmp.eq.s32.totalorder %v3820_v49, 0  ;;  %vm3825_vm12 = vcmp.eq.s32.totalorder %v3820_v49, 2  ;;  %vm2068_vm2 = vweird.f32 %v9090_v14 }
 0x41b   : > { %v3824_v31 = vsel %vm3822_vm11, %v7763_v34, %v3823_v37  ;;  %v3827_v46 = vsel %vm3825_vm12, %v3826_v2, %v7768_v13  ;;  %v2175_v58 = vxor.u32 2147483648, %v9097_v26  ;;  %vm2070_vm10 = vcmp.lt.s32.totalorder %v2069_v25, 2  ;;  %v9098_v13 = vld [vmem:[#allocation46_spill] sm:$0xff] }
 0x41c   : > { %v3828_v54 = vsel %vm3821_vm6, %v3824_v31, %v3827_v46  ;;  %vm2071_vm5 = vcmp.eq.s32.totalorder %v2069_v25, 0  ;;  %vm2074_vm9 = vcmp.eq.s32.totalorder %v2069_v25, 2  ;;  %vm9099_vm15 = vcmp.lt.s32.totalorder %v9098_v13, 0  ;;  %v9117_v46 = vld [vmem:[#allocation94_spill] sm:$0xff]  ;;  %v9119_v25 = vld [vmem:[#allocation101_spill] sm:$0xff] }
 0x41d   : > { %v3829_v19 = vsel %vm3819_vm0, nan, %v3828_v54  ;;  %v2073_v23 = vsel %vm2071_vm5, %v9095_v61, %v2072_v8  ;;  %v2076_v34 = vsel %vm2074_vm9, %v2075_v9, %v9094_v27  ;;  %v2166_v0 = vsel %vm9099_vm15, %v2165_v33, %v9096_v7  ;;  %v9114_v27 = vld [vmem:[#allocation5_spill] sm:$0xff]  ;;  %v9120_v33 = vld [vmem:[#allocation100_spill] sm:$0xff] }
 0x41e   : > { %v4508_v43 = vpack.c.bf16 %v3829_v19, %v3726_v52  ;;  %v2077_v44 = vsel %vm2070_vm10, %v2073_v23, %v2076_v34  ;;  %vm9101_vm8 = vnez %v9100_v3  ;;  %v2178_v29 = vxor.u32 2147483648, %v9102_v18  ;;  %v4039_v3 = vld [vmem:[%s8385_s3 + $0x18] sm:$0xff] }
 0x41f   : > { %v2168_v24 = vsel %vm9101_vm8, 0, %v2166_v0  ;;  %v3916_v51 = vsub.s32 4, %v7684_v22  ;;  %v2078_v16 = vsel %vm2068_vm2, nan, %v2077_v44  ;;  %vm2171_vm14 = vweird.f32 %v9098_v13  ;;  %v4036_v44 = vld [vmem:[%s8385_s3] sm:$0xff] }
 0x420   : > { %4509 = vmatprep.subr.bf16.mxu1 %v4508_v43  ;;  %v2172_v12 = vand.u32 3, %v2168_v24  ;;  %v3926_v63 = vxor.u32 2147483648, %v7929_v48  ;;  %vm9103_vm7 = vcmp.lt.s32.totalorder %v7460_v4, 0  ;;  %v3929_v28 = vxor.u32 2147483648, %v7921_v32  ;;  %v4038_v24 = vld [vmem:[%s8385_s3 + $0x10] sm:$0xff] }
 0x421   : > { %v3917_v39 = vsel %vm9103_vm7, %v3916_v51, %v7684_v22  ;;  %v4019_v15 = vsub.s32 4, %v7618_v59  ;;  %v4029_v17 = vxor.u32 2147483648, %v7885_v45  ;;  %vm9104_vm1 = vnez %v8948_v42 }
 0x422   : > { %vm2173_vm13 = vcmp.lt.s32.totalorder %v2172_v12, 2  ;;  %vm2174_vm4 = vcmp.eq.s32.totalorder %v2172_v12, 0  ;;  %vm2177_vm3 = vcmp.eq.s32.totalorder %v2172_v12, 2  ;;  %v3919_v5 = vsel %vm9104_vm1, 0, %v3917_v39 }
 0x423   : > { %v2176_v36 = vsel %vm2174_vm4, %v9102_v18, %v2175_v58  ;;  %v2179_v35 = vsel %vm2177_vm3, %v2178_v29, %v9097_v26  ;;  %v3923_v38 = vand.u32 3, %v3919_v5  ;;  %vm9105_vm6 = vcmp.lt.s32.totalorder %v7352_v10, 0 }
 0x424   : > { %v4020_v22 = vsel %vm9105_vm6, %v4019_v15, %v7618_v59  ;;  %v2180_v1 = vsel %vm2173_vm13, %v2176_v36, %v2179_v35  ;;  %vm9106_vm11 = vnez %v8930_v11  ;;  %v4032_v40 = vxor.u32 2147483648, %v7862_v55  ;;  %v4822_v15 = vld [vmem:[%s4980_s9] sm:$0xff]  ;;  %s4827_s9 = sshll.u32 %s4894_s19, 4  ;;  %s4828_s9 = int_to_ptr.vmem [resolvable:$false] %s4827_s9 }
 0x425   : > { %v4022_v37 = vsel %vm9106_vm11, 0, %v4020_v22  ;;  %v2268_v53 = vsub.s32 4, %v9107_v41  ;;  %v2181_v42 = vsel %vm2171_vm14, nan, %v2180_v1  ;;  %vm3924_vm12 = vcmp.lt.s32.totalorder %v3923_v38, 2  ;;  %s4829_s7 = scalar_lea.vmem %s4828_s9, 256  ;;  %p4830_p0 = scmp.lt.s32.totalorder %s8342_s27, %s4828_s9 }
 0x426   : > { %vm3925_vm0 = vcmp.eq.s32.totalorder %v3923_v38, 0  ;;  %vm3928_vm2 = vcmp.eq.s32.totalorder %v3923_v38, 2  ;;  %v4510_v2 = vpack.c.bf16 %v2181_v42, %v2078_v16  ;;  %v4026_v59 = vand.u32 3, %v4022_v37  ;;  %p4831_p1 = scmp.lt.s32.totalorder %s4829_s7, %s4823_s6 }
 0x427   : > { %v3927_v60 = vsel %vm3925_vm0, %v7921_v32, %v3926_v63  ;;  %v3930_v62 = vsel %vm3928_vm2, %v3929_v28, %v7929_v48  ;;  %vm3922_vm10 = vweird.f32 %v7460_v4  ;;  %vm9109_vm5 = vcmp.lt.s32.totalorder %v9108_v47, 0  ;;  %v9111_v48 = vld [vmem:[#allocation97_spill] sm:$0xff]  ;;  %v9113_v4 = vld [vmem:[#allocation102_spill] sm:$0xff] }
 0x428   : > { %v3931_v11 = vsel %vm3924_vm12, %v3927_v60, %v3930_v62  ;;  %v2269_v30 = vsel %vm9109_vm5, %v2268_v53, %v9107_v41  ;;  %v2278_v20 = vxor.u32 2147483648, %v9110_v50  ;;  %4511 = vmatpush3.bf16.msra.mxu1 %v4510_v2  ;;  %vm4027_vm9 = vcmp.lt.s32.totalorder %v4026_v59, 2  ;;  %p4832_p2 = por %p4831_p1, %p4830_p0 }
 0x429   : > { %v3932_v49 = vsel %vm3922_vm10, nan, %v3931_v11  ;;  %vm4028_vm15 = vcmp.eq.s32.totalorder %v4026_v59, 0  ;;  %vm4031_vm8 = vcmp.eq.s32.totalorder %v4026_v59, 2  ;;  %vm9112_vm14 = vnez %v9111_v48 }
 0x42a   : > { %v4030_v14 = vsel %vm4028_vm15, %v7862_v55, %v4029_v17  ;;  %v4033_v32 = vsel %vm4031_vm8, %v4032_v40, %v7885_v45  ;;  %v2271_v56 = vsel %vm9112_vm14, 0, %v2269_v30  ;;  %v2281_v6 = vxor.u32 2147483648, %v9113_v4  ;;  %v9115_v45 = vld [vmem:[#allocation56_spill] sm:$0xff]  ;;  %p4833_p3 = pnand %p4832_p2, %p4826_p13 }
 0x42b   : > { %vm4025_vm7 = vweird.f32 %v7352_v10  ;;  %v4034_v57 = vsel %vm4027_vm9, %v4030_v14, %v4033_v32  ;;  %v2275_v21 = vand.u32 3, %v2271_v56  ;;  %v2371_v8 = vsub.s32 4, %v9114_v27 }
 0x42c   : > { %v4035_v61 = vsel %vm4025_vm7, nan, %v4034_v57  ;;  %vm9116_vm3 = vcmp.lt.s32.totalorder %v9115_v45, 0  ;;  %vm9118_vm6 = vnez %v9117_v46  ;;  %v2381_v7 = vxor.u32 2147483648, %v9119_v25 }
 0x42d   : > { %v4512_v9 = vpack.c.bf16 %v4035_v61, %v3932_v49  ;;  %vm2277_vm13 = vcmp.eq.s32.totalorder %v2275_v21, 0  ;;  %vm2280_vm4 = vcmp.eq.s32.totalorder %v2275_v21, 2  ;;  %v2372_v31 = vsel %vm9116_vm3, %v2371_v8, %v9114_v27 }
 0x42e   : > { %v2279_v52 = vsel %vm2277_vm13, %v9113_v4, %v2278_v20  ;;  %v2282_v55 = vsel %vm2280_vm4, %v2281_v6, %v9110_v50  ;;  %vm2276_vm1 = vcmp.lt.s32.totalorder %v2275_v21, 2  ;;  %v2374_v10 = vsel %vm9118_vm6, 0, %v2372_v31 }
 0x42f   : > { %4513 = vmatprep.subr.bf16.mxu1 %v4512_v9  ;;  %v2384_v54 = vxor.u32 2147483648, %v9120_v33  ;;  %v2283_v26 = vsel %vm2276_vm1, %v2279_v52, %v2282_v55  ;;  %v2378_v58 = vand.u32 3, %v2374_v10  ;;  %vm2274_vm11 = vweird.f32 %v9108_v47 }
 0x430   : > { %v2284_v19 = vsel %vm2274_vm11, nan, %v2283_v26  ;;  %vm2377_vm10 = vweird.f32 %v9115_v45 }
 0x431   : > { %vm2380_vm12 = vcmp.eq.s32.totalorder %v2378_v58, 0  ;;  %vm2383_vm0 = vcmp.eq.s32.totalorder %v2378_v58, 2  ;;  %vm2379_vm2 = vcmp.lt.s32.totalorder %v2378_v58, 2 }
 0x432   : > { %v2382_v43 = vsel %vm2380_vm12, %v9120_v33, %v2381_v7  ;;  %v2385_v23 = vsel %vm2383_vm0, %v2384_v54, %v9119_v25 }
 0x433   : > { %v2386_v34 = vsel %vm2379_vm2, %v2382_v43, %v2385_v23 }
 0x434   : > { %v2387_v13 = vsel %vm2377_vm10, nan, %v2386_v34 }
 0x435   : > { %v4514_v0 = vpack.c.bf16 %v2387_v13, %v2284_v19 }
 0x437   : > { %4515 = vmatpush3.bf16.msra.mxu1 %v4514_v0 }
 0x43a   : > { %4105 = vmatmul.mubr.f32.vlgmr.msra.gmra.mrb[0].mxu1 %v4036_v44 }
 0x43b   : > { %4109 = vmatprep.mubr.f32.mxu1 %v4039_v3 }
 0x43e   : > { %4110 = vmatmul.mubr.f32.gmra.mrb[2].mxu1 %v4038_v24 }
 0x50d   : > { %v4428_v18 = vpop.f32.mrb[0].mxu1 }
 0x50e   : > { %v4429_v29 = vpop.f32.mrb[1].mxu1 }
 0x50f   : > { %v4430_v51 = vadd.f32 %v4429_v29, %v4428_v18 }
 0x511   : > { %v4115_v16 = vmul.f32 1.442695, %v4430_v51  ;;  %v4431_v12 = vpop.f32.mrb[2].mxu1 }
 0x512   : > { %v4432_v63 = vpop.f32.mrb[3].mxu1 }
 0x513   : > { %4820 = vpow2.f32 %v4115_v16  ;;  %v4433_v39 = vadd.f32 %v4432_v63, %v4431_v12 }
 0x51d   : > { %v4821_v28 = vpop.eup %4820 }
 0x51e   : > { %v4117_v17 = vmul.f32 %v4822_v15, %v4821_v28 }
 0x520   : > { %v4118_v5 = vadd.f32 %v4433_v39, %v4117_v17 }
 0x522   : > { %4119 = vst [vmem:[%s188_s23] sm:$0xff] %v4118_v5 }
 0x523   : > { %4836 = shalt.err (!%p4833_p3)
}
 0x524   : > { %s4837_s8 = scalar_lea.hbm %s8340_s30, 128  ;;  %s4841_s12 = scalar_lea.hbm %s8386_s4, 256 }
 0x525   : > { %p4838_p4 = scmp.ne.s32.totalorder %s8340_s30, %s4837_s8  ;;  %p4842_p9 = scmp.lt.u32.totalorder %s8340_s30, %s8386_s4 }
 0x526   : > { %p4843_p10 = scmp.lt.u32.totalorder %s4841_s12, %s4837_s8  ;;  %p4845_p12 = scmp.lt.u32.totalorder %s4837_s8, %s8340_s30 }
 0x527   : > { %p4839_p7 = pnand %p4838_p4, %p4958_p5 }
 0x528   : > { %p4844_p11 = por %p4843_p10, %p4842_p9 }
 0x529   : > { %p4840_p8 = pneg %p4839_p7 }
 0x52a   : > { %p4846_p13 = por %p4845_p12, %p4844_p11 }
 0x52c   : > { %p4847_p0 = pnand %p4846_p13, %p4840_p8 }
 0x52e   : > { %4850 = shalt.err (!%p4847_p0)
}
 0x52f   : > { %4644 = dma.vmem_to_hbm [thread:$0]  (%p4958_p5), %s8342_s27, 128, %s8340_s30, %s4121_s5  }
 0x530 PF: > { %p4650_p1 = scmp.ge.s32.totalorder %s4885_s18, 2  ;;  %s4146_s20 = sand.u32 1, %s4873_s15  }
 0x531   : > { %s4147_s22 = scalar_lea.sflag [#allocation3], %s4146_s20 }
 0x532   : > { %p4647_p2 = pnand %p4650_p1, %p4962_p6 }
 0x534   : > { %4868 = dma.done.wait (!%p4647_p2), %s4147_s22, 128  }
 0x535   : > { %4870 = vsyncadd (!%p4647_p2), %s4147_s22, 4294967168  ;;  %p14_p3 = scmp.ge.s32.totalorder %s4945_s21, 4   ;;  %s9121_s15 = smov %s4877_s16 }
 0x536   : > { %s9122_s16 = smov %s4881_s17  ;;  %s9123_s17 = smov %s4956_s24 }
 0x537   : > { %s9124_s18 = smov %s4945_s21  ;;  %16 = sbr.rel (!%p14_p3) target bundleno = 3 (0x3), region = 71 }
 0x53e   :  { %4152 = vsyncpa [#allocation3], 1 }
 0x53f   :  { %4154 = vsyncpa [#allocation3 + $0x1], 1 }

</bundles_post_ra>
